<compile_context>
chip_gen: v6e
topology: v6e:2x2x1
jax: 0.10.0
libtpu: 0.0.40
codegen_flags: <defaults>
</compile_context>

<pallas_src>
import functools

import jax
import jax.numpy as jnp
from jax.experimental import pallas as pl
from jax.experimental.pallas import tpu as pltpu

EPS = 1e-5              # nn.BatchNorm2d default eps
SLOPE = 0.2             # LeakyReLU negative slope
LANE = 128              # TPU lane width
SUBLANE_BF16 = 16       # bf16 sublane-pack granularity (K padding target)
TM_MAX = 2048           # largest M tile for the tiled conv pipeline (multiple of 128)
VMEM_LIMIT = 32 * 1024 * 1024        # portable scoped-VMEM budget (safe on v7x too)
VMEM_BUDGET = int(0.7 * VMEM_LIMIT)  # leave headroom for compiler temporaries
# Note (v5e): if the tiled path is DMA-latency bound, bump the patch-tile BlockSpec to
# pipeline_mode=pl.Buffered(3).  Note (v5e/v6e, bigger models): VMEM_LIMIT can be raised
# to 64-96 MiB and TM_MAX grown accordingly; keep <=48 MiB scoped on v7x (64 MiB VMEM).


def _round_up(x, m):
    return -(-x // m) * m


def _leaky_relu(x):
    return jnp.where(x >= 0, x, SLOPE * x)


# ---------------- Pallas kernels ----------------

def _conv_fused_kernel(w_ref, p_ref, g_ref, beta_ref, o_ref, *, m_valid):
    """Whole layer in VMEM: Conv-GEMM + train-mode BatchNorm + LeakyReLU, one launch."""
    # [Cout, K] @ [K, M] -> [Cout, M]  (M on lanes, lane-dense stores)
    y = jnp.dot(w_ref[...], p_ref[...], preferred_element_type=jnp.float32)
    inv_m = 1.0 / m_valid
    # No conv bias / no column mask: bias is absorbed exactly by training-mode BN,
    # and zero-padded M columns contribute exactly 0 to both moments.
    mean = jnp.sum(y, axis=1, keepdims=True) * inv_m
    var = jnp.maximum(jnp.sum(y * y, axis=1, keepdims=True) * inv_m - mean * mean, 0.0)
    scale = g_ref[...] * jax.lax.rsqrt(var + EPS)
    shift = beta_ref[...] - mean * scale
    o_ref[...] = _leaky_relu(y * scale + shift).astype(o_ref.dtype)


def _conv_pass1_kernel(w_ref, p_ref, y_ref, psum_ref, pssq_ref):
    """Tiled GEMM; per-tile channel sum / sumsq via MXU ones-vector (grid is 'parallel')."""
    y = jnp.dot(w_ref[...], p_ref[...], preferred_element_type=jnp.float32)
    y_ref[...] = y.astype(y_ref.dtype)                 # bf16 pre-BN intermediate
    ones = jnp.ones((y.shape[1], 1), jnp.float32)      # reduction on the (idle) MXU
    psum_ref[0] = jnp.dot(y, ones, preferred_element_type=jnp.float32)
    pssq_ref[0] = jnp.dot(y * y, ones, preferred_element_type=jnp.float32)


def _conv_pass2_kernel(y_ref, scale_ref, shift_ref, o_ref):
    """Apply precomputed per-channel scale/shift + LeakyReLU, tiled & parallel over M."""
    yn = y_ref[...].astype(jnp.float32) * scale_ref[...] + shift_ref[...]
    o_ref[...] = _leaky_relu(yn).astype(o_ref.dtype)


def _head_kernel(x_ref, w6_ref, b6_ref, w7_ref, b7_ref, o_ref):
    """Linear -> LeakyReLU -> Linear -> Sigmoid, transposed layout [features, N]."""
    h = jnp.dot(w6_ref[...], x_ref[...], preferred_element_type=jnp.float32)
    h = _leaky_relu(h + b6_ref[...])
    z = jnp.dot(w7_ref[...], h.astype(w7_ref.dtype), preferred_element_type=jnp.float32)
    o_ref[...] = jax.nn.sigmoid(z + b7_ref[...])


# ---------------- JAX glue ----------------

def _im2col_t(x_cnhw, kh, kw, stride, pad):
    """Transposed im2col [K, M]; K ordered (kh, kw, cin), M ordered (n, oh, ow)."""
    cin, n, h, w_in = x_cnhw.shape
    ho = (h + 2 * pad - kh) // stride + 1
    wo = (w_in + 2 * pad - kw) // stride + 1
    xp = jnp.pad(x_cnhw, ((0, 0), (0, 0), (pad, pad), (pad, pad)))
    taps = [xp[:, :, i:i + stride * ho:stride, j:j + stride * wo:stride]
            for i in range(kh) for j in range(kw)]
    return jnp.stack(taps, axis=0).reshape(kh * kw * cin, n * ho * wo), ho, wo


def _plan_tiles(m, k_pad, cout):
    """Pick (tm, m_pad, fused) from the VMEM budget; fused = whole layer in one launch."""
    m128 = _round_up(m, LANE)
    fused_need = (2 * (k_pad * m128 * 2 + cout * m128 * 2)   # patches + out (2x buffered)
                  + cout * k_pad * 2 + cout * m128 * 4)      # weights + f32 y temp
    if m128 <= TM_MAX and fused_need <= VMEM_BUDGET:
        return m128, m128, True
    tm = TM_MAX
    while tm > LANE:
        need = (2 * (k_pad * tm * 2) + 2 * (cout * tm * 2)
                + cout * k_pad * 2 + 2 * cout * tm * 4)
        if need <= VMEM_BUDGET:
            break
        tm //= 2
    return tm, _round_up(m, tm), False


def conv_bn_lrelu(x_cnhw, w, gamma, beta):
    """Fused Conv5x5(s2,p2) + BatchNorm(training stats) + LeakyReLU.

    x_cnhw: [Cin, N, H, W] bf16 channel-major;  w: [Cout, Cin, 5, 5];  gamma/beta: [Cout]
    returns [Cout, N, Ho, Wo] bf16.  (Conv bias is dropped: exact under train-mode BN.)
    """
    cin, n, _, _ = x_cnhw.shape
    cout, _, kh, kw = w.shape
    stride, pad = 2, 2

    # TODO(synk): gather the 25 taps inside the kernel (phase-split padded input resident
    # in VMEM) instead of materializing the transposed im2col matrix in HBM; at large M
    # that round-trip is still the dominant HBM cost.
    patches_t, ho, wo = _im2col_t(x_cnhw, kh, kw, stride, pad)
    m = n * ho * wo
    k = kh * kw * cin

    # K padded only to bf16 sublane granularity (16), not 128 -> less patch HBM traffic.
    k_pad = _round_up(k, SUBLANE_BF16)
    w_mat = w.transpose(0, 2, 3, 1).reshape(cout, k)            # K order (kh, kw, cin)
    w_mat = jnp.pad(w_mat, ((0, 0), (0, k_pad - k))).astype(jnp.bfloat16)
    patches_t = jnp.pad(patches_t, ((0, k_pad - k), (0, 0))).astype(jnp.bfloat16)

    tm, m_pad, fused = _plan_tiles(m, k_pad, cout)
    if m_pad != m:
        patches_t = jnp.pad(patches_t, ((0, 0), (0, m_pad - m)))

    g2 = gamma.reshape(cout, 1).astype(jnp.float32)
    be2 = beta.reshape(cout, 1).astype(jnp.float32)

    if fused:
        # Single launch: GEMM + batch stats + normalize + LeakyReLU, everything in VMEM.
        out_t = pl.pallas_call(
            functools.partial(_conv_fused_kernel, m_valid=float(m)),
            out_shape=jax.ShapeDtypeStruct((cout, m_pad), jnp.bfloat16),
            grid=(1,),
            in_specs=[pl.BlockSpec((cout, k_pad), lambda i: (0, 0)),
                      pl.BlockSpec((k_pad, m_pad), lambda i: (0, 0)),
                      pl.BlockSpec((cout, 1), lambda i: (0, 0)),
                      pl.BlockSpec((cout, 1), lambda i: (0, 0))],
            out_specs=pl.BlockSpec((cout, m_pad), lambda i: (0, 0)),
            compiler_params=pltpu.CompilerParams(
                dimension_semantics=("arbitrary",),
                vmem_limit_bytes=VMEM_LIMIT),
        )(w_mat, patches_t, g2, be2)
        return out_t[:, :m].reshape(cout, n, ho, wo)

    # ---- tiled path (large M) ----
    n_tiles = m_pad // tm

    # Pass 1: pipelined GEMM over M tiles; per-tile partial sum/ssq outputs keep the grid
    # axis "parallel" (megacore sharding on v7x) instead of a resident accumulator.
    y_t, psum, pssq = pl.pallas_call(
        _conv_pass1_kernel,
        out_shape=(jax.ShapeDtypeStruct((cout, m_pad), jnp.bfloat16),
                   jax.ShapeDtypeStruct((n_tiles, cout, 1), jnp.float32),
                   jax.ShapeDtypeStruct((n_tiles, cout, 1), jnp.float32)),
        grid=(n_tiles,),
        in_specs=[pl.BlockSpec((cout, k_pad), lambda i: (0, 0)),    # weights (resident)
                  pl.BlockSpec((k_pad, tm), lambda i: (0, i))],     # patch tile
        out_specs=(pl.BlockSpec((cout, tm), lambda i: (0, i)),      # bf16 pre-BN activations
                   pl.BlockSpec((1, cout, 1), lambda i: (i, 0, 0)),  # partial sum
                   pl.BlockSpec((1, cout, 1), lambda i: (i, 0, 0))),  # partial sumsq
        compiler_params=pltpu.CompilerParams(
            dimension_semantics=("parallel",),
            vmem_limit_bytes=VMEM_LIMIT),
        cost_estimate=pl.CostEstimate(
            flops=2 * cout * k_pad * m_pad,
            transcendentals=0,
            bytes_accessed=2 * k_pad * m_pad + 2 * cout * k_pad + 2 * cout * m_pad),
    )(w_mat, patches_t)

    # Tiny per-channel reduction + scale/shift precompute ([cout]-sized XLA glue).
    # Note: E[x^2]-E[x]^2 in f32; acceptable here since the (bias-free) conv outputs are
    # zero-ish mean, but a centered second pass would be safer for very large |mean|/std.
    inv_m = 1.0 / m
    mean = jnp.sum(psum[:, :, 0], axis=0) * inv_m
    var = jnp.maximum(jnp.sum(pssq[:, :, 0], axis=0) * inv_m - mean * mean, 0.0)
    scale = gamma.astype(jnp.float32) * jax.lax.rsqrt(var + EPS)
    shift = beta.astype(jnp.float32) - mean * scale
    scale = scale.reshape(cout, 1)
    shift = shift.reshape(cout, 1)

    # Pass 2: fused multiply-add + LeakyReLU with precomputed per-channel scale/shift.
    out_t = pl.pallas_call(
        _conv_pass2_kernel,
        out_shape=jax.ShapeDtypeStruct((cout, m_pad), jnp.bfloat16),
        grid=(n_tiles,),
        in_specs=[pl.BlockSpec((cout, tm), lambda i: (0, i)),
                  pl.BlockSpec((cout, 1), lambda i: (0, 0)),
                  pl.BlockSpec((cout, 1), lambda i: (0, 0))],
        out_specs=pl.BlockSpec((cout, tm), lambda i: (0, i)),
        compiler_params=pltpu.CompilerParams(
            dimension_semantics=("parallel",),
            vmem_limit_bytes=VMEM_LIMIT),
    )(y_t, scale, shift)

    return out_t[:, :m].reshape(cout, n, ho, wo)


def head(x_t, w6, b6, w7, b7):
    """x_t: [hid, N] (feature order = torch NCHW flatten); returns [N, F0] f32."""
    hid, n = x_t.shape
    f4 = w6.shape[0]
    f0 = w7.shape[0]
    out_t = pl.pallas_call(
        _head_kernel,
        out_shape=jax.ShapeDtypeStruct((f0, n), jnp.float32),
        grid=(1,),
        in_specs=[pl.BlockSpec((hid, n), lambda i: (0, 0)),
                  pl.BlockSpec((f4, hid), lambda i: (0, 0)),
                  pl.BlockSpec((f4, 1), lambda i: (0, 0)),
                  pl.BlockSpec((f0, f4), lambda i: (0, 0)),
                  pl.BlockSpec((f0, 1), lambda i: (0, 0))],
        out_specs=pl.BlockSpec((f0, n), lambda i: (0, 0)),
        compiler_params=pltpu.CompilerParams(
            dimension_semantics=("arbitrary",),
            vmem_limit_bytes=VMEM_LIMIT),
    )(x_t.astype(jnp.bfloat16), w6.astype(jnp.bfloat16),
      b6.reshape(f4, 1).astype(jnp.float32), w7.astype(jnp.bfloat16),
      b7.reshape(f0, 1).astype(jnp.float32))
    return out_t.T


def discriminator_forward(params, x):
    # Public input is NCHW [N, C, H, W] like PyTorch.  Internally we keep activations
    # channel-major [C, N, H, W] so every conv kernel writes a lane-dense [Cout, M]
    # block and no inter-layer transposes are needed.
    img = jnp.transpose(x, (1, 0, 2, 3)).astype(jnp.bfloat16)
    for layer in range(1, 6):
        w, _b, g, be = params[f"conv{layer}"]   # conv bias is a no-op under train-mode BN
        img = conv_bn_lrelu(img, w, g, be)
    c5, n, h5, w5 = img.shape
    # nn.Flatten on NCHW -> feature index (c, h, w); keep it transposed [hid, N].
    x_t = jnp.transpose(img, (0, 2, 3, 1)).reshape(c5 * h5 * w5, n)
    w6, b6 = params["lin6"]
    w7, b7 = params["lin7"]
    return head(x_t, w6, b6, w7, b7)


def init_params(filters, image_x_dim, image_y_dim, key):
    hid_dim = int(image_x_dim * image_y_dim * filters[4] / (32 * 32))
    chans = [filters[0], filters[1], filters[2], filters[3], filters[4], filters[4]]
    keys = jax.random.split(key, 14)
    params = {}
    ki = 0
    for layer in range(5):
        cin, cout = chans[layer], chans[layer + 1]
        w = 0.05 * jax.random.normal(keys[ki], (cout, cin, 5, 5), jnp.float32); ki += 1
        b = 0.05 * jax.random.normal(keys[ki], (cout,), jnp.float32); ki += 1
        g = jnp.ones((cout,), jnp.float32)      # BatchNorm weight
        be = jnp.zeros((cout,), jnp.float32)    # BatchNorm bias
        params[f"conv{layer + 1}"] = (w, b, g, be)
    w6 = 0.05 * jax.random.normal(keys[ki], (filters[4], hid_dim), jnp.float32); ki += 1
    b6 = 0.05 * jax.random.normal(keys[ki], (filters[4],), jnp.float32); ki += 1
    w7 = 0.05 * jax.random.normal(keys[ki], (filters[0], filters[4]), jnp.float32); ki += 1
    b7 = 0.05 * jax.random.normal(keys[ki], (filters[0],), jnp.float32); ki += 1
    params["lin6"] = (w6, b6)
    params["lin7"] = (w7, b7)
    return params, hid_dim


if __name__ == "__main__":
    # 5 stride-2 convs need spatial divisible by 32; batch=4 at 64x64 makes layer 1 take
    # the tiled (multi-launch) path while layers 2-5 take the fused single-launch path,
    # so both code paths are exercised.
    filters = [3, 8, 16, 16, 32]
    image_x_dim = image_y_dim = 64
    batch = 4

    key = jax.random.PRNGKey(0)
    pkey, xkey = jax.random.split(key)
    params, hid_dim = init_params(filters, image_x_dim, image_y_dim, pkey)

    x = jax.random.normal(xkey, (batch, filters[0], image_x_dim, image_y_dim), jnp.float32)

    pred = jax.jit(discriminator_forward)(params, x)
    pred = jax.block_until_ready(pred)

    assert pred.shape == (batch, filters[0]), pred.shape
    assert bool(jnp.all(jnp.isfinite(pred)))
    assert bool(jnp.all((pred >= 0.0) & (pred <= 1.0)))  # sigmoid range
    print("KERNEL_OK")
</pallas_src>

<mosaic_0001>
module attributes {stable_mosaic.version = 11 : i64} {
  func.func @_conv_pass1_kernel(%arg0: i32, %arg1: memref<8x80xbf16, #tpu.memory_space<vmem>>, %arg2: memref<80x2048xbf16, #tpu.memory_space<vmem>>, %arg3: memref<8x2048xbf16, #tpu.memory_space<vmem>>, %arg4: memref<1x8x1xf32, #tpu.memory_space<vmem>>, %arg5: memref<1x8x1xf32, #tpu.memory_space<vmem>>) attributes {dimension_semantics = [#tpu.dimension_semantics<parallel>], iteration_bounds = array<i64: 2>, scalar_prefetch = 0 : i64, scratch_operands = 0 : i64, tpu.core_type = #tpu.core_type<tc>, window_params = [{pipeline_mode = #tpu.pipeline_mode<synchronous>, transform_indices = @transform_0, window_bounds = array<i64: 8, 80>}, {transform_indices = @transform_1, window_bounds = array<i64: 80, 2048>}, {transform_indices = @transform_2, window_bounds = array<i64: 8, 2048>}, {transform_indices = @transform_3, window_bounds = array<i64: 1, 8, 1>}, {transform_indices = @transform_4, window_bounds = array<i64: 1, 8, 1>}]} {
    %c0 = arith.constant 0 : index
    %c0_0 = arith.constant 0 : index
    %0 = vector.load %arg1[%c0, %c0_0] : memref<8x80xbf16, #tpu.memory_space<vmem>>, vector<8x80xbf16>
    %c0_1 = arith.constant 0 : index
    %c0_2 = arith.constant 0 : index
    %1 = vector.load %arg2[%c0_1, %c0_2] : memref<80x2048xbf16, #tpu.memory_space<vmem>>, vector<80x2048xbf16>
    %cst = arith.constant dense<0.000000e+00> : vector<8x2048xf32>
    %2 = tpu.matmul %0, %1, %cst {dimension_numbers = #tpu.dot_dimension_numbers<[1], [0], [0], [1], [0, 0, 1, 1], [], []>} : vector<8x80xbf16>, vector<80x2048xbf16>, vector<8x2048xf32> -> vector<8x2048xf32>
    %3 = arith.truncf %2 : vector<8x2048xf32> to vector<8x2048xbf16>
    %c0_3 = arith.constant 0 : index
    %c0_4 = arith.constant 0 : index
    %4 = vector.load %arg3[%c0_3, %c0_4] : memref<8x2048xbf16, #tpu.memory_space<vmem>>, vector<8x2048xbf16>
    tpu.vector_store %arg3[%c0_3, %c0_4], %3 {strides = array<i32>} : memref<8x2048xbf16, #tpu.memory_space<vmem>>, vector<8x2048xbf16>,
    %cst_5 = arith.constant 1.000000e+00 : f32
    %5 = vector.broadcast %cst_5 : f32 to vector<2048x1xf32>
    %cst_6 = arith.constant dense<0.000000e+00> : vector<8x1xf32>
    %6 = tpu.matmul %2, %5, %cst_6 {dimension_numbers = #tpu.dot_dimension_numbers<[1], [0], [0], [1], [0, 0, 1, 1], [], []>} : vector<8x2048xf32>, vector<2048x1xf32>, vector<8x1xf32> -> vector<8x1xf32>
    %c0_7 = arith.constant 0 : index
    %c0_8 = arith.constant 0 : index
    %c0_9 = arith.constant 0 : index
    %7 = vector.load %arg4[%c0_7, %c0_8, %c0_9] : memref<1x8x1xf32, #tpu.memory_space<vmem>>, vector<1x8x1xf32>
    %8 = vector.shape_cast %7 : vector<1x8x1xf32> to vector<8x1xf32>
    %9 = vector.shape_cast %6 : vector<8x1xf32> to vector<1x8x1xf32>
    tpu.vector_store %arg4[%c0_7, %c0_8, %c0_9], %9 {strides = array<i32>} : memref<1x8x1xf32, #tpu.memory_space<vmem>>, vector<1x8x1xf32>,
    %10 = arith.mulf %2, %2 : vector<8x2048xf32>
    %cst_10 = arith.constant dense<0.000000e+00> : vector<8x1xf32>
    %11 = tpu.matmul %10, %5, %cst_10 {dimension_numbers = #tpu.dot_dimension_numbers<[1], [0], [0], [1], [0, 0, 1, 1], [], []>} : vector<8x2048xf32>, vector<2048x1xf32>, vector<8x1xf32> -> vector<8x1xf32>
    %c0_11 = arith.constant 0 : index
    %c0_12 = arith.constant 0 : index
    %c0_13 = arith.constant 0 : index
    %12 = vector.load %arg5[%c0_11, %c0_12, %c0_13] : memref<1x8x1xf32, #tpu.memory_space<vmem>>, vector<1x8x1xf32>
    %13 = vector.shape_cast %12 : vector<1x8x1xf32> to vector<8x1xf32>
    %14 = vector.shape_cast %11 : vector<8x1xf32> to vector<1x8x1xf32>
    tpu.vector_store %arg5[%c0_11, %c0_12, %c0_13], %14 {strides = array<i32>} : memref<1x8x1xf32, #tpu.memory_space<vmem>>, vector<1x8x1xf32>,
    return
  }
  func.func @transform_0(%arg0: i32) -> (i32, i32) {
    %c0_i32 = arith.constant 0 : i32
    %c0_i32_0 = arith.constant 0 : i32
    %c0_i32_1 = arith.constant 0 : i32
    return %c0_i32, %c0_i32_0 : i32, i32
  }
  func.func @transform_1(%arg0: i32) -> (i32, i32) {
    %c0_i32 = arith.constant 0 : i32
    %c0_i32_0 = arith.constant 0 : i32
    return %c0_i32, %arg0 : i32, i32
  }
  func.func @transform_2(%arg0: i32) -> (i32, i32) {
    %c0_i32 = arith.constant 0 : i32
    %c0_i32_0 = arith.constant 0 : i32
    return %c0_i32, %arg0 : i32, i32
  }
  func.func @transform_3(%arg0: i32) -> (i32, i32, i32) {
    %c0_i32 = arith.constant 0 : i32
    %c0_i32_0 = arith.constant 0 : i32
    %c0_i32_1 = arith.constant 0 : i32
    return %arg0, %c0_i32, %c0_i32_0 : i32, i32, i32
  }
  func.func @transform_4(%arg0: i32) -> (i32, i32, i32) {
    %c0_i32 = arith.constant 0 : i32
    %c0_i32_0 = arith.constant 0 : i32
    %c0_i32_1 = arith.constant 0 : i32
    return %arg0, %c0_i32, %c0_i32_0 : i32, i32, i32
  }
}

module attributes {stable_mosaic.version = 11 : i64} {
  func.func @_conv_pass2_kernel(%arg0: i32, %arg1: memref<8x2048xbf16, #tpu.memory_space<vmem>>, %arg2: memref<8x1xf32, #tpu.memory_space<vmem>>, %arg3: memref<8x1xf32, #tpu.memory_space<vmem>>, %arg4: memref<8x2048xbf16, #tpu.memory_space<vmem>>) attributes {dimension_semantics = [#tpu.dimension_semantics<parallel>], iteration_bounds = array<i64: 2>, scalar_prefetch = 0 : i64, scratch_operands = 0 : i64, tpu.core_type = #tpu.core_type<tc>, window_params = [{transform_indices = @transform_0, window_bounds = array<i64: 8, 2048>}, {pipeline_mode = #tpu.pipeline_mode<synchronous>, transform_indices = @transform_1, window_bounds = array<i64: 8, 1>}, {pipeline_mode = #tpu.pipeline_mode<synchronous>, transform_indices = @transform_2, window_bounds = array<i64: 8, 1>}, {transform_indices = @transform_3, window_bounds = array<i64: 8, 2048>}]} {
    %c0 = arith.constant 0 : index
    %c0_0 = arith.constant 0 : index
    %0 = vector.load %arg1[%c0, %c0_0] : memref<8x2048xbf16, #tpu.memory_space<vmem>>, vector<8x2048xbf16>
    %1 = arith.extf %0 : vector<8x2048xbf16> to vector<8x2048xf32>
    %c0_1 = arith.constant 0 : index
    %c0_2 = arith.constant 0 : index
    %2 = vector.load %arg2[%c0_1, %c0_2] : memref<8x1xf32, #tpu.memory_space<vmem>>, vector<8x1xf32>
    %3 = vector.broadcast %2 : vector<8x1xf32> to vector<8x2048xf32>
    %4 = arith.mulf %1, %3 : vector<8x2048xf32>
    %c0_3 = arith.constant 0 : index
    %c0_4 = arith.constant 0 : index
    %5 = vector.load %arg3[%c0_3, %c0_4] : memref<8x1xf32, #tpu.memory_space<vmem>>, vector<8x1xf32>
    %6 = vector.broadcast %5 : vector<8x1xf32> to vector<8x2048xf32>
    %7 = arith.addf %4, %6 : vector<8x2048xf32>
    %cst = arith.constant 0.000000e+00 : f32
    %8 = vector.broadcast %cst : f32 to vector<8x2048xf32>
    %9 = arith.cmpf oge, %7, %8 : vector<8x2048xf32>
    %cst_5 = arith.constant 2.000000e-01 : f32
    %10 = vector.broadcast %cst_5 : f32 to vector<8x2048xf32>
    %11 = arith.mulf %10, %7 : vector<8x2048xf32>
    %12 = arith.select %9, %7, %11 : vector<8x2048xi1>, vector<8x2048xf32>
    %13 = arith.truncf %12 : vector<8x2048xf32> to vector<8x2048xbf16>
    %c0_6 = arith.constant 0 : index
    %c0_7 = arith.constant 0 : index
    %14 = vector.load %arg4[%c0_6, %c0_7] : memref<8x2048xbf16, #tpu.memory_space<vmem>>, vector<8x2048xbf16>
    tpu.vector_store %arg4[%c0_6, %c0_7], %13 {strides = array<i32>} : memref<8x2048xbf16, #tpu.memory_space<vmem>>, vector<8x2048xbf16>,
    return
  }
  func.func @transform_0(%arg0: i32) -> (i32, i32) {
    %c0_i32 = arith.constant 0 : i32
    %c0_i32_0 = arith.constant 0 : i32
    return %c0_i32, %arg0 : i32, i32
  }
  func.func @transform_1(%arg0: i32) -> (i32, i32) {
    %c0_i32 = arith.constant 0 : i32
    %c0_i32_0 = arith.constant 0 : i32
    %c0_i32_1 = arith.constant 0 : i32
    return %c0_i32, %c0_i32_0 : i32, i32
  }
  func.func @transform_2(%arg0: i32) -> (i32, i32) {
    %c0_i32 = arith.constant 0 : i32
    %c0_i32_0 = arith.constant 0 : i32
    %c0_i32_1 = arith.constant 0 : i32
    return %c0_i32, %c0_i32_0 : i32, i32
  }
  func.func @transform_3(%arg0: i32) -> (i32, i32) {
    %c0_i32 = arith.constant 0 : i32
    %c0_i32_0 = arith.constant 0 : i32
    return %c0_i32, %arg0 : i32, i32
  }
}

module attributes {stable_mosaic.version = 11 : i64} {
  func.func @_conv_fused_kernel(%arg0: i32, %arg1: memref<16x208xbf16, #tpu.memory_space<vmem>>, %arg2: memref<208x1024xbf16, #tpu.memory_space<vmem>>, %arg3: memref<16x1xf32, #tpu.memory_space<vmem>>, %arg4: memref<16x1xf32, #tpu.memory_space<vmem>>, %arg5: memref<16x1024xbf16, #tpu.memory_space<vmem>>) attributes {dimension_semantics = [#tpu.dimension_semantics<arbitrary>], iteration_bounds = array<i64: 1>, scalar_prefetch = 0 : i64, scratch_operands = 0 : i64, tpu.core_type = #tpu.core_type<tc>, window_params = [{pipeline_mode = #tpu.pipeline_mode<synchronous>, transform_indices = @transform_0, window_bounds = array<i64: 16, 208>}, {pipeline_mode = #tpu.pipeline_mode<synchronous>, transform_indices = @transform_1, window_bounds = array<i64: 208, 1024>}, {pipeline_mode = #tpu.pipeline_mode<synchronous>, transform_indices = @transform_2, window_bounds = array<i64: 16, 1>}, {pipeline_mode = #tpu.pipeline_mode<synchronous>, transform_indices = @transform_3, window_bounds = array<i64: 16, 1>}, {pipeline_mode = #tpu.pipeline_mode<synchronous>, transform_indices = @transform_4, window_bounds = array<i64: 16, 1024>}]} {
    %c0 = arith.constant 0 : index
    %c0_0 = arith.constant 0 : index
    %0 = vector.load %arg1[%c0, %c0_0] : memref<16x208xbf16, #tpu.memory_space<vmem>>, vector<16x208xbf16>
    %c0_1 = arith.constant 0 : index
    %c0_2 = arith.constant 0 : index
    %1 = vector.load %arg2[%c0_1, %c0_2] : memref<208x1024xbf16, #tpu.memory_space<vmem>>, vector<208x1024xbf16>
    %cst = arith.constant dense<0.000000e+00> : vector<16x1024xf32>
    %2 = tpu.matmul %0, %1, %cst {dimension_numbers = #tpu.dot_dimension_numbers<[1], [0], [0], [1], [0, 0, 1, 1], [], []>} : vector<16x208xbf16>, vector<208x1024xbf16>, vector<16x1024xf32> -> vector<16x1024xf32>
    %cst_3 = arith.constant dense<0.000000e+00> : vector<16xf32>
    %3 = vector.multi_reduction <add>, %2, %cst_3 [1] : vector<16x1024xf32> to vector<16xf32>
    %4 = vector.shape_cast %3 : vector<16xf32> to vector<16x1xf32>
    %cst_4 = arith.constant 9.765625E-4 : f32
    %5 = vector.broadcast %cst_4 : f32 to vector<16x1xf32>
    %6 = arith.mulf %4, %5 : vector<16x1xf32>
    %7 = arith.mulf %2, %2 : vector<16x1024xf32>
    %cst_5 = arith.constant dense<0.000000e+00> : vector<16xf32>
    %8 = vector.multi_reduction <add>, %7, %cst_5 [1] : vector<16x1024xf32> to vector<16xf32>
    %9 = vector.shape_cast %8 : vector<16xf32> to vector<16x1xf32>
    %cst_6 = arith.constant 9.765625E-4 : f32
    %10 = vector.broadcast %cst_6 : f32 to vector<16x1xf32>
    %11 = arith.mulf %9, %10 : vector<16x1xf32>
    %12 = arith.mulf %6, %6 : vector<16x1xf32>
    %13 = arith.subf %11, %12 : vector<16x1xf32>
    %cst_7 = arith.constant 0.000000e+00 : f32
    %14 = vector.broadcast %cst_7 : f32 to vector<16x1xf32>
    %15 = arith.maximumf %13, %14 : vector<16x1xf32>
    %c0_8 = arith.constant 0 : index
    %c0_9 = arith.constant 0 : index
    %16 = vector.load %arg3[%c0_8, %c0_9] : memref<16x1xf32, #tpu.memory_space<vmem>>, vector<16x1xf32>
    %cst_10 = arith.constant 9.99999974E-6 : f32
    %17 = vector.broadcast %cst_10 : f32 to vector<16x1xf32>
    %18 = arith.addf %15, %17 : vector<16x1xf32>
    %19 = math.rsqrt %18 : vector<16x1xf32>
    %20 = arith.mulf %16, %19 : vector<16x1xf32>
    %c0_11 = arith.constant 0 : index
    %c0_12 = arith.constant 0 : index
    %21 = vector.load %arg4[%c0_11, %c0_12] : memref<16x1xf32, #tpu.memory_space<vmem>>, vector<16x1xf32>
    %22 = arith.mulf %6, %20 : vector<16x1xf32>
    %23 = arith.subf %21, %22 : vector<16x1xf32>
    %24 = vector.broadcast %20 : vector<16x1xf32> to vector<16x1024xf32>
    %25 = arith.mulf %2, %24 : vector<16x1024xf32>
    %26 = vector.broadcast %23 : vector<16x1xf32> to vector<16x1024xf32>
    %27 = arith.addf %25, %26 : vector<16x1024xf32>
    %cst_13 = arith.constant 0.000000e+00 : f32
    %28 = vector.broadcast %cst_13 : f32 to vector<16x1024xf32>
    %29 = arith.cmpf oge, %27, %28 : vector<16x1024xf32>
    %cst_14 = arith.constant 2.000000e-01 : f32
    %30 = vector.broadcast %cst_14 : f32 to vector<16x1024xf32>
    %31 = arith.mulf %30, %27 : vector<16x1024xf32>
    %32 = arith.select %29, %27, %31 : vector<16x1024xi1>, vector<16x1024xf32>
    %33 = arith.truncf %32 : vector<16x1024xf32> to vector<16x1024xbf16>
    %c0_15 = arith.constant 0 : index
    %c0_16 = arith.constant 0 : index
    %34 = vector.load %arg5[%c0_15, %c0_16] : memref<16x1024xbf16, #tpu.memory_space<vmem>>, vector<16x1024xbf16>
    tpu.vector_store %arg5[%c0_15, %c0_16], %33 {strides = array<i32>} : memref<16x1024xbf16, #tpu.memory_space<vmem>>, vector<16x1024xbf16>,
    return
  }
  func.func @transform_0(%arg0: i32) -> (i32, i32) {
    %c0_i32 = arith.constant 0 : i32
    %c0_i32_0 = arith.constant 0 : i32
    %c0_i32_1 = arith.constant 0 : i32
    return %c0_i32, %c0_i32_0 : i32, i32
  }
  func.func @transform_1(%arg0: i32) -> (i32, i32) {
    %c0_i32 = arith.constant 0 : i32
    %c0_i32_0 = arith.constant 0 : i32
    %c0_i32_1 = arith.constant 0 : i32
    return %c0_i32, %c0_i32_0 : i32, i32
  }
  func.func @transform_2(%arg0: i32) -> (i32, i32) {
    %c0_i32 = arith.constant 0 : i32
    %c0_i32_0 = arith.constant 0 : i32
    %c0_i32_1 = arith.constant 0 : i32
    return %c0_i32, %c0_i32_0 : i32, i32
  }
  func.func @transform_3(%arg0: i32) -> (i32, i32) {
    %c0_i32 = arith.constant 0 : i32
    %c0_i32_0 = arith.constant 0 : i32
    %c0_i32_1 = arith.constant 0 : i32
    return %c0_i32, %c0_i32_0 : i32, i32
  }
  func.func @transform_4(%arg0: i32) -> (i32, i32) {
    %c0_i32 = arith.constant 0 : i32
    %c0_i32_0 = arith.constant 0 : i32
    %c0_i32_1 = arith.constant 0 : i32
    return %c0_i32, %c0_i32_0 : i32, i32
  }
}

module attributes {stable_mosaic.version = 11 : i64} {
  func.func @_conv_fused_kernel(%arg0: i32, %arg1: memref<16x400xbf16, #tpu.memory_space<vmem>>, %arg2: memref<400x256xbf16, #tpu.memory_space<vmem>>, %arg3: memref<16x1xf32, #tpu.memory_space<vmem>>, %arg4: memref<16x1xf32, #tpu.memory_space<vmem>>, %arg5: memref<16x256xbf16, #tpu.memory_space<vmem>>) attributes {dimension_semantics = [#tpu.dimension_semantics<arbitrary>], iteration_bounds = array<i64: 1>, scalar_prefetch = 0 : i64, scratch_operands = 0 : i64, tpu.core_type = #tpu.core_type<tc>, window_params = [{pipeline_mode = #tpu.pipeline_mode<synchronous>, transform_indices = @transform_0, window_bounds = array<i64: 16, 400>}, {pipeline_mode = #tpu.pipeline_mode<synchronous>, transform_indices = @transform_1, window_bounds = array<i64: 400, 256>}, {pipeline_mode = #tpu.pipeline_mode<synchronous>, transform_indices = @transform_2, window_bounds = array<i64: 16, 1>}, {pipeline_mode = #tpu.pipeline_mode<synchronous>, transform_indices = @transform_3, window_bounds = array<i64: 16, 1>}, {pipeline_mode = #tpu.pipeline_mode<synchronous>, transform_indices = @transform_4, window_bounds = array<i64: 16, 256>}]} {
    %c0 = arith.constant 0 : index
    %c0_0 = arith.constant 0 : index
    %0 = vector.load %arg1[%c0, %c0_0] : memref<16x400xbf16, #tpu.memory_space<vmem>>, vector<16x400xbf16>
    %c0_1 = arith.constant 0 : index
    %c0_2 = arith.constant 0 : index
    %1 = vector.load %arg2[%c0_1, %c0_2] : memref<400x256xbf16, #tpu.memory_space<vmem>>, vector<400x256xbf16>
    %cst = arith.constant dense<0.000000e+00> : vector<16x256xf32>
    %2 = tpu.matmul %0, %1, %cst {dimension_numbers = #tpu.dot_dimension_numbers<[1], [0], [0], [1], [0, 0, 1, 1], [], []>} : vector<16x400xbf16>, vector<400x256xbf16>, vector<16x256xf32> -> vector<16x256xf32>
    %cst_3 = arith.constant dense<0.000000e+00> : vector<16xf32>
    %3 = vector.multi_reduction <add>, %2, %cst_3 [1] : vector<16x256xf32> to vector<16xf32>
    %4 = vector.shape_cast %3 : vector<16xf32> to vector<16x1xf32>
    %cst_4 = arith.constant 3.906250e-03 : f32
    %5 = vector.broadcast %cst_4 : f32 to vector<16x1xf32>
    %6 = arith.mulf %4, %5 : vector<16x1xf32>
    %7 = arith.mulf %2, %2 : vector<16x256xf32>
    %cst_5 = arith.constant dense<0.000000e+00> : vector<16xf32>
    %8 = vector.multi_reduction <add>, %7, %cst_5 [1] : vector<16x256xf32> to vector<16xf32>
    %9 = vector.shape_cast %8 : vector<16xf32> to vector<16x1xf32>
    %cst_6 = arith.constant 3.906250e-03 : f32
    %10 = vector.broadcast %cst_6 : f32 to vector<16x1xf32>
    %11 = arith.mulf %9, %10 : vector<16x1xf32>
    %12 = arith.mulf %6, %6 : vector<16x1xf32>
    %13 = arith.subf %11, %12 : vector<16x1xf32>
    %cst_7 = arith.constant 0.000000e+00 : f32
    %14 = vector.broadcast %cst_7 : f32 to vector<16x1xf32>
    %15 = arith.maximumf %13, %14 : vector<16x1xf32>
    %c0_8 = arith.constant 0 : index
    %c0_9 = arith.constant 0 : index
    %16 = vector.load %arg3[%c0_8, %c0_9] : memref<16x1xf32, #tpu.memory_space<vmem>>, vector<16x1xf32>
    %cst_10 = arith.constant 9.99999974E-6 : f32
    %17 = vector.broadcast %cst_10 : f32 to vector<16x1xf32>
    %18 = arith.addf %15, %17 : vector<16x1xf32>
    %19 = math.rsqrt %18 : vector<16x1xf32>
    %20 = arith.mulf %16, %19 : vector<16x1xf32>
    %c0_11 = arith.constant 0 : index
    %c0_12 = arith.constant 0 : index
    %21 = vector.load %arg4[%c0_11, %c0_12] : memref<16x1xf32, #tpu.memory_space<vmem>>, vector<16x1xf32>
    %22 = arith.mulf %6, %20 : vector<16x1xf32>
    %23 = arith.subf %21, %22 : vector<16x1xf32>
    %24 = vector.broadcast %20 : vector<16x1xf32> to vector<16x256xf32>
    %25 = arith.mulf %2, %24 : vector<16x256xf32>
    %26 = vector.broadcast %23 : vector<16x1xf32> to vector<16x256xf32>
    %27 = arith.addf %25, %26 : vector<16x256xf32>
    %cst_13 = arith.constant 0.000000e+00 : f32
    %28 = vector.broadcast %cst_13 : f32 to vector<16x256xf32>
    %29 = arith.cmpf oge, %27, %28 : vector<16x256xf32>
    %cst_14 = arith.constant 2.000000e-01 : f32
    %30 = vector.broadcast %cst_14 : f32 to vector<16x256xf32>
    %31 = arith.mulf %30, %27 : vector<16x256xf32>
    %32 = arith.select %29, %27, %31 : vector<16x256xi1>, vector<16x256xf32>
    %33 = arith.truncf %32 : vector<16x256xf32> to vector<16x256xbf16>
    %c0_15 = arith.constant 0 : index
    %c0_16 = arith.constant 0 : index
    %34 = vector.load %arg5[%c0_15, %c0_16] : memref<16x256xbf16, #tpu.memory_space<vmem>>, vector<16x256xbf16>
    tpu.vector_store %arg5[%c0_15, %c0_16], %33 {strides = array<i32>} : memref<16x256xbf16, #tpu.memory_space<vmem>>, vector<16x256xbf16>,
    return
  }
  func.func @transform_0(%arg0: i32) -> (i32, i32) {
    %c0_i32 = arith.constant 0 : i32
    %c0_i32_0 = arith.constant 0 : i32
    %c0_i32_1 = arith.constant 0 : i32
    return %c0_i32, %c0_i32_0 : i32, i32
  }
  func.func @transform_1(%arg0: i32) -> (i32, i32) {
    %c0_i32 = arith.constant 0 : i32
    %c0_i32_0 = arith.constant 0 : i32
    %c0_i32_1 = arith.constant 0 : i32
    return %c0_i32, %c0_i32_0 : i32, i32
  }
  func.func @transform_2(%arg0: i32) -> (i32, i32) {
    %c0_i32 = arith.constant 0 : i32
    %c0_i32_0 = arith.constant 0 : i32
    %c0_i32_1 = arith.constant 0 : i32
    return %c0_i32, %c0_i32_0 : i32, i32
  }
  func.func @transform_3(%arg0: i32) -> (i32, i32) {
    %c0_i32 = arith.constant 0 : i32
    %c0_i32_0 = arith.constant 0 : i32
    %c0_i32_1 = arith.constant 0 : i32
    return %c0_i32, %c0_i32_0 : i32, i32
  }
  func.func @transform_4(%arg0: i32) -> (i32, i32) {
    %c0_i32 = arith.constant 0 : i32
    %c0_i32_0 = arith.constant 0 : i32
    %c0_i32_1 = arith.constant 0 : i32
    return %c0_i32, %c0_i32_0 : i32, i32
  }
}

module attributes {stable_mosaic.version = 11 : i64} {
  func.func @_conv_fused_kernel(%arg0: i32, %arg1: memref<32x400xbf16, #tpu.memory_space<vmem>>, %arg2: memref<400x128xbf16, #tpu.memory_space<vmem>>, %arg3: memref<32x1xf32, #tpu.memory_space<vmem>>, %arg4: memref<32x1xf32, #tpu.memory_space<vmem>>, %arg5: memref<32x128xbf16, #tpu.memory_space<vmem>>) attributes {dimension_semantics = [#tpu.dimension_semantics<arbitrary>], iteration_bounds = array<i64: 1>, scalar_prefetch = 0 : i64, scratch_operands = 0 : i64, tpu.core_type = #tpu.core_type<tc>, window_params = [{pipeline_mode = #tpu.pipeline_mode<synchronous>, transform_indices = @transform_0, window_bounds = array<i64: 32, 400>}, {pipeline_mode = #tpu.pipeline_mode<synchronous>, transform_indices = @transform_1, window_bounds = array<i64: 400, 128>}, {pipeline_mode = #tpu.pipeline_mode<synchronous>, transform_indices = @transform_2, window_bounds = array<i64: 32, 1>}, {pipeline_mode = #tpu.pipeline_mode<synchronous>, transform_indices = @transform_3, window_bounds = array<i64: 32, 1>}, {pipeline_mode = #tpu.pipeline_mode<synchronous>, transform_indices = @transform_4, window_bounds = array<i64: 32, 128>}]} {
    %c0 = arith.constant 0 : index
    %c0_0 = arith.constant 0 : index
    %0 = vector.load %arg1[%c0, %c0_0] : memref<32x400xbf16, #tpu.memory_space<vmem>>, vector<32x400xbf16>
    %c0_1 = arith.constant 0 : index
    %c0_2 = arith.constant 0 : index
    %1 = vector.load %arg2[%c0_1, %c0_2] : memref<400x128xbf16, #tpu.memory_space<vmem>>, vector<400x128xbf16>
    %cst = arith.constant dense<0.000000e+00> : vector<32x128xf32>
    %2 = tpu.matmul %0, %1, %cst {dimension_numbers = #tpu.dot_dimension_numbers<[1], [0], [0], [1], [0, 0, 1, 1], [], []>} : vector<32x400xbf16>, vector<400x128xbf16>, vector<32x128xf32> -> vector<32x128xf32>
    %cst_3 = arith.constant dense<0.000000e+00> : vector<32xf32>
    %3 = vector.multi_reduction <add>, %2, %cst_3 [1] : vector<32x128xf32> to vector<32xf32>
    %4 = vector.shape_cast %3 : vector<32xf32> to vector<32x1xf32>
    %cst_4 = arith.constant 1.562500e-02 : f32
    %5 = vector.broadcast %cst_4 : f32 to vector<32x1xf32>
    %6 = arith.mulf %4, %5 : vector<32x1xf32>
    %7 = arith.mulf %2, %2 : vector<32x128xf32>
    %cst_5 = arith.constant dense<0.000000e+00> : vector<32xf32>
    %8 = vector.multi_reduction <add>, %7, %cst_5 [1] : vector<32x128xf32> to vector<32xf32>
    %9 = vector.shape_cast %8 : vector<32xf32> to vector<32x1xf32>
    %cst_6 = arith.constant 1.562500e-02 : f32
    %10 = vector.broadcast %cst_6 : f32 to vector<32x1xf32>
    %11 = arith.mulf %9, %10 : vector<32x1xf32>
    %12 = arith.mulf %6, %6 : vector<32x1xf32>
    %13 = arith.subf %11, %12 : vector<32x1xf32>
    %cst_7 = arith.constant 0.000000e+00 : f32
    %14 = vector.broadcast %cst_7 : f32 to vector<32x1xf32>
    %15 = arith.maximumf %13, %14 : vector<32x1xf32>
    %c0_8 = arith.constant 0 : index
    %c0_9 = arith.constant 0 : index
    %16 = vector.load %arg3[%c0_8, %c0_9] : memref<32x1xf32, #tpu.memory_space<vmem>>, vector<32x1xf32>
    %cst_10 = arith.constant 9.99999974E-6 : f32
    %17 = vector.broadcast %cst_10 : f32 to vector<32x1xf32>
    %18 = arith.addf %15, %17 : vector<32x1xf32>
    %19 = math.rsqrt %18 : vector<32x1xf32>
    %20 = arith.mulf %16, %19 : vector<32x1xf32>
    %c0_11 = arith.constant 0 : index
    %c0_12 = arith.constant 0 : index
    %21 = vector.load %arg4[%c0_11, %c0_12] : memref<32x1xf32, #tpu.memory_space<vmem>>, vector<32x1xf32>
    %22 = arith.mulf %6, %20 : vector<32x1xf32>
    %23 = arith.subf %21, %22 : vector<32x1xf32>
    %24 = vector.broadcast %20 : vector<32x1xf32> to vector<32x128xf32>
    %25 = arith.mulf %2, %24 : vector<32x128xf32>
    %26 = vector.broadcast %23 : vector<32x1xf32> to vector<32x128xf32>
    %27 = arith.addf %25, %26 : vector<32x128xf32>
    %cst_13 = arith.constant 0.000000e+00 : f32
    %28 = vector.broadcast %cst_13 : f32 to vector<32x128xf32>
    %29 = arith.cmpf oge, %27, %28 : vector<32x128xf32>
    %cst_14 = arith.constant 2.000000e-01 : f32
    %30 = vector.broadcast %cst_14 : f32 to vector<32x128xf32>
    %31 = arith.mulf %30, %27 : vector<32x128xf32>
    %32 = arith.select %29, %27, %31 : vector<32x128xi1>, vector<32x128xf32>
    %33 = arith.truncf %32 : vector<32x128xf32> to vector<32x128xbf16>
    %c0_15 = arith.constant 0 : index
    %c0_16 = arith.constant 0 : index
    %34 = vector.load %arg5[%c0_15, %c0_16] : memref<32x128xbf16, #tpu.memory_space<vmem>>, vector<32x128xbf16>
    tpu.vector_store %arg5[%c0_15, %c0_16], %33 {strides = array<i32>} : memref<32x128xbf16, #tpu.memory_space<vmem>>, vector<32x128xbf16>,
    return
  }
  func.func @transform_0(%arg0: i32) -> (i32, i32) {
    %c0_i32 = arith.constant 0 : i32
    %c0_i32_0 = arith.constant 0 : i32
    %c0_i32_1 = arith.constant 0 : i32
    return %c0_i32, %c0_i32_0 : i32, i32
  }
  func.func @transform_1(%arg0: i32) -> (i32, i32) {
    %c0_i32 = arith.constant 0 : i32
    %c0_i32_0 = arith.constant 0 : i32
    %c0_i32_1 = arith.constant 0 : i32
    return %c0_i32, %c0_i32_0 : i32, i32
  }
  func.func @transform_2(%arg0: i32) -> (i32, i32) {
    %c0_i32 = arith.constant 0 : i32
    %c0_i32_0 = arith.constant 0 : i32
    %c0_i32_1 = arith.constant 0 : i32
    return %c0_i32, %c0_i32_0 : i32, i32
  }
  func.func @transform_3(%arg0: i32) -> (i32, i32) {
    %c0_i32 = arith.constant 0 : i32
    %c0_i32_0 = arith.constant 0 : i32
    %c0_i32_1 = arith.constant 0 : i32
    return %c0_i32, %c0_i32_0 : i32, i32
  }
  func.func @transform_4(%arg0: i32) -> (i32, i32) {
    %c0_i32 = arith.constant 0 : i32
    %c0_i32_0 = arith.constant 0 : i32
    %c0_i32_1 = arith.constant 0 : i32
    return %c0_i32, %c0_i32_0 : i32, i32
  }
}

module attributes {stable_mosaic.version = 11 : i64} {
  func.func @_conv_fused_kernel(%arg0: i32, %arg1: memref<32x800xbf16, #tpu.memory_space<vmem>>, %arg2: memref<800x128xbf16, #tpu.memory_space<vmem>>, %arg3: memref<32x1xf32, #tpu.memory_space<vmem>>, %arg4: memref<32x1xf32, #tpu.memory_space<vmem>>, %arg5: memref<32x128xbf16, #tpu.memory_space<vmem>>) attributes {dimension_semantics = [#tpu.dimension_semantics<arbitrary>], iteration_bounds = array<i64: 1>, scalar_prefetch = 0 : i64, scratch_operands = 0 : i64, tpu.core_type = #tpu.core_type<tc>, window_params = [{pipeline_mode = #tpu.pipeline_mode<synchronous>, transform_indices = @transform_0, window_bounds = array<i64: 32, 800>}, {pipeline_mode = #tpu.pipeline_mode<synchronous>, transform_indices = @transform_1, window_bounds = array<i64: 800, 128>}, {pipeline_mode = #tpu.pipeline_mode<synchronous>, transform_indices = @transform_2, window_bounds = array<i64: 32, 1>}, {pipeline_mode = #tpu.pipeline_mode<synchronous>, transform_indices = @transform_3, window_bounds = array<i64: 32, 1>}, {pipeline_mode = #tpu.pipeline_mode<synchronous>, transform_indices = @transform_4, window_bounds = array<i64: 32, 128>}]} {
    %c0 = arith.constant 0 : index
    %c0_0 = arith.constant 0 : index
    %0 = vector.load %arg1[%c0, %c0_0] : memref<32x800xbf16, #tpu.memory_space<vmem>>, vector<32x800xbf16>
    %c0_1 = arith.constant 0 : index
    %c0_2 = arith.constant 0 : index
    %1 = vector.load %arg2[%c0_1, %c0_2] : memref<800x128xbf16, #tpu.memory_space<vmem>>, vector<800x128xbf16>
    %cst = arith.constant dense<0.000000e+00> : vector<32x128xf32>
    %2 = tpu.matmul %0, %1, %cst {dimension_numbers = #tpu.dot_dimension_numbers<[1], [0], [0], [1], [0, 0, 1, 1], [], []>} : vector<32x800xbf16>, vector<800x128xbf16>, vector<32x128xf32> -> vector<32x128xf32>
    %cst_3 = arith.constant dense<0.000000e+00> : vector<32xf32>
    %3 = vector.multi_reduction <add>, %2, %cst_3 [1] : vector<32x128xf32> to vector<32xf32>
    %4 = vector.shape_cast %3 : vector<32xf32> to vector<32x1xf32>
    %cst_4 = arith.constant 6.250000e-02 : f32
    %5 = vector.broadcast %cst_4 : f32 to vector<32x1xf32>
    %6 = arith.mulf %4, %5 : vector<32x1xf32>
    %7 = arith.mulf %2, %2 : vector<32x128xf32>
    %cst_5 = arith.constant dense<0.000000e+00> : vector<32xf32>
    %8 = vector.multi_reduction <add>, %7, %cst_5 [1] : vector<32x128xf32> to vector<32xf32>
    %9 = vector.shape_cast %8 : vector<32xf32> to vector<32x1xf32>
    %cst_6 = arith.constant 6.250000e-02 : f32
    %10 = vector.broadcast %cst_6 : f32 to vector<32x1xf32>
    %11 = arith.mulf %9, %10 : vector<32x1xf32>
    %12 = arith.mulf %6, %6 : vector<32x1xf32>
    %13 = arith.subf %11, %12 : vector<32x1xf32>
    %cst_7 = arith.constant 0.000000e+00 : f32
    %14 = vector.broadcast %cst_7 : f32 to vector<32x1xf32>
    %15 = arith.maximumf %13, %14 : vector<32x1xf32>
    %c0_8 = arith.constant 0 : index
    %c0_9 = arith.constant 0 : index
    %16 = vector.load %arg3[%c0_8, %c0_9] : memref<32x1xf32, #tpu.memory_space<vmem>>, vector<32x1xf32>
    %cst_10 = arith.constant 9.99999974E-6 : f32
    %17 = vector.broadcast %cst_10 : f32 to vector<32x1xf32>
    %18 = arith.addf %15, %17 : vector<32x1xf32>
    %19 = math.rsqrt %18 : vector<32x1xf32>
    %20 = arith.mulf %16, %19 : vector<32x1xf32>
    %c0_11 = arith.constant 0 : index
    %c0_12 = arith.constant 0 : index
    %21 = vector.load %arg4[%c0_11, %c0_12] : memref<32x1xf32, #tpu.memory_space<vmem>>, vector<32x1xf32>
    %22 = arith.mulf %6, %20 : vector<32x1xf32>
    %23 = arith.subf %21, %22 : vector<32x1xf32>
    %24 = vector.broadcast %20 : vector<32x1xf32> to vector<32x128xf32>
    %25 = arith.mulf %2, %24 : vector<32x128xf32>
    %26 = vector.broadcast %23 : vector<32x1xf32> to vector<32x128xf32>
    %27 = arith.addf %25, %26 : vector<32x128xf32>
    %cst_13 = arith.constant 0.000000e+00 : f32
    %28 = vector.broadcast %cst_13 : f32 to vector<32x128xf32>
    %29 = arith.cmpf oge, %27, %28 : vector<32x128xf32>
    %cst_14 = arith.constant 2.000000e-01 : f32
    %30 = vector.broadcast %cst_14 : f32 to vector<32x128xf32>
    %31 = arith.mulf %30, %27 : vector<32x128xf32>
    %32 = arith.select %29, %27, %31 : vector<32x128xi1>, vector<32x128xf32>
    %33 = arith.truncf %32 : vector<32x128xf32> to vector<32x128xbf16>
    %c0_15 = arith.constant 0 : index
    %c0_16 = arith.constant 0 : index
    %34 = vector.load %arg5[%c0_15, %c0_16] : memref<32x128xbf16, #tpu.memory_space<vmem>>, vector<32x128xbf16>
    tpu.vector_store %arg5[%c0_15, %c0_16], %33 {strides = array<i32>} : memref<32x128xbf16, #tpu.memory_space<vmem>>, vector<32x128xbf16>,
    return
  }
  func.func @transform_0(%arg0: i32) -> (i32, i32) {
    %c0_i32 = arith.constant 0 : i32
    %c0_i32_0 = arith.constant 0 : i32
    %c0_i32_1 = arith.constant 0 : i32
    return %c0_i32, %c0_i32_0 : i32, i32
  }
  func.func @transform_1(%arg0: i32) -> (i32, i32) {
    %c0_i32 = arith.constant 0 : i32
    %c0_i32_0 = arith.constant 0 : i32
    %c0_i32_1 = arith.constant 0 : i32
    return %c0_i32, %c0_i32_0 : i32, i32
  }
  func.func @transform_2(%arg0: i32) -> (i32, i32) {
    %c0_i32 = arith.constant 0 : i32
    %c0_i32_0 = arith.constant 0 : i32
    %c0_i32_1 = arith.constant 0 : i32
    return %c0_i32, %c0_i32_0 : i32, i32
  }
  func.func @transform_3(%arg0: i32) -> (i32, i32) {
    %c0_i32 = arith.constant 0 : i32
    %c0_i32_0 = arith.constant 0 : i32
    %c0_i32_1 = arith.constant 0 : i32
    return %c0_i32, %c0_i32_0 : i32, i32
  }
  func.func @transform_4(%arg0: i32) -> (i32, i32) {
    %c0_i32 = arith.constant 0 : i32
    %c0_i32_0 = arith.constant 0 : i32
    %c0_i32_1 = arith.constant 0 : i32
    return %c0_i32, %c0_i32_0 : i32, i32
  }
}

module attributes {stable_mosaic.version = 11 : i64} {
  func.func @_head_kernel(%arg0: i32, %arg1: memref<128x4xbf16, #tpu.memory_space<vmem>>, %arg2: memref<32x128xbf16, #tpu.memory_space<vmem>>, %arg3: memref<32x1xf32, #tpu.memory_space<vmem>>, %arg4: memref<3x32xbf16, #tpu.memory_space<vmem>>, %arg5: memref<3x1xf32, #tpu.memory_space<vmem>>, %arg6: memref<3x4xf32, #tpu.memory_space<vmem>>) attributes {dimension_semantics = [#tpu.dimension_semantics<arbitrary>], iteration_bounds = array<i64: 1>, scalar_prefetch = 0 : i64, scratch_operands = 0 : i64, tpu.core_type = #tpu.core_type<tc>, window_params = [{pipeline_mode = #tpu.pipeline_mode<synchronous>, transform_indices = @transform_0, window_bounds = array<i64: 128, 4>}, {pipeline_mode = #tpu.pipeline_mode<synchronous>, transform_indices = @transform_1, window_bounds = array<i64: 32, 128>}, {pipeline_mode = #tpu.pipeline_mode<synchronous>, transform_indices = @transform_2, window_bounds = array<i64: 32, 1>}, {pipeline_mode = #tpu.pipeline_mode<synchronous>, transform_indices = @transform_3, window_bounds = array<i64: 3, 32>}, {pipeline_mode = #tpu.pipeline_mode<synchronous>, transform_indices = @transform_4, window_bounds = array<i64: 3, 1>}, {pipeline_mode = #tpu.pipeline_mode<synchronous>, transform_indices = @transform_5, window_bounds = array<i64: 3, 4>}]} {
    %c0 = arith.constant 0 : index
    %c0_0 = arith.constant 0 : index
    %0 = vector.load %arg2[%c0, %c0_0] : memref<32x128xbf16, #tpu.memory_space<vmem>>, vector<32x128xbf16>
    %c0_1 = arith.constant 0 : index
    %c0_2 = arith.constant 0 : index
    %1 = vector.load %arg1[%c0_1, %c0_2] : memref<128x4xbf16, #tpu.memory_space<vmem>>, vector<128x4xbf16>
    %cst = arith.constant dense<0.000000e+00> : vector<32x4xf32>
    %2 = tpu.matmul %0, %1, %cst {dimension_numbers = #tpu.dot_dimension_numbers<[1], [0], [0], [1], [0, 0, 1, 1], [], []>} : vector<32x128xbf16>, vector<128x4xbf16>, vector<32x4xf32> -> vector<32x4xf32>
    %c0_3 = arith.constant 0 : index
    %c0_4 = arith.constant 0 : index
    %3 = vector.load %arg3[%c0_3, %c0_4] : memref<32x1xf32, #tpu.memory_space<vmem>>, vector<32x1xf32>
    %4 = vector.broadcast %3 : vector<32x1xf32> to vector<32x4xf32>
    %5 = arith.addf %2, %4 : vector<32x4xf32>
    %cst_5 = arith.constant 0.000000e+00 : f32
    %6 = vector.broadcast %cst_5 : f32 to vector<32x4xf32>
    %7 = arith.cmpf oge, %5, %6 : vector<32x4xf32>
    %cst_6 = arith.constant 2.000000e-01 : f32
    %8 = vector.broadcast %cst_6 : f32 to vector<32x4xf32>
    %9 = arith.mulf %8, %5 : vector<32x4xf32>
    %10 = arith.select %7, %5, %9 : vector<32x4xi1>, vector<32x4xf32>
    %c0_7 = arith.constant 0 : index
    %c0_8 = arith.constant 0 : index
    %11 = vector.load %arg4[%c0_7, %c0_8] : memref<3x32xbf16, #tpu.memory_space<vmem>>, vector<3x32xbf16>
    %12 = arith.truncf %10 : vector<32x4xf32> to vector<32x4xbf16>
    %cst_9 = arith.constant dense<0.000000e+00> : vector<3x4xf32>
    %13 = tpu.matmul %11, %12, %cst_9 {dimension_numbers = #tpu.dot_dimension_numbers<[1], [0], [0], [1], [0, 0, 1, 1], [], []>} : vector<3x32xbf16>, vector<32x4xbf16>, vector<3x4xf32> -> vector<3x4xf32>
    %c0_10 = arith.constant 0 : index
    %c0_11 = arith.constant 0 : index
    %14 = vector.load %arg5[%c0_10, %c0_11] : memref<3x1xf32, #tpu.memory_space<vmem>>, vector<3x1xf32>
    %15 = vector.broadcast %14 : vector<3x1xf32> to vector<3x4xf32>
    %16 = arith.addf %13, %15 : vector<3x4xf32>
    %17 = arith.negf %16 : vector<3x4xf32>
    %18 = math.exp %17 : vector<3x4xf32>
    %cst_12 = arith.constant 1.000000e+00 : f32
    %19 = vector.broadcast %cst_12 : f32 to vector<3x4xf32>
    %20 = arith.addf %19, %18 : vector<3x4xf32>
    %21 = arith.divf %19, %20 : vector<3x4xf32>
    %c0_13 = arith.constant 0 : index
    %c0_14 = arith.constant 0 : index
    %22 = vector.load %arg6[%c0_13, %c0_14] : memref<3x4xf32, #tpu.memory_space<vmem>>, vector<3x4xf32>
    tpu.vector_store %arg6[%c0_13, %c0_14], %21 {strides = array<i32>} : memref<3x4xf32, #tpu.memory_space<vmem>>, vector<3x4xf32>,
    return
  }
  func.func @transform_0(%arg0: i32) -> (i32, i32) {
    %c0_i32 = arith.constant 0 : i32
    %c0_i32_0 = arith.constant 0 : i32
    %c0_i32_1 = arith.constant 0 : i32
    return %c0_i32, %c0_i32_0 : i32, i32
  }
  func.func @transform_1(%arg0: i32) -> (i32, i32) {
    %c0_i32 = arith.constant 0 : i32
    %c0_i32_0 = arith.constant 0 : i32
    %c0_i32_1 = arith.constant 0 : i32
    return %c0_i32, %c0_i32_0 : i32, i32
  }
  func.func @transform_2(%arg0: i32) -> (i32, i32) {
    %c0_i32 = arith.constant 0 : i32
    %c0_i32_0 = arith.constant 0 : i32
    %c0_i32_1 = arith.constant 0 : i32
    return %c0_i32, %c0_i32_0 : i32, i32
  }
  func.func @transform_3(%arg0: i32) -> (i32, i32) {
    %c0_i32 = arith.constant 0 : i32
    %c0_i32_0 = arith.constant 0 : i32
    %c0_i32_1 = arith.constant 0 : i32
    return %c0_i32, %c0_i32_0 : i32, i32
  }
  func.func @transform_4(%arg0: i32) -> (i32, i32) {
    %c0_i32 = arith.constant 0 : i32
    %c0_i32_0 = arith.constant 0 : i32
    %c0_i32_1 = arith.constant 0 : i32
    return %c0_i32, %c0_i32_0 : i32, i32
  }
  func.func @transform_5(%arg0: i32) -> (i32, i32) {
    %c0_i32 = arith.constant 0 : i32
    %c0_i32_0 = arith.constant 0 : i32
    %c0_i32_1 = arith.constant 0 : i32
    return %c0_i32, %c0_i32_0 : i32, i32
  }
}

</mosaic_0001>

<bundles_post_ra>
// kernel: discriminator_forward.7
= control target key start
LH: loop header
LB: loop body
LE: loop exit
PB: predicated region body
PF: predicated region fallthrough
CT: control target
= control target key end

     0   :  { %s3305_s15 = smov 0   ;;  %s3307_s16 = smov 0   ;;  %s4268_s0 = inlined_call_operand.vmem [shape: bf16[8,80], index: 0, kind: input, shape index: {}]   ;;  %s4269_s1 = inlined_call_operand.vmem [shape: bf16[80,4096], index: 1, kind: input, shape index: {}]   ;;  %s4270_s2 = inlined_call_operand.vmem [shape: bf16[8,4096], index: 2, kind: output, shape index: {0}]   ;;  %s4271_s3 = inlined_call_operand.vmem [shape: f32[2,8,1], index: 3, kind: output, shape index: {1}]   ;;  %s4272_s4 = inlined_call_operand.vmem [shape: f32[2,8,1], index: 4, kind: output, shape index: {2}]  }
   0x1   :  { %s3309_s17 = smov 0  }
   0x2 LB: > { %s3321_s18 = sadd.s32 4294967295, %s3276_s17   ;;  %s3324_s19 = sadd.s32 1, %s3276_s17   ;;  %s3276_s17 = sphi %s3309_s17, %s4275_s17   ;;  %s3272_s16 = sphi %s3307_s16, %s4274_s16   ;;  %s3268_s15 = sphi %s3305_s15, %s4273_s15  }
   0x3   : > { %s40_s20 = ssub.s32 %s3276_s17, %s3324_s19  ;;  %s43_s21 = sadd.s32 1, %s3272_s16 }
   0x4   : > { %p41_p0 = scmp.eq.s32.totalorder %s40_s20, 0  ;;  %p50_p1 = scmp.ne.s32.totalorder %s3272_s16, %s3268_s15 }
   0x5   : > { %p51_p2 = scmp.eq.s32.totalorder %s3276_s17, 0  ;;  %p2551_p4 = scmp.ge.s32.totalorder %s3276_s17, 2 }
   0x6   : > { %s3333_s22 = scalar_select %p41_p0, %s3272_s16, %s43_s21  }
   0x7   : > { %p52_p3 = por %p51_p2, %p50_p1  ;;  %157 = sbr.rel (%p2551_p4) target bundleno = 57 (0x39), region = 20 }
   0xc   : > { %160 = sbr.rel (!%p52_p3) target bundleno = 57 (0x39), region = 24  ;;  %s162_s23 = sand.u32 (%p52_p3), 1, %s3272_s16  }
   0xd   : > { %s2657_s24 = sshll.u32 (%p52_p3), %s3276_s17, 6  ;;  %s3226_s25 = smul.u32 (%p52_p3), 640, %s162_s23 }
   0xe   : > { %s3341_s28 = scalar_lea.vmem (%p52_p3), %s4269_s1, %s2657_s24 }
   0xf   : > { %v180_v0 = vld [vmem:[%s3341_s28] sm:$0xff] (%p52_p3)  ;;  %v182_v1 = vld [vmem:[%s3341_s28 + $0x8] sm:$0xff] (%p52_p3)  ;;  %v184_v2 = vld [vmem:[%s3341_s28 + $0x10] sm:$0xff] (%p52_p3)  ;;  %s3349_s29 = scalar_lea.vmem (%p52_p3), [#allocation2], %s3226_s25 }
  0x10   : > { %v186_v3 = vld [vmem:[%s3341_s28 + $0x18] sm:$0xff] (%p52_p3)  ;;  %v188_v4 = vld [vmem:[%s3341_s28 + $0x20] sm:$0xff] (%p52_p3)  ;;  %v190_v5 = vld [vmem:[%s3341_s28 + $0x28] sm:$0xff] (%p52_p3)  ;;  %181 = vst [vmem:[%s3349_s29] sm:$0xff] (%p52_p3), %v180_v0 }
  0x11   : > { %183 = vst [vmem:[%s3349_s29 + $0x8] sm:$0xff] %v182_v1  ;;  %185 = vst [vmem:[%s3349_s29 + $0x10] sm:$0xff] %v184_v2  ;;  %v192_v6 = vld [vmem:[%s3341_s28 + $0x30] sm:$0xff]  ;;  %v194_v7 = vld [vmem:[%s3341_s28 + $0x38] sm:$0xff] }
  0x12   : > { %187 = vst [vmem:[%s3349_s29 + $0x18] sm:$0xff] %v186_v3  ;;  %189 = vst [vmem:[%s3349_s29 + $0x20] sm:$0xff] %v188_v4  ;;  %v196_v8 = vld [vmem:[%s3341_s28 + $0x80] sm:$0xff]  ;;  %v198_v9 = vld [vmem:[%s3341_s28 + $0x88] sm:$0xff] }
  0x13   : > { %191 = vst [vmem:[%s3349_s29 + $0x28] sm:$0xff] %v190_v5  ;;  %193 = vst [vmem:[%s3349_s29 + $0x30] sm:$0xff] %v192_v6  ;;  %v200_v10 = vld [vmem:[%s3341_s28 + $0x90] sm:$0xff]  ;;  %v202_v11 = vld [vmem:[%s3341_s28 + $0x98] sm:$0xff] }
  0x14   : > { %195 = vst [vmem:[%s3349_s29 + $0x38] sm:$0xff] %v194_v7  ;;  %197 = vst [vmem:[%s3349_s29 + $0x40] sm:$0xff] %v196_v8  ;;  %v204_v12 = vld [vmem:[%s3341_s28 + $0xa0] sm:$0xff]  ;;  %v206_v13 = vld [vmem:[%s3341_s28 + $0xa8] sm:$0xff] }
  0x15   : > { %199 = vst [vmem:[%s3349_s29 + $0x48] sm:$0xff] %v198_v9  ;;  %201 = vst [vmem:[%s3349_s29 + $0x50] sm:$0xff] %v200_v10  ;;  %v208_v14 = vld [vmem:[%s3341_s28 + $0xb0] sm:$0xff]  ;;  %v210_v15 = vld [vmem:[%s3341_s28 + $0xb8] sm:$0xff] }
  0x16   : > { %203 = vst [vmem:[%s3349_s29 + $0x58] sm:$0xff] %v202_v11  ;;  %205 = vst [vmem:[%s3349_s29 + $0x60] sm:$0xff] %v204_v12  ;;  %v212_v16 = vld [vmem:[%s3341_s28 + $0x100] sm:$0xff]  ;;  %v214_v17 = vld [vmem:[%s3341_s28 + $0x108] sm:$0xff] }
  0x17   : > { %207 = vst [vmem:[%s3349_s29 + $0x68] sm:$0xff] %v206_v13  ;;  %209 = vst [vmem:[%s3349_s29 + $0x70] sm:$0xff] %v208_v14  ;;  %v216_v18 = vld [vmem:[%s3341_s28 + $0x110] sm:$0xff]  ;;  %v218_v19 = vld [vmem:[%s3341_s28 + $0x118] sm:$0xff] }
  0x18   : > { %211 = vst [vmem:[%s3349_s29 + $0x78] sm:$0xff] %v210_v15  ;;  %213 = vst [vmem:[%s3349_s29 + $0x80] sm:$0xff] %v212_v16  ;;  %v220_v20 = vld [vmem:[%s3341_s28 + $0x120] sm:$0xff]  ;;  %v222_v21 = vld [vmem:[%s3341_s28 + $0x128] sm:$0xff] }
  0x19   : > { %215 = vst [vmem:[%s3349_s29 + $0x88] sm:$0xff] %v214_v17  ;;  %217 = vst [vmem:[%s3349_s29 + $0x90] sm:$0xff] %v216_v18  ;;  %v224_v22 = vld [vmem:[%s3341_s28 + $0x130] sm:$0xff]  ;;  %v226_v23 = vld [vmem:[%s3341_s28 + $0x138] sm:$0xff] }
  0x1a   : > { %219 = vst [vmem:[%s3349_s29 + $0x98] sm:$0xff] %v218_v19  ;;  %221 = vst [vmem:[%s3349_s29 + $0xa0] sm:$0xff] %v220_v20  ;;  %v228_v24 = vld [vmem:[%s3341_s28 + $0x180] sm:$0xff]  ;;  %v230_v25 = vld [vmem:[%s3341_s28 + $0x188] sm:$0xff] }
  0x1b   : > { %223 = vst [vmem:[%s3349_s29 + $0xa8] sm:$0xff] %v222_v21  ;;  %225 = vst [vmem:[%s3349_s29 + $0xb0] sm:$0xff] %v224_v22  ;;  %v232_v26 = vld [vmem:[%s3341_s28 + $0x190] sm:$0xff]  ;;  %v234_v27 = vld [vmem:[%s3341_s28 + $0x198] sm:$0xff] }
  0x1c   : > { %227 = vst [vmem:[%s3349_s29 + $0xb8] sm:$0xff] %v226_v23  ;;  %229 = vst [vmem:[%s3349_s29 + $0xc0] sm:$0xff] %v228_v24  ;;  %v236_v28 = vld [vmem:[%s3341_s28 + $0x1a0] sm:$0xff]  ;;  %v238_v29 = vld [vmem:[%s3341_s28 + $0x1a8] sm:$0xff] }
  0x1d   : > { %231 = vst [vmem:[%s3349_s29 + $0xc8] sm:$0xff] %v230_v25  ;;  %233 = vst [vmem:[%s3349_s29 + $0xd0] sm:$0xff] %v232_v26  ;;  %v240_v30 = vld [vmem:[%s3341_s28 + $0x1b0] sm:$0xff]  ;;  %v242_v31 = vld [vmem:[%s3341_s28 + $0x1b8] sm:$0xff] }
  0x1e   : > { %235 = vst [vmem:[%s3349_s29 + $0xd8] sm:$0xff] %v234_v27  ;;  %237 = vst [vmem:[%s3349_s29 + $0xe0] sm:$0xff] %v236_v28  ;;  %v244_v32 = vld [vmem:[%s3341_s28 + $0x200] sm:$0xff]  ;;  %v246_v33 = vld [vmem:[%s3341_s28 + $0x208] sm:$0xff] }
  0x1f   : > { %239 = vst [vmem:[%s3349_s29 + $0xe8] sm:$0xff] %v238_v29  ;;  %241 = vst [vmem:[%s3349_s29 + $0xf0] sm:$0xff] %v240_v30  ;;  %v248_v34 = vld [vmem:[%s3341_s28 + $0x210] sm:$0xff]  ;;  %v250_v35 = vld [vmem:[%s3341_s28 + $0x218] sm:$0xff] }
  0x20   : > { %243 = vst [vmem:[%s3349_s29 + $0xf8] sm:$0xff] %v242_v31  ;;  %245 = vst [vmem:[%s3349_s29 + $0x100] sm:$0xff] %v244_v32  ;;  %v252_v36 = vld [vmem:[%s3341_s28 + $0x220] sm:$0xff]  ;;  %v254_v37 = vld [vmem:[%s3341_s28 + $0x228] sm:$0xff] }
  0x21   : > { %247 = vst [vmem:[%s3349_s29 + $0x108] sm:$0xff] %v246_v33  ;;  %249 = vst [vmem:[%s3349_s29 + $0x110] sm:$0xff] %v248_v34  ;;  %v256_v38 = vld [vmem:[%s3341_s28 + $0x230] sm:$0xff]  ;;  %v258_v39 = vld [vmem:[%s3341_s28 + $0x238] sm:$0xff] }
  0x22   : > { %251 = vst [vmem:[%s3349_s29 + $0x118] sm:$0xff] %v250_v35  ;;  %253 = vst [vmem:[%s3349_s29 + $0x120] sm:$0xff] %v252_v36  ;;  %v260_v40 = vld [vmem:[%s3341_s28 + $0x280] sm:$0xff]  ;;  %v262_v41 = vld [vmem:[%s3341_s28 + $0x288] sm:$0xff] }
  0x23   : > { %255 = vst [vmem:[%s3349_s29 + $0x128] sm:$0xff] %v254_v37  ;;  %257 = vst [vmem:[%s3349_s29 + $0x130] sm:$0xff] %v256_v38  ;;  %v264_v42 = vld [vmem:[%s3341_s28 + $0x290] sm:$0xff]  ;;  %v266_v43 = vld [vmem:[%s3341_s28 + $0x298] sm:$0xff] }
  0x24   : > { %259 = vst [vmem:[%s3349_s29 + $0x138] sm:$0xff] %v258_v39  ;;  %261 = vst [vmem:[%s3349_s29 + $0x140] sm:$0xff] %v260_v40  ;;  %v268_v44 = vld [vmem:[%s3341_s28 + $0x2a0] sm:$0xff]  ;;  %v270_v45 = vld [vmem:[%s3341_s28 + $0x2a8] sm:$0xff] }
  0x25   : > { %263 = vst [vmem:[%s3349_s29 + $0x148] sm:$0xff] %v262_v41  ;;  %265 = vst [vmem:[%s3349_s29 + $0x150] sm:$0xff] %v264_v42  ;;  %v272_v46 = vld [vmem:[%s3341_s28 + $0x2b0] sm:$0xff]  ;;  %v274_v47 = vld [vmem:[%s3341_s28 + $0x2b8] sm:$0xff] }
  0x26   : > { %267 = vst [vmem:[%s3349_s29 + $0x158] sm:$0xff] %v266_v43  ;;  %269 = vst [vmem:[%s3349_s29 + $0x160] sm:$0xff] %v268_v44  ;;  %v276_v48 = vld [vmem:[%s3341_s28 + $0x300] sm:$0xff]  ;;  %v278_v49 = vld [vmem:[%s3341_s28 + $0x308] sm:$0xff] }
  0x27   : > { %271 = vst [vmem:[%s3349_s29 + $0x168] sm:$0xff] %v270_v45  ;;  %273 = vst [vmem:[%s3349_s29 + $0x170] sm:$0xff] %v272_v46  ;;  %v280_v50 = vld [vmem:[%s3341_s28 + $0x310] sm:$0xff]  ;;  %v282_v51 = vld [vmem:[%s3341_s28 + $0x318] sm:$0xff] }
  0x28   : > { %275 = vst [vmem:[%s3349_s29 + $0x178] sm:$0xff] %v274_v47  ;;  %277 = vst [vmem:[%s3349_s29 + $0x180] sm:$0xff] %v276_v48  ;;  %v284_v52 = vld [vmem:[%s3341_s28 + $0x320] sm:$0xff]  ;;  %v286_v53 = vld [vmem:[%s3341_s28 + $0x328] sm:$0xff] }
  0x29   : > { %279 = vst [vmem:[%s3349_s29 + $0x188] sm:$0xff] %v278_v49  ;;  %281 = vst [vmem:[%s3349_s29 + $0x190] sm:$0xff] %v280_v50  ;;  %v288_v54 = vld [vmem:[%s3341_s28 + $0x330] sm:$0xff]  ;;  %v290_v55 = vld [vmem:[%s3341_s28 + $0x338] sm:$0xff] }
  0x2a   : > { %283 = vst [vmem:[%s3349_s29 + $0x198] sm:$0xff] %v282_v51  ;;  %285 = vst [vmem:[%s3349_s29 + $0x1a0] sm:$0xff] %v284_v52  ;;  %v292_v56 = vld [vmem:[%s3341_s28 + $0x380] sm:$0xff]  ;;  %v294_v57 = vld [vmem:[%s3341_s28 + $0x388] sm:$0xff] }
  0x2b   : > { %287 = vst [vmem:[%s3349_s29 + $0x1a8] sm:$0xff] %v286_v53  ;;  %289 = vst [vmem:[%s3349_s29 + $0x1b0] sm:$0xff] %v288_v54  ;;  %v296_v58 = vld [vmem:[%s3341_s28 + $0x390] sm:$0xff]  ;;  %v298_v59 = vld [vmem:[%s3341_s28 + $0x398] sm:$0xff] }
  0x2c   : > { %291 = vst [vmem:[%s3349_s29 + $0x1b8] sm:$0xff] %v290_v55  ;;  %293 = vst [vmem:[%s3349_s29 + $0x1c0] sm:$0xff] %v292_v56  ;;  %v300_v60 = vld [vmem:[%s3341_s28 + $0x3a0] sm:$0xff]  ;;  %v302_v61 = vld [vmem:[%s3341_s28 + $0x3a8] sm:$0xff] }
  0x2d   : > { %295 = vst [vmem:[%s3349_s29 + $0x1c8] sm:$0xff] %v294_v57  ;;  %297 = vst [vmem:[%s3349_s29 + $0x1d0] sm:$0xff] %v296_v58  ;;  %v304_v62 = vld [vmem:[%s3341_s28 + $0x3b0] sm:$0xff]  ;;  %v306_v63 = vld [vmem:[%s3341_s28 + $0x3b8] sm:$0xff] }
  0x2e   : > { %299 = vst [vmem:[%s3349_s29 + $0x1d8] sm:$0xff] %v298_v59  ;;  %301 = vst [vmem:[%s3349_s29 + $0x1e0] sm:$0xff] %v300_v60  ;;  %v308_v0 = vld [vmem:[%s3341_s28 + $0x400] sm:$0xff]  ;;  %v310_v1 = vld [vmem:[%s3341_s28 + $0x408] sm:$0xff] }
  0x2f   : > { %303 = vst [vmem:[%s3349_s29 + $0x1e8] sm:$0xff] %v302_v61  ;;  %305 = vst [vmem:[%s3349_s29 + $0x1f0] sm:$0xff] %v304_v62  ;;  %v312_v2 = vld [vmem:[%s3341_s28 + $0x410] sm:$0xff]  ;;  %v314_v3 = vld [vmem:[%s3341_s28 + $0x418] sm:$0xff] }
  0x30   : > { %307 = vst [vmem:[%s3349_s29 + $0x1f8] sm:$0xff] %v306_v63  ;;  %309 = vst [vmem:[%s3349_s29 + $0x200] sm:$0xff] %v308_v0  ;;  %v316_v4 = vld [vmem:[%s3341_s28 + $0x420] sm:$0xff]  ;;  %v318_v5 = vld [vmem:[%s3341_s28 + $0x428] sm:$0xff] }
  0x31   : > { %311 = vst [vmem:[%s3349_s29 + $0x208] sm:$0xff] %v310_v1  ;;  %313 = vst [vmem:[%s3349_s29 + $0x210] sm:$0xff] %v312_v2  ;;  %v320_v6 = vld [vmem:[%s3341_s28 + $0x430] sm:$0xff]  ;;  %v322_v7 = vld [vmem:[%s3341_s28 + $0x438] sm:$0xff] }
  0x32   : > { %315 = vst [vmem:[%s3349_s29 + $0x218] sm:$0xff] %v314_v3  ;;  %317 = vst [vmem:[%s3349_s29 + $0x220] sm:$0xff] %v316_v4  ;;  %v324_v8 = vld [vmem:[%s3341_s28 + $0x480] sm:$0xff]  ;;  %v326_v9 = vld [vmem:[%s3341_s28 + $0x488] sm:$0xff] }
  0x33   : > { %319 = vst [vmem:[%s3349_s29 + $0x228] sm:$0xff] %v318_v5  ;;  %321 = vst [vmem:[%s3349_s29 + $0x230] sm:$0xff] %v320_v6  ;;  %v328_v10 = vld [vmem:[%s3341_s28 + $0x490] sm:$0xff]  ;;  %v330_v11 = vld [vmem:[%s3341_s28 + $0x498] sm:$0xff] }
  0x34   : > { %323 = vst [vmem:[%s3349_s29 + $0x238] sm:$0xff] %v322_v7  ;;  %325 = vst [vmem:[%s3349_s29 + $0x240] sm:$0xff] %v324_v8  ;;  %v332_v12 = vld [vmem:[%s3341_s28 + $0x4a0] sm:$0xff]  ;;  %v334_v13 = vld [vmem:[%s3341_s28 + $0x4a8] sm:$0xff] }
  0x35   : > { %327 = vst [vmem:[%s3349_s29 + $0x248] sm:$0xff] %v326_v9  ;;  %329 = vst [vmem:[%s3349_s29 + $0x250] sm:$0xff] %v328_v10  ;;  %v336_v14 = vld [vmem:[%s3341_s28 + $0x4b0] sm:$0xff]  ;;  %v338_v15 = vld [vmem:[%s3341_s28 + $0x4b8] sm:$0xff] }
  0x36   : > { %331 = vst [vmem:[%s3349_s29 + $0x258] sm:$0xff] %v330_v11  ;;  %333 = vst [vmem:[%s3349_s29 + $0x260] sm:$0xff] %v332_v12 }
  0x37   : > { %335 = vst [vmem:[%s3349_s29 + $0x268] sm:$0xff] %v334_v13  ;;  %337 = vst [vmem:[%s3349_s29 + $0x270] sm:$0xff] %v336_v14 }
  0x38   : > { %339 = vst [vmem:[%s3349_s29 + $0x278] sm:$0xff] %v338_v15 }
  0x39 PF: > { %p2554_p5 = scmp.ge.s32.totalorder %s3276_s17, 1  ;;  %p344_p6 = scmp.lt.s32.totalorder %s3276_s17, 3 }
  0x3b   : > { %p345_p7 = pnand %p2554_p5, %p344_p6 }
  0x3c   : > { %s351_s30 = sand.u32 (!%p345_p7), 1, %s3268_s15   ;;  %s2555_s9 = sshll.u32 (!%p345_p7), %s3321_s18, 4 }
  0x3d   : > { %348 = sbr.rel (%p345_p7) target bundleno = 725 (0x2d5), region = 47  ;;  %p386_p8 = scmp.lt.s32.totalorder (!%p345_p7), %s2555_s9, 31 }
  0x3e   : > { %s3227_s5 = smul.u32 (!%p345_p7), 640, %s351_s30  ;;  %p391_p9 = scmp.lt.s32.totalorder (!%p345_p7), %s3321_s18, 1 }
  0x40   : > { %s3510_s6 = scalar_lea.vmem (!%p345_p7), [#allocation2], %s3227_s5 }
  0x42   : > { %v3278_v16 = vmov 0   ;;  %v465_v17 = vld [vmem:[%s3510_s6 + $0x200] sm:$0xff]  ;;  %v466_v19 = vld [vmem:[%s3510_s6 + $0x208] sm:$0xff]  ;;  %v467_v55 = vld [vmem:[%s3510_s6 + $0x210] sm:$0xff]  ;;  %vm881_vm0 = vcmask 654336   ;;  %s4277_s9 = smov (!%p386_p8, %s2555_s9), 31 }
  0x43   : > { %917 = vmatprep.mubr.bf16.mxu0 %v3278_v16  ;;  %958 = vmatprep.mubr.bf16.mxu1 %v3278_v16  ;;  %v473_v18 = vld [vmem:[%s3510_s6 + $0x240] sm:$0xff]  ;;  %v474_v21 = vld [vmem:[%s3510_s6 + $0x248] sm:$0xff]  ;;  %v475_v56 = vld [vmem:[%s3510_s6 + $0x250] sm:$0xff]  ;;  %s2556_s10 = sshll.u32 %s4277_s9, 2  ;;  %s4279_s18 = smov (!%p391_p9, %s3321_s18), 1  ;;  %vm1845_vm1 = vcmask 7168  }
  0x44   : > { %v2624_v20 = vcombine.high %v465_v17, %v473_v18  ;;  %v2623_v22 = vcombine.low %v465_v17, %v473_v18  ;;  %v449_v23 = vld [vmem:[%s3510_s6 + $0x180] sm:$0xff]  ;;  %v2626_v25 = vcombine.high %v466_v19, %v474_v21  ;;  %v2625_v26 = vcombine.low %v466_v19, %v474_v21  ;;  %v450_v28 = vld [vmem:[%s3510_s6 + $0x188] sm:$0xff]  ;;  %v468_v57 = vld [vmem:[%s3510_s6 + $0x218] sm:$0xff]  ;;  %s3693_s13 = scalar_lea.vmem %s4270_s2, %s2556_s10  ;;  %s2557_s14 = sshll.u32 %s4279_s18, 3 }
  0x45   : > { %v457_v24 = vld [vmem:[%s3510_s6 + $0x1c0] sm:$0xff]  ;;  %v458_v29 = vld [vmem:[%s3510_s6 + $0x1c8] sm:$0xff]  ;;  %v476_v58 = vld [vmem:[%s3510_s6 + $0x258] sm:$0xff]  ;;  %v2628_v61 = vcombine.high %v467_v55, %v475_v56  ;;  %v2627_v4 = vcombine.low %v467_v55, %v475_v56  ;;  %s394_s20 = scalar_lea.vmem %s4271_s3, %s2557_s14  ;;  %s398_s24 = scalar_lea.vmem %s4272_s4, %s2557_s14 }
  0x46   : > { %v2608_v27 = vcombine.high %v449_v23, %v457_v24  ;;  %v433_v30 = vld [vmem:[%s3510_s6 + $0x100] sm:$0xff]  ;;  %891 = vmatprep.subr.bf16.mxu0 %v2624_v20  ;;  %v2610_v31 = vcombine.high %v450_v28, %v458_v29  ;;  %v434_v33 = vld [vmem:[%s3510_s6 + $0x108] sm:$0xff]  ;;  %932 = vmatprep.subr.bf16.mxu1 %v2626_v25  ;;  %v2607_v35 = vcombine.low %v449_v23, %v457_v24  ;;  %v451_v63 = vld [vmem:[%s3510_s6 + $0x190] sm:$0xff] }
  0x47   : > { %v441_v32 = vld [vmem:[%s3510_s6 + $0x140] sm:$0xff]  ;;  %v442_v34 = vld [vmem:[%s3510_s6 + $0x148] sm:$0xff]  ;;  %892 = vmatpush1.bf16.msra.mxu0 %v2623_v22  ;;  %933 = vmatpush1.bf16.msra.mxu1 %v2625_v26  ;;  %v2609_v36 = vcombine.low %v450_v28, %v458_v29  ;;  %v2630_v62 = vcombine.high %v468_v57, %v476_v58  ;;  %v459_v0 = vld [vmem:[%s3510_s6 + $0x1d0] sm:$0xff]  ;;  %v2629_v5 = vcombine.low %v468_v57, %v476_v58 }
  0x48   : > { %893 = vmatprep.subr.bf16.mxu0 %v2608_v27  ;;  %v2592_v37 = vcombine.high %v433_v30, %v441_v32  ;;  %934 = vmatprep.subr.bf16.mxu1 %v2610_v31  ;;  %v2594_v38 = vcombine.high %v434_v33, %v442_v34  ;;  %v417_v39 = vld [vmem:[%s3510_s6 + $0x80] sm:$0xff]  ;;  %v418_v41 = vld [vmem:[%s3510_s6 + $0x88] sm:$0xff]  ;;  %v2591_v43 = vcombine.low %v433_v30, %v441_v32  ;;  %v452_v1 = vld [vmem:[%s3510_s6 + $0x198] sm:$0xff] }
  0x49   : > { %v425_v40 = vld [vmem:[%s3510_s6 + $0xc0] sm:$0xff]  ;;  %v426_v42 = vld [vmem:[%s3510_s6 + $0xc8] sm:$0xff]  ;;  %v2593_v44 = vcombine.low %v434_v33, %v442_v34  ;;  %v460_v2 = vld [vmem:[%s3510_s6 + $0x1d8] sm:$0xff]  ;;  %v2612_v6 = vcombine.high %v451_v63, %v459_v0  ;;  %v2611_v12 = vcombine.low %v451_v63, %v459_v0 }
  0x4a   : > { %v2576_v45 = vcombine.high %v417_v39, %v425_v40  ;;  %v2578_v46 = vcombine.high %v418_v41, %v426_v42  ;;  %v401_v47 = vld [vmem:[%s3510_s6] sm:$0xff]  ;;  %v402_v49 = vld [vmem:[%s3510_s6 + $0x8] sm:$0xff]  ;;  %v2575_v51 = vcombine.low %v417_v39, %v425_v40  ;;  %v2577_v52 = vcombine.low %v418_v41, %v426_v42  ;;  %v435_v8 = vld [vmem:[%s3510_s6 + $0x110] sm:$0xff] }
  0x4b   : > { %894 = vmatpush1.bf16.msra.mxu0 %v2607_v35  ;;  %935 = vmatpush1.bf16.msra.mxu1 %v2609_v36  ;;  %v409_v48 = vld [vmem:[%s3510_s6 + $0x40] sm:$0xff]  ;;  %v410_v50 = vld [vmem:[%s3510_s6 + $0x48] sm:$0xff]  ;;  %v2614_v7 = vcombine.high %v452_v1, %v460_v2  ;;  %v443_v9 = vld [vmem:[%s3510_s6 + $0x150] sm:$0xff]  ;;  %v2613_v13 = vcombine.low %v452_v1, %v460_v2 }
  0x4c   : > { %895 = vmatprep.subr.bf16.mxu0 %v2592_v37  ;;  %936 = vmatprep.subr.bf16.mxu1 %v2594_v38  ;;  %v2560_v53 = vcombine.high %v401_v47, %v409_v48  ;;  %v2562_v54 = vcombine.high %v402_v49, %v410_v50  ;;  %v2559_v59 = vcombine.low %v401_v47, %v409_v48  ;;  %v3543_v3 = vld [vmem:[%s4268_s0] sm:$0xf]  ;;  %v436_v10 = vld [vmem:[%s3510_s6 + $0x118] sm:$0xff]  ;;  %v419_v17 = vld [vmem:[%s3510_s6 + $0x90] sm:$0xff] }
  0x4d   : > { %v2561_v60 = vcombine.low %v402_v49, %v410_v50  ;;  %v444_v11 = vld [vmem:[%s3510_s6 + $0x158] sm:$0xff]  ;;  %v2596_v14 = vcombine.high %v435_v8, %v443_v9  ;;  %v427_v18 = vld [vmem:[%s3510_s6 + $0xd0] sm:$0xff]  ;;  %v2595_v21 = vcombine.low %v435_v8, %v443_v9  ;;  %v469_v33 = vld [vmem:[%s3510_s6 + $0x220] sm:$0xff] }
  0x4e   : > { %v2598_v15 = vcombine.high %v436_v10, %v444_v11  ;;  %v420_v19 = vld [vmem:[%s3510_s6 + $0x98] sm:$0xff]  ;;  %v2597_v22 = vcombine.low %v436_v10, %v444_v11  ;;  %v2580_v23 = vcombine.high %v419_v17, %v427_v18  ;;  %v403_v25 = vld [vmem:[%s3510_s6 + $0x10] sm:$0xff]  ;;  %v2579_v29 = vcombine.low %v419_v17, %v427_v18  ;;  %v477_v34 = vld [vmem:[%s3510_s6 + $0x260] sm:$0xff] }
  0x4f   : > { %896 = vmatpush1.bf16.msra.mxu0 %v2591_v43  ;;  %937 = vmatpush1.bf16.msra.mxu1 %v2593_v44  ;;  %v428_v20 = vld [vmem:[%s3510_s6 + $0xd8] sm:$0xff]  ;;  %v411_v26 = vld [vmem:[%s3510_s6 + $0x50] sm:$0xff]  ;;  %v470_v35 = vld [vmem:[%s3510_s6 + $0x228] sm:$0xff]  ;;  %v2632_v39 = vcombine.high %v469_v33, %v477_v34 }
  0x50   : > { %897 = vmatprep.subr.bf16.mxu0 %v2576_v45  ;;  %938 = vmatprep.subr.bf16.mxu1 %v2578_v46  ;;  %v2582_v24 = vcombine.high %v420_v19, %v428_v20  ;;  %v404_v27 = vld [vmem:[%s3510_s6 + $0x18] sm:$0xff]  ;;  %v2581_v30 = vcombine.low %v420_v19, %v428_v20  ;;  %v2564_v31 = vcombine.high %v403_v25, %v411_v26  ;;  %v478_v36 = vld [vmem:[%s3510_s6 + $0x268] sm:$0xff]  ;;  %v453_v41 = vld [vmem:[%s3510_s6 + $0x1a0] sm:$0xff] }
  0x51   : > { %v412_v28 = vld [vmem:[%s3510_s6 + $0x58] sm:$0xff]  ;;  %v2563_v37 = vcombine.low %v403_v25, %v411_v26  ;;  %v2634_v40 = vcombine.high %v470_v35, %v478_v36  ;;  %v461_v42 = vld [vmem:[%s3510_s6 + $0x1e0] sm:$0xff]  ;;  %v454_v43 = vld [vmem:[%s3510_s6 + $0x1a8] sm:$0xff]  ;;  %v2631_v45 = vcombine.low %v469_v33, %v477_v34  ;;  %v2633_v46 = vcombine.low %v470_v35, %v478_v36 }
  0x52   : > { %v2566_v32 = vcombine.high %v404_v27, %v412_v28  ;;  %v2565_v38 = vcombine.low %v404_v27, %v412_v28  ;;  %v462_v44 = vld [vmem:[%s3510_s6 + $0x1e8] sm:$0xff]  ;;  %v2616_v47 = vcombine.high %v453_v41, %v461_v42  ;;  %v437_v49 = vld [vmem:[%s3510_s6 + $0x120] sm:$0xff]  ;;  %v471_v10 = vld [vmem:[%s3510_s6 + $0x230] sm:$0xff] }
  0x53   : > { %898 = vmatpush1.bf16.msra.mxu0 %v2575_v51  ;;  %939 = vmatpush1.bf16.msra.mxu1 %v2577_v52  ;;  %v2618_v48 = vcombine.high %v454_v43, %v462_v44  ;;  %v445_v50 = vld [vmem:[%s3510_s6 + $0x160] sm:$0xff]  ;;  %v438_v51 = vld [vmem:[%s3510_s6 + $0x128] sm:$0xff]  ;;  %v479_v11 = vld [vmem:[%s3510_s6 + $0x270] sm:$0xff] }
  0x54   : > { %899 = vmatprep.subr.bf16.mxu0 %v2560_v53  ;;  %940 = vmatprep.subr.bf16.mxu1 %v2562_v54  ;;  %v446_v52 = vld [vmem:[%s3510_s6 + $0x168] sm:$0xff]  ;;  %v2615_v53 = vcombine.low %v453_v41, %v461_v42  ;;  %v2617_v54 = vcombine.low %v454_v43, %v462_v44  ;;  %v2600_v55 = vcombine.high %v437_v49, %v445_v50  ;;  %v421_v57 = vld [vmem:[%s3510_s6 + $0xa0] sm:$0xff]  ;;  %v455_v19 = vld [vmem:[%s3510_s6 + $0x1b0] sm:$0xff] }
  0x55   : > { %v2602_v56 = vcombine.high %v438_v51, %v446_v52  ;;  %v429_v58 = vld [vmem:[%s3510_s6 + $0xe0] sm:$0xff]  ;;  %v2636_v17 = vcombine.high %v471_v10, %v479_v11  ;;  %v463_v20 = vld [vmem:[%s3510_s6 + $0x1f0] sm:$0xff] }
  0x56   : > { %v2584_v63 = vcombine.high %v421_v57, %v429_v58  ;;  %v405_v1 = vld [vmem:[%s3510_s6 + $0x20] sm:$0xff]  ;;  %v2620_v25 = vcombine.high %v455_v19, %v463_v20  ;;  %v439_v27 = vld [vmem:[%s3510_s6 + $0x130] sm:$0xff] }
  0x57   : > { %900 = vmatpush1.bf16.msra.mxu0 %v2559_v59  ;;  %941 = vmatpush1.bf16.msra.mxu1 %v2561_v60  ;;  %v422_v59 = vld [vmem:[%s3510_s6 + $0xa8] sm:$0xff]  ;;  %v413_v2 = vld [vmem:[%s3510_s6 + $0x60] sm:$0xff]  ;;  %v447_v28 = vld [vmem:[%s3510_s6 + $0x170] sm:$0xff] }
  0x58   : > { %973 = vmatprep.subr.bf16.mxu0 %v2628_v61  ;;  %1014 = vmatprep.subr.bf16.mxu1 %v2630_v62  ;;  %v430_v60 = vld [vmem:[%s3510_s6 + $0xe8] sm:$0xff]  ;;  %v2599_v61 = vcombine.low %v437_v49, %v445_v50  ;;  %v2601_v62 = vcombine.low %v438_v51, %v446_v52  ;;  %v2568_v8 = vcombine.high %v405_v1, %v413_v2  ;;  %v423_v35 = vld [vmem:[%s3510_s6 + $0xb0] sm:$0xff]  ;;  %v3279_v52 = vmov 1.0  }
  0x59   : > { %v2586_v0 = vcombine.high %v422_v59, %v430_v60  ;;  %v2604_v33 = vcombine.high %v439_v27, %v447_v28  ;;  %v431_v36 = vld [vmem:[%s3510_s6 + $0xf0] sm:$0xff] }
  0x5a   : > { %2639 = vmatmul.mubr.msk.bf16.vlgmr.msra.gmra.mxu0 %vm881_vm0, %v3543_v3  ;;  %2640 = vmatmul.mubr.msk.bf16.vlgmr.msra.gmra.mxu1 %vm881_vm0, %v3543_v3  ;;  %v2588_v41 = vcombine.high %v423_v35, %v431_v36  ;;  %v407_v43 = vld [vmem:[%s3510_s6 + $0x30] sm:$0xff] }
  0x5b   : > { %974 = vmatpush1.bf16.msra.mxu0 %v2627_v4  ;;  %1015 = vmatpush1.bf16.msra.mxu1 %v2629_v5  ;;  %v406_v4 = vld [vmem:[%s3510_s6 + $0x28] sm:$0xff]  ;;  %v415_v44 = vld [vmem:[%s3510_s6 + $0x70] sm:$0xff] }
  0x5c   : > { %975 = vmatprep.subr.bf16.mxu0 %v2612_v6  ;;  %1016 = vmatprep.subr.bf16.mxu1 %v2614_v7  ;;  %v414_v5 = vld [vmem:[%s3510_s6 + $0x68] sm:$0xff]  ;;  %v2583_v6 = vcombine.low %v421_v57, %v429_v58  ;;  %v2585_v7 = vcombine.low %v422_v59, %v430_v60  ;;  %v2572_v49 = vcombine.high %v407_v43, %v415_v44 }
  0x5d   : > { %999 = vmatprep.mubr.bf16.mxu0 %v3278_v16  ;;  %1040 = vmatprep.mubr.bf16.mxu1 %v3278_v16  ;;  %v2570_v9 = vcombine.high %v406_v4, %v414_v5  ;;  %v2571_v50 = vcombine.low %v407_v43, %v415_v44 }
  0x5f   : > { %976 = vmatpush1.bf16.msra.mxu0 %v2611_v12  ;;  %1017 = vmatpush1.bf16.msra.mxu1 %v2613_v13  ;;  %v472_v12 = vld [vmem:[%s3510_s6 + $0x238] sm:$0xff] }
  0x60   : > { %977 = vmatprep.subr.bf16.mxu0 %v2596_v14  ;;  %1018 = vmatprep.subr.bf16.mxu1 %v2598_v15  ;;  %v480_v13 = vld [vmem:[%s3510_s6 + $0x278] sm:$0xff]  ;;  %v2567_v14 = vcombine.low %v405_v1, %v413_v2  ;;  %v2569_v15 = vcombine.low %v406_v4, %v414_v5 }
  0x61   : > { %v2638_v18 = vcombine.high %v472_v12, %v480_v13 }
  0x63   : > { %978 = vmatpush1.bf16.msra.mxu0 %v2595_v21  ;;  %1019 = vmatpush1.bf16.msra.mxu1 %v2597_v22  ;;  %v456_v21 = vld [vmem:[%s3510_s6 + $0x1b8] sm:$0xff] }
  0x64   : > { %979 = vmatprep.subr.bf16.mxu0 %v2580_v23  ;;  %1020 = vmatprep.subr.bf16.mxu1 %v2582_v24  ;;  %v464_v22 = vld [vmem:[%s3510_s6 + $0x1f8] sm:$0xff]  ;;  %v2635_v23 = vcombine.low %v471_v10, %v479_v11  ;;  %v2637_v24 = vcombine.low %v472_v12, %v480_v13 }
  0x65   : > { %v2622_v26 = vcombine.high %v456_v21, %v464_v22 }
  0x67   : > { %980 = vmatpush1.bf16.msra.mxu0 %v2579_v29  ;;  %1021 = vmatpush1.bf16.msra.mxu1 %v2581_v30  ;;  %v440_v29 = vld [vmem:[%s3510_s6 + $0x138] sm:$0xff] }
  0x68   : > { %981 = vmatprep.subr.bf16.mxu0 %v2564_v31  ;;  %1022 = vmatprep.subr.bf16.mxu1 %v2566_v32  ;;  %v448_v30 = vld [vmem:[%s3510_s6 + $0x178] sm:$0xff]  ;;  %v2619_v31 = vcombine.low %v455_v19, %v463_v20  ;;  %v2621_v32 = vcombine.low %v456_v21, %v464_v22 }
  0x69   : > { %v2606_v34 = vcombine.high %v440_v29, %v448_v30 }
  0x6b   : > { %982 = vmatpush1.bf16.msra.mxu0 %v2563_v37  ;;  %1023 = vmatpush1.bf16.msra.mxu1 %v2565_v38  ;;  %v424_v37 = vld [vmem:[%s3510_s6 + $0xb8] sm:$0xff] }
  0x6c   : > { %1055 = vmatprep.subr.bf16.mxu0 %v2632_v39  ;;  %1096 = vmatprep.subr.bf16.mxu1 %v2634_v40  ;;  %v432_v38 = vld [vmem:[%s3510_s6 + $0xf8] sm:$0xff]  ;;  %v2603_v39 = vcombine.low %v439_v27, %v447_v28  ;;  %v2605_v40 = vcombine.low %v440_v29, %v448_v30 }
  0x6d   : > { %v2590_v42 = vcombine.high %v424_v37, %v432_v38 }
  0x6e   : > { %2641 = vmatmul.mubr.msk.bf16.vlgmr.msra.gmra.mxu0 %vm881_vm0, %v3543_v3  ;;  %2642 = vmatmul.mubr.msk.bf16.vlgmr.msra.gmra.mxu1 %vm881_vm0, %v3543_v3 }
  0x6f   : > { %1056 = vmatpush1.bf16.msra.mxu0 %v2631_v45  ;;  %1097 = vmatpush1.bf16.msra.mxu1 %v2633_v46  ;;  %v408_v45 = vld [vmem:[%s3510_s6 + $0x38] sm:$0xff] }
  0x70   : > { %1057 = vmatprep.subr.bf16.mxu0 %v2616_v47  ;;  %1098 = vmatprep.subr.bf16.mxu1 %v2618_v48  ;;  %v416_v46 = vld [vmem:[%s3510_s6 + $0x78] sm:$0xff]  ;;  %v2587_v47 = vcombine.low %v423_v35, %v431_v36  ;;  %v2589_v48 = vcombine.low %v424_v37, %v432_v38 }
  0x71   : > { %1081 = vmatprep.mubr.bf16.mxu0 %v3278_v16  ;;  %1122 = vmatprep.mubr.bf16.mxu1 %v3278_v16  ;;  %v2573_v51 = vcombine.low %v408_v45, %v416_v46 }
  0x73   : > { %1058 = vmatpush1.bf16.msra.mxu0 %v2615_v53  ;;  %1099 = vmatpush1.bf16.msra.mxu1 %v2617_v54 }
  0x74   : > { %1059 = vmatprep.subr.bf16.mxu0 %v2600_v55  ;;  %1100 = vmatprep.subr.bf16.mxu1 %v2602_v56 }
  0x77   : > { %1060 = vmatpush1.bf16.msra.mxu0 %v2599_v61  ;;  %1101 = vmatpush1.bf16.msra.mxu1 %v2601_v62 }
  0x78   : > { %1061 = vmatprep.subr.bf16.mxu0 %v2584_v63  ;;  %1102 = vmatprep.subr.bf16.mxu1 %v2586_v0 }
  0x7b   : > { %1062 = vmatpush1.bf16.msra.mxu0 %v2583_v6  ;;  %1103 = vmatpush1.bf16.msra.mxu1 %v2585_v7 }
  0x7c   : > { %1063 = vmatprep.subr.bf16.mxu0 %v2568_v8  ;;  %1104 = vmatprep.subr.bf16.mxu1 %v2570_v9 }
  0x7f   : > { %1064 = vmatpush1.bf16.msra.mxu0 %v2567_v14  ;;  %1105 = vmatpush1.bf16.msra.mxu1 %v2569_v15 }
  0x80   : > { %1137 = vmatprep.subr.bf16.mxu0 %v2636_v17  ;;  %1178 = vmatprep.subr.bf16.mxu1 %v2638_v18 }
  0x82   : > { %2643 = vmatmul.mubr.msk.bf16.vlgmr.msra.gmra.mxu0 %vm881_vm0, %v3543_v3  ;;  %2644 = vmatmul.mubr.msk.bf16.vlgmr.msra.gmra.mxu1 %vm881_vm0, %v3543_v3 }
  0x83   : > { %1138 = vmatpush1.bf16.msra.mxu0 %v2635_v23  ;;  %1179 = vmatpush1.bf16.msra.mxu1 %v2637_v24 }
  0x84   : > { %1139 = vmatprep.subr.bf16.mxu0 %v2620_v25  ;;  %1180 = vmatprep.subr.bf16.mxu1 %v2622_v26 }
  0x85   : > { %1163 = vmatprep.mubr.bf16.mxu0 %v3278_v16  ;;  %1204 = vmatprep.mubr.bf16.mxu1 %v3278_v16  ;;  %v2574_v16 = vcombine.high %v408_v45, %v416_v46 }
  0x87   : > { %1140 = vmatpush1.bf16.msra.mxu0 %v2619_v31  ;;  %1181 = vmatpush1.bf16.msra.mxu1 %v2621_v32 }
  0x88   : > { %1141 = vmatprep.subr.bf16.mxu0 %v2604_v33  ;;  %1182 = vmatprep.subr.bf16.mxu1 %v2606_v34 }
  0x8b   : > { %1142 = vmatpush1.bf16.msra.mxu0 %v2603_v39  ;;  %1183 = vmatpush1.bf16.msra.mxu1 %v2605_v40 }
  0x8c   : > { %1143 = vmatprep.subr.bf16.mxu0 %v2588_v41  ;;  %1184 = vmatprep.subr.bf16.mxu1 %v2590_v42 }
  0x8f   : > { %1144 = vmatpush1.bf16.msra.mxu0 %v2587_v47  ;;  %1185 = vmatpush1.bf16.msra.mxu1 %v2589_v48 }
  0x90   : > { %1145 = vmatprep.subr.bf16.mxu0 %v2572_v49  ;;  %1186 = vmatprep.subr.bf16.mxu1 %v2574_v16 }
  0x93   : > { %1146 = vmatpush1.bf16.msra.mxu0 %v2571_v50  ;;  %1187 = vmatpush1.bf16.msra.mxu1 %v2573_v51 }
  0x94   : > { %2666 = vmatprep.subr.mxu0 %v3279_v52  ;;  %2701 = vmatprep.subr.mxu1 %v3279_v52 }
  0x96   : > { %2645 = vmatmul.mubr.msk.bf16.vlgmr.msra.gmra.mxu0 %vm881_vm0, %v3543_v3  ;;  %2646 = vmatmul.mubr.msk.bf16.vlgmr.msra.gmra.mxu1 %vm881_vm0, %v3543_v3 }
  0x97   : > { %2667 = vmatpush3.msra.mxu0 %v3279_v52  ;;  %2702 = vmatpush3.msra.mxu1 %v3279_v52 }
  0x98   : > { %2668 = vmatprep.subr.mxu0 %v3279_v52  ;;  %2703 = vmatprep.subr.mxu1 %v3279_v52 }
  0x99   : > { %2669 = vmatpush3.msra.mxu0 %v3279_v52  ;;  %2704 = vmatpush3.msra.mxu1 %v3279_v52 }
  0x9a   : > { %2670 = vmatprep.subr.mxu0 %v3279_v52  ;;  %2705 = vmatprep.subr.mxu1 %v3279_v52 }
  0x9b   : > { %2671 = vmatpush3.msra.mxu0 %v3279_v52  ;;  %2706 = vmatpush3.msra.mxu1 %v3279_v52 }
  0x9c   : > { %2672 = vmatprep.subr.mxu0 %v3279_v52  ;;  %2707 = vmatprep.subr.mxu1 %v3279_v52 }
  0x9d   : > { %2673 = vmatpush3.msra.mxu0 %v3279_v52  ;;  %2708 = vmatpush3.msra.mxu1 %v3279_v52 }
  0x9e   : > { %2674 = vmatprep.subr.mxu0 %v3279_v52  ;;  %2709 = vmatprep.subr.mxu1 %v3279_v52 }
  0x9f   : > { %2675 = vmatpush3.msra.mxu0 %v3279_v52  ;;  %2710 = vmatpush3.msra.mxu1 %v3279_v52 }
  0xa0   : > { %2676 = vmatprep.subr.mxu0 %v3279_v52  ;;  %2711 = vmatprep.subr.mxu1 %v3279_v52 }
  0xa1   : > { %2677 = vmatpush3.msra.mxu0 %v3279_v52  ;;  %2712 = vmatpush3.msra.mxu1 %v3279_v52 }
  0xa2   : > { %2678 = vmatprep.subr.mxu0 %v3279_v52  ;;  %2713 = vmatprep.subr.mxu1 %v3279_v52 }
  0xa3   : > { %2679 = vmatpush3.msra.mxu0 %v3279_v52  ;;  %2714 = vmatpush3.msra.mxu1 %v3279_v52 }
  0xa4   : > { %2680 = vmatprep.subr.mxu0 %v3279_v52  ;;  %2715 = vmatprep.subr.mxu1 %v3279_v52 }
  0xa5   : > { %2681 = vmatpush3.msra.mxu0 %v3279_v52  ;;  %2716 = vmatpush3.msra.mxu1 %v3279_v52 }
  0xa6   : > { %2682 = vmatprep.subr.mxu0 %v3279_v52  ;;  %2717 = vmatprep.subr.mxu1 %v3279_v52 }
  0xa7   : > { %2683 = vmatpush3.msra.mxu0 %v3279_v52  ;;  %2718 = vmatpush3.msra.mxu1 %v3279_v52 }
  0xa8   : > { %2684 = vmatprep.subr.mxu0 %v3279_v52  ;;  %2719 = vmatprep.subr.mxu1 %v3279_v52 }
  0xa9   : > { %2685 = vmatpush3.msra.mxu0 %v3279_v52  ;;  %2720 = vmatpush3.msra.mxu1 %v3279_v52 }
  0xaa   : > { %2686 = vmatprep.subr.mxu0 %v3279_v52  ;;  %2721 = vmatprep.subr.mxu1 %v3279_v52 }
  0xab   : > { %2687 = vmatpush3.msra.mxu0 %v3279_v52  ;;  %2722 = vmatpush3.msra.mxu1 %v3279_v52 }
  0xac   : > { %2688 = vmatprep.subr.mxu0 %v3279_v52  ;;  %2723 = vmatprep.subr.mxu1 %v3279_v52 }
  0xad   : > { %2689 = vmatpush3.msra.mxu0 %v3279_v52  ;;  %2724 = vmatpush3.msra.mxu1 %v3279_v52 }
  0xae   : > { %2690 = vmatprep.subr.mxu0 %v3279_v52  ;;  %2725 = vmatprep.subr.mxu1 %v3279_v52 }
  0xaf   : > { %2691 = vmatpush3.msra.mxu0 %v3279_v52  ;;  %2726 = vmatpush3.msra.mxu1 %v3279_v52 }
  0xb0   : > { %2692 = vmatprep.subr.mxu0 %v3279_v52  ;;  %2727 = vmatprep.subr.mxu1 %v3279_v52 }
  0xb1   : > { %2693 = vmatpush3.msra.mxu0 %v3279_v52  ;;  %2728 = vmatpush3.msra.mxu1 %v3279_v52 }
  0xb2   : > { %2694 = vmatprep.subr.mxu0 %v3279_v52  ;;  %2729 = vmatprep.subr.mxu1 %v3279_v52 }
  0xb3   : > { %2695 = vmatpush3.msra.mxu0 %v3279_v52  ;;  %2730 = vmatpush3.msra.mxu1 %v3279_v52 }
  0xb4   : > { %2696 = vmatprep.subr.mxu0 %v3279_v52  ;;  %2731 = vmatprep.subr.mxu1 %v3279_v52 }
  0xb5   : > { %2697 = vmatpush3.msra.mxu0 %v3279_v52  ;;  %2732 = vmatpush3.msra.mxu1 %v3279_v52 }
  0xb6   : > { %2736 = vmatprep.subr.mxu0 %v3279_v52  ;;  %2771 = vmatprep.subr.mxu1 %v3279_v52 }
 0x11a   : > { %v3686_v3 = vpop.f32.mrf.mxu0  ;;  %v3688_v53 = vpop.f32.mrf.mxu1 }
 0x11b   : > { %v1847_v32 = vmul.f32 %v3686_v3, %v3686_v3  ;;  %v1849_v33 = vmul.f32 %v3688_v53, %v3688_v53 }
 0x11c   : > { %v3695_v54 = vpop.f32.mrf.mxu0  ;;  %v3699_v56 = vpop.f32.mrf.mxu1 }
 0x11d   : > { %v2658_v55 = vpack.c.bf16 %v3695_v54, %v3686_v3  ;;  %1349 = vmatprep.mubr.f32.mxu0 %v3695_v54  ;;  %v2659_v57 = vpack.c.bf16 %v3699_v56, %v3688_v53  ;;  %1419 = vmatprep.mubr.f32.mxu1 %v3699_v56  ;;  %v1848_v30 = vmul.f32 %v3695_v54, %v3695_v54 }
 0x11e   : > { %v923_v58 = vpop.f32.mrf.mxu0  ;;  %1350 = vmatmul.mubr.f32.vlgmr.msra.gmra.mxu0 %v3686_v3  ;;  %v964_v59 = vpop.f32.mrf.mxu1  ;;  %1420 = vmatmul.mubr.f32.vlgmr.msra.gmra.mxu1 %v3688_v53  ;;  %v1850_v31 = vmul.f32 %v3699_v56, %v3699_v56 }
 0x11f   : > { %1277 = vst [vmem:[%s3693_s13] sm:$0xff] %v2658_v55  ;;  %2737 = vmatpush3.msra.mxu0 %v3279_v52  ;;  %1278 = vst [vmem:[%s3693_s13 + $0x8] sm:$0xff] %v2659_v57  ;;  %2772 = vmatpush3.msra.mxu1 %v3279_v52 }
 0x120   : > { %2738 = vmatprep.subr.mxu0 %v3279_v52  ;;  %v924_v60 = vpop.f32.mrf.mxu0  ;;  %2773 = vmatprep.subr.mxu1 %v3279_v52  ;;  %v965_v61 = vpop.f32.mrf.mxu1 }
 0x121   : > { %2739 = vmatpush3.msra.mxu0 %v3279_v52  ;;  %2774 = vmatpush3.msra.mxu1 %v3279_v52 }
 0x122   : > { %2740 = vmatprep.subr.mxu0 %v3279_v52  ;;  %2775 = vmatprep.subr.mxu1 %v3279_v52 }
 0x123   : > { %2741 = vmatpush3.msra.mxu0 %v3279_v52  ;;  %2776 = vmatpush3.msra.mxu1 %v3279_v52 }
 0x124   : > { %2742 = vmatprep.subr.mxu0 %v3279_v52  ;;  %2777 = vmatprep.subr.mxu1 %v3279_v52 }
 0x125   : > { %2743 = vmatpush3.msra.mxu0 %v3279_v52  ;;  %2778 = vmatpush3.msra.mxu1 %v3279_v52 }
 0x126   : > { %2744 = vmatprep.subr.mxu0 %v3279_v52  ;;  %2779 = vmatprep.subr.mxu1 %v3279_v52 }
 0x127   : > { %2745 = vmatpush3.msra.mxu0 %v3279_v52  ;;  %2780 = vmatpush3.msra.mxu1 %v3279_v52 }
 0x128   : > { %2746 = vmatprep.subr.mxu0 %v3279_v52  ;;  %2781 = vmatprep.subr.mxu1 %v3279_v52 }
 0x129   : > { %2747 = vmatpush3.msra.mxu0 %v3279_v52  ;;  %2782 = vmatpush3.msra.mxu1 %v3279_v52 }
 0x12a   : > { %2748 = vmatprep.subr.mxu0 %v3279_v52  ;;  %2783 = vmatprep.subr.mxu1 %v3279_v52 }
 0x12b   : > { %2749 = vmatpush3.msra.mxu0 %v3279_v52  ;;  %2784 = vmatpush3.msra.mxu1 %v3279_v52 }
 0x12c   : > { %2750 = vmatprep.subr.mxu0 %v3279_v52  ;;  %2785 = vmatprep.subr.mxu1 %v3279_v52 }
 0x12d   : > { %2751 = vmatpush3.msra.mxu0 %v3279_v52  ;;  %2786 = vmatpush3.msra.mxu1 %v3279_v52 }
 0x12e   : > { %2752 = vmatprep.subr.mxu0 %v3279_v52  ;;  %v3740_v62 = vpop.f32.mrf.mxu0  ;;  %2787 = vmatprep.subr.mxu1 %v3279_v52  ;;  %v3744_v63 = vpop.f32.mrf.mxu1 }
 0x12f   : > { %2753 = vmatpush3.msra.mxu0 %v3279_v52  ;;  %2788 = vmatpush3.msra.mxu1 %v3279_v52  ;;  %v1851_v36 = vmul.f32 %v3740_v62, %v3740_v62  ;;  %v1853_v37 = vmul.f32 %v3744_v63, %v3744_v63 }
 0x130   : > { %2754 = vmatprep.subr.mxu0 %v3279_v52  ;;  %v3748_v0 = vpop.f32.mrf.mxu0  ;;  %2789 = vmatprep.subr.mxu1 %v3279_v52  ;;  %v3754_v2 = vpop.f32.mrf.mxu1 }
 0x131   : > { %2755 = vmatpush3.msra.mxu0 %v3279_v52  ;;  %v2660_v1 = vpack.c.bf16 %v3748_v0, %v3740_v62  ;;  %2790 = vmatpush3.msra.mxu1 %v3279_v52  ;;  %v2661_v5 = vpack.c.bf16 %v3754_v2, %v3744_v63  ;;  %v1852_v34 = vmul.f32 %v3748_v0, %v3748_v0 }
 0x132   : > { %2756 = vmatprep.subr.mxu0 %v3279_v52  ;;  %v1005_v4 = vpop.f32.mrf.mxu0  ;;  %2791 = vmatprep.subr.mxu1 %v3279_v52  ;;  %v1046_v6 = vpop.f32.mrf.mxu1  ;;  %v1854_v35 = vmul.f32 %v3754_v2, %v3754_v2 }
 0x133   : > { %2757 = vmatpush3.msra.mxu0 %v3279_v52  ;;  %1279 = vst [vmem:[%s3693_s13 + $0x10] sm:$0xff] %v2660_v1  ;;  %2792 = vmatpush3.msra.mxu1 %v3279_v52  ;;  %1280 = vst [vmem:[%s3693_s13 + $0x18] sm:$0xff] %v2661_v5 }
 0x134   : > { %2758 = vmatprep.subr.mxu0 %v3279_v52  ;;  %v1006_v7 = vpop.f32.mrf.mxu0  ;;  %2793 = vmatprep.subr.mxu1 %v3279_v52  ;;  %v1047_v8 = vpop.f32.mrf.mxu1 }
 0x135   : > { %2759 = vmatpush3.msra.mxu0 %v3279_v52  ;;  %2794 = vmatpush3.msra.mxu1 %v3279_v52 }
 0x136   : > { %2760 = vmatprep.subr.mxu0 %v3279_v52  ;;  %2795 = vmatprep.subr.mxu1 %v3279_v52 }
 0x137   : > { %2761 = vmatpush3.msra.mxu0 %v3279_v52  ;;  %2796 = vmatpush3.msra.mxu1 %v3279_v52 }
 0x138   : > { %2762 = vmatprep.subr.mxu0 %v3279_v52  ;;  %2797 = vmatprep.subr.mxu1 %v3279_v52 }
 0x139   : > { %2763 = vmatpush3.msra.mxu0 %v3279_v52  ;;  %2798 = vmatpush3.msra.mxu1 %v3279_v52 }
 0x13a   : > { %2764 = vmatprep.subr.mxu0 %v3279_v52  ;;  %2799 = vmatprep.subr.mxu1 %v3279_v52 }
 0x13b   : > { %2765 = vmatpush3.msra.mxu0 %v3279_v52  ;;  %2800 = vmatpush3.msra.mxu1 %v3279_v52 }
 0x13c   : > { %2766 = vmatprep.subr.mxu0 %v3279_v52  ;;  %1489 = vmatprep.mubr.f32.mxu0 %v3748_v0 }
 0x13d   : > { %2801 = vmatprep.subr.mxu1 %v3279_v52  ;;  %2767 = vmatpush3.msra.mxu0 %v3279_v52 }
 0x13e   : > { %2802 = vmatpush3.msra.mxu1 %v3279_v52  ;;  %1559 = vmatprep.mubr.f32.mxu1 %v3754_v2 }
 0x13f   : > { %1490 = vmatmul.mubr.f32.vlgmr.msra.gmra.mxu0 %v3740_v62  ;;  %1560 = vmatmul.mubr.f32.vlgmr.msra.gmra.mxu1 %v3744_v63 }
 0x140   : > { %2806 = vmatprep.subr.mxu0 %v3279_v52  ;;  %2841 = vmatprep.subr.mxu1 %v3279_v52 }
 0x141   : > { %2807 = vmatpush3.msra.mxu0 %v3279_v52  ;;  %2842 = vmatpush3.msra.mxu1 %v3279_v52 }
 0x142   : > { %2808 = vmatprep.subr.mxu0 %v3279_v52  ;;  %v3794_v9 = vpop.f32.mrf.mxu0  ;;  %2843 = vmatprep.subr.mxu1 %v3279_v52  ;;  %v3798_v10 = vpop.f32.mrf.mxu1 }
 0x143   : > { %2809 = vmatpush3.msra.mxu0 %v3279_v52  ;;  %2844 = vmatpush3.msra.mxu1 %v3279_v52  ;;  %v1855_v40 = vmul.f32 %v3794_v9, %v3794_v9  ;;  %v1857_v41 = vmul.f32 %v3798_v10, %v3798_v10 }
 0x144   : > { %2810 = vmatprep.subr.mxu0 %v3279_v52  ;;  %v3802_v11 = vpop.f32.mrf.mxu0  ;;  %2845 = vmatprep.subr.mxu1 %v3279_v52  ;;  %v3808_v13 = vpop.f32.mrf.mxu1 }
 0x145   : > { %2811 = vmatpush3.msra.mxu0 %v3279_v52  ;;  %v2662_v12 = vpack.c.bf16 %v3802_v11, %v3794_v9  ;;  %2846 = vmatpush3.msra.mxu1 %v3279_v52  ;;  %v2663_v15 = vpack.c.bf16 %v3808_v13, %v3798_v10  ;;  %v1856_v38 = vmul.f32 %v3802_v11, %v3802_v11 }
 0x146   : > { %2812 = vmatprep.subr.mxu0 %v3279_v52  ;;  %v1087_v14 = vpop.f32.mrf.mxu0  ;;  %2847 = vmatprep.subr.mxu1 %v3279_v52  ;;  %v1128_v17 = vpop.f32.mrf.mxu1  ;;  %v1858_v39 = vmul.f32 %v3808_v13, %v3808_v13 }
 0x147   : > { %2813 = vmatpush3.msra.mxu0 %v3279_v52  ;;  %1281 = vst [vmem:[%s3693_s13 + $0x20] sm:$0xff] %v2662_v12  ;;  %2848 = vmatpush3.msra.mxu1 %v3279_v52  ;;  %1282 = vst [vmem:[%s3693_s13 + $0x28] sm:$0xff] %v2663_v15 }
 0x148   : > { %2814 = vmatprep.subr.mxu0 %v3279_v52  ;;  %v1088_v18 = vpop.f32.mrf.mxu0  ;;  %2849 = vmatprep.subr.mxu1 %v3279_v52  ;;  %v1129_v19 = vpop.f32.mrf.mxu1 }
 0x149   : > { %2815 = vmatpush3.msra.mxu0 %v3279_v52  ;;  %2850 = vmatpush3.msra.mxu1 %v3279_v52 }
 0x14a   : > { %2816 = vmatprep.subr.mxu0 %v3279_v52  ;;  %2851 = vmatprep.subr.mxu1 %v3279_v52 }
 0x14b   : > { %2817 = vmatpush3.msra.mxu0 %v3279_v52  ;;  %2852 = vmatpush3.msra.mxu1 %v3279_v52 }
 0x14c   : > { %2818 = vmatprep.subr.mxu0 %v3279_v52  ;;  %2853 = vmatprep.subr.mxu1 %v3279_v52 }
 0x14d   : > { %2819 = vmatpush3.msra.mxu0 %v3279_v52  ;;  %2854 = vmatpush3.msra.mxu1 %v3279_v52 }
 0x14e   : > { %2820 = vmatprep.subr.mxu0 %v3279_v52  ;;  %2855 = vmatprep.subr.mxu1 %v3279_v52 }
 0x14f   : > { %2821 = vmatpush3.msra.mxu0 %v3279_v52  ;;  %2856 = vmatpush3.msra.mxu1 %v3279_v52 }
 0x150   : > { %2822 = vmatprep.subr.mxu0 %v3279_v52  ;;  %2857 = vmatprep.subr.mxu1 %v3279_v52 }
 0x151   : > { %2823 = vmatpush3.msra.mxu0 %v3279_v52  ;;  %2858 = vmatpush3.msra.mxu1 %v3279_v52 }
 0x152   : > { %2824 = vmatprep.subr.mxu0 %v3279_v52  ;;  %2859 = vmatprep.subr.mxu1 %v3279_v52 }
 0x153   : > { %2825 = vmatpush3.msra.mxu0 %v3279_v52  ;;  %2860 = vmatpush3.msra.mxu1 %v3279_v52 }
 0x154   : > { %2826 = vmatprep.subr.mxu0 %v3279_v52  ;;  %2861 = vmatprep.subr.mxu1 %v3279_v52 }
 0x155   : > { %2827 = vmatpush3.msra.mxu0 %v3279_v52  ;;  %2862 = vmatpush3.msra.mxu1 %v3279_v52 }
 0x156   : > { %2828 = vmatprep.subr.mxu0 %v3279_v52  ;;  %v3848_v20 = vpop.f32.mrf.mxu0  ;;  %2863 = vmatprep.subr.mxu1 %v3279_v52  ;;  %v3852_v21 = vpop.f32.mrf.mxu1 }
 0x157   : > { %2829 = vmatpush3.msra.mxu0 %v3279_v52  ;;  %2864 = vmatpush3.msra.mxu1 %v3279_v52  ;;  %v1859_v44 = vmul.f32 %v3848_v20, %v3848_v20  ;;  %v1861_v45 = vmul.f32 %v3852_v21, %v3852_v21 }
 0x158   : > { %2830 = vmatprep.subr.mxu0 %v3279_v52  ;;  %v3856_v22 = vpop.f32.mrf.mxu0  ;;  %2865 = vmatprep.subr.mxu1 %v3279_v52  ;;  %v3862_v24 = vpop.f32.mrf.mxu1 }
 0x159   : > { %2831 = vmatpush3.msra.mxu0 %v3279_v52  ;;  %v2664_v23 = vpack.c.bf16 %v3856_v22, %v3848_v20  ;;  %2866 = vmatpush3.msra.mxu1 %v3279_v52  ;;  %v2665_v26 = vpack.c.bf16 %v3862_v24, %v3852_v21  ;;  %v1860_v42 = vmul.f32 %v3856_v22, %v3856_v22 }
 0x15a   : > { %2832 = vmatprep.subr.mxu0 %v3279_v52  ;;  %v1169_v25 = vpop.f32.mrf.mxu0  ;;  %2867 = vmatprep.subr.mxu1 %v3279_v52  ;;  %v1210_v27 = vpop.f32.mrf.mxu1  ;;  %v1862_v43 = vmul.f32 %v3862_v24, %v3862_v24 }
 0x15b   : > { %2833 = vmatpush3.msra.mxu0 %v3279_v52  ;;  %1283 = vst [vmem:[%s3693_s13 + $0x30] sm:$0xff] %v2664_v23  ;;  %2868 = vmatpush3.msra.mxu1 %v3279_v52  ;;  %1284 = vst [vmem:[%s3693_s13 + $0x38] sm:$0xff] %v2665_v26 }
 0x15c   : > { %2834 = vmatprep.subr.mxu0 %v3279_v52  ;;  %v1170_v28 = vpop.f32.mrf.mxu0  ;;  %2869 = vmatprep.subr.mxu1 %v3279_v52  ;;  %v1211_v29 = vpop.f32.mrf.mxu1 }
 0x15d   : > { %2835 = vmatpush3.msra.mxu0 %v3279_v52  ;;  %2870 = vmatpush3.msra.mxu1 %v3279_v52 }
 0x15e   : > { %2836 = vmatprep.subr.mxu0 %v3279_v52  ;;  %1629 = vmatprep.mubr.f32.mxu0 %v3802_v11 }
 0x15f   : > { %2871 = vmatprep.subr.mxu1 %v3279_v52  ;;  %2837 = vmatpush3.msra.mxu0 %v3279_v52 }
 0x160   : > { %2872 = vmatpush3.msra.mxu1 %v3279_v52  ;;  %1699 = vmatprep.mubr.f32.mxu1 %v3808_v13 }
 0x161   : > { %1630 = vmatmul.mubr.f32.vlgmr.msra.gmra.mxu0 %v3794_v9  ;;  %1700 = vmatmul.mubr.f32.vlgmr.msra.gmra.mxu1 %v3798_v10 }
 0x162   : > { %2876 = vmatprep.subr.mxu0 %v3279_v52  ;;  %2911 = vmatprep.subr.mxu1 %v3279_v52 }
 0x163   : > { %2877 = vmatpush3.msra.mxu0 %v3279_v52  ;;  %2912 = vmatpush3.msra.mxu1 %v3279_v52 }
 0x164   : > { %2878 = vmatprep.subr.mxu0 %v3279_v52  ;;  %2913 = vmatprep.subr.mxu1 %v3279_v52 }
 0x165   : > { %2879 = vmatpush3.msra.mxu0 %v3279_v52  ;;  %2914 = vmatpush3.msra.mxu1 %v3279_v52 }
 0x166   : > { %2880 = vmatprep.subr.mxu0 %v3279_v52  ;;  %2915 = vmatprep.subr.mxu1 %v3279_v52 }
 0x167   : > { %2881 = vmatpush3.msra.mxu0 %v3279_v52  ;;  %2916 = vmatpush3.msra.mxu1 %v3279_v52 }
 0x168   : > { %2882 = vmatprep.subr.mxu0 %v3279_v52  ;;  %2917 = vmatprep.subr.mxu1 %v3279_v52 }
 0x169   : > { %2883 = vmatpush3.msra.mxu0 %v3279_v52  ;;  %2918 = vmatpush3.msra.mxu1 %v3279_v52 }
 0x16a   : > { %2884 = vmatprep.subr.mxu0 %v3279_v52  ;;  %2919 = vmatprep.subr.mxu1 %v3279_v52 }
 0x16b   : > { %2885 = vmatpush3.msra.mxu0 %v3279_v52  ;;  %2920 = vmatpush3.msra.mxu1 %v3279_v52 }
 0x16c   : > { %2886 = vmatprep.subr.mxu0 %v3279_v52  ;;  %2921 = vmatprep.subr.mxu1 %v3279_v52 }
 0x16d   : > { %2887 = vmatpush3.msra.mxu0 %v3279_v52  ;;  %2922 = vmatpush3.msra.mxu1 %v3279_v52 }
 0x16e   : > { %2888 = vmatprep.subr.mxu0 %v3279_v52  ;;  %2923 = vmatprep.subr.mxu1 %v3279_v52 }
 0x16f   : > { %2889 = vmatpush3.msra.mxu0 %v3279_v52  ;;  %2924 = vmatpush3.msra.mxu1 %v3279_v52 }
 0x170   : > { %2890 = vmatprep.subr.mxu0 %v3279_v52  ;;  %2925 = vmatprep.subr.mxu1 %v3279_v52 }
 0x171   : > { %2891 = vmatpush3.msra.mxu0 %v3279_v52  ;;  %2926 = vmatpush3.msra.mxu1 %v3279_v52 }
 0x172   : > { %2892 = vmatprep.subr.mxu0 %v3279_v52  ;;  %2927 = vmatprep.subr.mxu1 %v3279_v52 }
 0x173   : > { %2893 = vmatpush3.msra.mxu0 %v3279_v52  ;;  %2928 = vmatpush3.msra.mxu1 %v3279_v52 }
 0x174   : > { %2894 = vmatprep.subr.mxu0 %v3279_v52  ;;  %2929 = vmatprep.subr.mxu1 %v3279_v52 }
 0x175   : > { %2895 = vmatpush3.msra.mxu0 %v3279_v52  ;;  %2930 = vmatpush3.msra.mxu1 %v3279_v52 }
 0x176   : > { %2896 = vmatprep.subr.mxu0 %v3279_v52  ;;  %2931 = vmatprep.subr.mxu1 %v3279_v52 }
 0x177   : > { %2897 = vmatpush3.msra.mxu0 %v3279_v52  ;;  %2932 = vmatpush3.msra.mxu1 %v3279_v52 }
 0x178   : > { %2898 = vmatprep.subr.mxu0 %v3279_v52  ;;  %2933 = vmatprep.subr.mxu1 %v3279_v52 }
 0x179   : > { %2899 = vmatpush3.msra.mxu0 %v3279_v52  ;;  %2934 = vmatpush3.msra.mxu1 %v3279_v52 }
 0x17a   : > { %2900 = vmatprep.subr.mxu0 %v3279_v52  ;;  %2935 = vmatprep.subr.mxu1 %v3279_v52 }
 0x17b   : > { %2901 = vmatpush3.msra.mxu0 %v3279_v52  ;;  %2936 = vmatpush3.msra.mxu1 %v3279_v52 }
 0x17c   : > { %2902 = vmatprep.subr.mxu0 %v3279_v52  ;;  %2937 = vmatprep.subr.mxu1 %v3279_v52 }
 0x17d   : > { %2903 = vmatpush3.msra.mxu0 %v3279_v52  ;;  %2938 = vmatpush3.msra.mxu1 %v3279_v52 }
 0x17e   : > { %2904 = vmatprep.subr.mxu0 %v3279_v52  ;;  %2939 = vmatprep.subr.mxu1 %v3279_v52 }
 0x17f   : > { %2905 = vmatpush3.msra.mxu0 %v3279_v52  ;;  %2940 = vmatpush3.msra.mxu1 %v3279_v52 }
 0x180   : > { %2906 = vmatprep.subr.mxu0 %v3279_v52  ;;  %1769 = vmatprep.mubr.f32.mxu0 %v3856_v22 }
 0x181   : > { %2941 = vmatprep.subr.mxu1 %v3279_v52  ;;  %2907 = vmatpush3.msra.mxu0 %v3279_v52 }
 0x182   : > { %2942 = vmatpush3.msra.mxu1 %v3279_v52  ;;  %1839 = vmatprep.mubr.f32.mxu1 %v3862_v24 }
 0x183   : > { %1770 = vmatmul.mubr.f32.vlgmr.msra.gmra.mxu0 %v3848_v20  ;;  %1840 = vmatmul.mubr.f32.vlgmr.msra.gmra.mxu1 %v3852_v21 }
 0x184   : > { %2946 = vmatprep.subr.mxu0 %v3279_v52  ;;  %2981 = vmatprep.subr.mxu1 %v3279_v52 }
 0x185   : > { %2947 = vmatpush3.msra.mxu0 %v3279_v52  ;;  %1927 = vmatprep.mubr.f32.mxu0 %v1848_v30 }
 0x186   : > { %2982 = vmatpush3.msra.mxu1 %v3279_v52  ;;  %1997 = vmatprep.mubr.f32.mxu1 %v1850_v31 }
 0x187   : > { %2948 = vmatprep.subr.mxu0 %v3279_v52  ;;  %2983 = vmatprep.subr.mxu1 %v3279_v52 }
 0x188   : > { %2949 = vmatpush3.msra.mxu0 %v3279_v52  ;;  %2984 = vmatpush3.msra.mxu1 %v3279_v52 }
 0x189   : > { %2950 = vmatprep.subr.mxu0 %v3279_v52  ;;  %2985 = vmatprep.subr.mxu1 %v3279_v52 }
 0x18a   : > { %2951 = vmatpush3.msra.mxu0 %v3279_v52  ;;  %2986 = vmatpush3.msra.mxu1 %v3279_v52 }
 0x18b   : > { %2952 = vmatprep.subr.mxu0 %v3279_v52  ;;  %2987 = vmatprep.subr.mxu1 %v3279_v52 }
 0x18c   : > { %2953 = vmatpush3.msra.mxu0 %v3279_v52  ;;  %2988 = vmatpush3.msra.mxu1 %v3279_v52 }
 0x18d   : > { %2954 = vmatprep.subr.mxu0 %v3279_v52  ;;  %2989 = vmatprep.subr.mxu1 %v3279_v52 }
 0x18e   : > { %2955 = vmatpush3.msra.mxu0 %v3279_v52  ;;  %2990 = vmatpush3.msra.mxu1 %v3279_v52 }
 0x18f   : > { %2956 = vmatprep.subr.mxu0 %v3279_v52  ;;  %2991 = vmatprep.subr.mxu1 %v3279_v52 }
 0x190   : > { %2957 = vmatpush3.msra.mxu0 %v3279_v52  ;;  %2992 = vmatpush3.msra.mxu1 %v3279_v52 }
 0x191   : > { %2958 = vmatprep.subr.mxu0 %v3279_v52  ;;  %2993 = vmatprep.subr.mxu1 %v3279_v52 }
 0x192   : > { %2959 = vmatpush3.msra.mxu0 %v3279_v52  ;;  %2994 = vmatpush3.msra.mxu1 %v3279_v52 }
 0x193   : > { %2960 = vmatprep.subr.mxu0 %v3279_v52  ;;  %2995 = vmatprep.subr.mxu1 %v3279_v52 }
 0x194   : > { %2961 = vmatpush3.msra.mxu0 %v3279_v52  ;;  %2996 = vmatpush3.msra.mxu1 %v3279_v52 }
 0x195   : > { %2962 = vmatprep.subr.mxu0 %v3279_v52  ;;  %2997 = vmatprep.subr.mxu1 %v3279_v52 }
 0x196   : > { %2963 = vmatpush3.msra.mxu0 %v3279_v52  ;;  %2998 = vmatpush3.msra.mxu1 %v3279_v52 }
 0x197   : > { %2964 = vmatprep.subr.mxu0 %v3279_v52  ;;  %2999 = vmatprep.subr.mxu1 %v3279_v52 }
 0x198   : > { %2965 = vmatpush3.msra.mxu0 %v3279_v52  ;;  %3000 = vmatpush3.msra.mxu1 %v3279_v52 }
 0x199   : > { %2966 = vmatprep.subr.mxu0 %v3279_v52  ;;  %3001 = vmatprep.subr.mxu1 %v3279_v52 }
 0x19a   : > { %2967 = vmatpush3.msra.mxu0 %v3279_v52  ;;  %3002 = vmatpush3.msra.mxu1 %v3279_v52 }
 0x19b   : > { %2968 = vmatprep.subr.mxu0 %v3279_v52  ;;  %3003 = vmatprep.subr.mxu1 %v3279_v52 }
 0x19c   : > { %2969 = vmatpush3.msra.mxu0 %v3279_v52  ;;  %3004 = vmatpush3.msra.mxu1 %v3279_v52 }
 0x19d   : > { %2970 = vmatprep.subr.mxu0 %v3279_v52  ;;  %3005 = vmatprep.subr.mxu1 %v3279_v52 }
 0x19e   : > { %2971 = vmatpush3.msra.mxu0 %v3279_v52  ;;  %3006 = vmatpush3.msra.mxu1 %v3279_v52 }
 0x19f   : > { %2972 = vmatprep.subr.mxu0 %v3279_v52  ;;  %3007 = vmatprep.subr.mxu1 %v3279_v52 }
 0x1a0   : > { %2973 = vmatpush3.msra.mxu0 %v3279_v52  ;;  %3008 = vmatpush3.msra.mxu1 %v3279_v52 }
 0x1a1   : > { %2974 = vmatprep.subr.mxu0 %v3279_v52  ;;  %3009 = vmatprep.subr.mxu1 %v3279_v52 }
 0x1a2   : > { %2975 = vmatpush3.msra.mxu0 %v3279_v52  ;;  %3010 = vmatpush3.msra.mxu1 %v3279_v52 }
 0x1a3   : > { %2976 = vmatprep.subr.mxu0 %v3279_v52  ;;  %3011 = vmatprep.subr.mxu1 %v3279_v52 }
 0x1a4   : > { %2977 = vmatpush3.msra.mxu0 %v3279_v52  ;;  %3012 = vmatpush3.msra.mxu1 %v3279_v52 }
 0x1a5   : > { %1928 = vmatmul.mubr.f32.vlgmr.msra.gmra.mxu0 %v1847_v32  ;;  %1998 = vmatmul.mubr.f32.vlgmr.msra.gmra.mxu1 %v1849_v33 }
 0x1a6   : > { %3016 = vmatprep.subr.mxu0 %v3279_v52  ;;  %3051 = vmatprep.subr.mxu1 %v3279_v52 }
 0x1a7   : > { %3017 = vmatpush3.msra.mxu0 %v3279_v52  ;;  %2067 = vmatprep.mubr.f32.mxu0 %v1852_v34 }
 0x1a8   : > { %3052 = vmatpush3.msra.mxu1 %v3279_v52  ;;  %2137 = vmatprep.mubr.f32.mxu1 %v1854_v35 }
 0x1a9   : > { %3018 = vmatprep.subr.mxu0 %v3279_v52  ;;  %3053 = vmatprep.subr.mxu1 %v3279_v52 }
 0x1aa   : > { %3019 = vmatpush3.msra.mxu0 %v3279_v52  ;;  %3054 = vmatpush3.msra.mxu1 %v3279_v52 }
 0x1ab   : > { %3020 = vmatprep.subr.mxu0 %v3279_v52  ;;  %3055 = vmatprep.subr.mxu1 %v3279_v52 }
 0x1ac   : > { %3021 = vmatpush3.msra.mxu0 %v3279_v52  ;;  %3056 = vmatpush3.msra.mxu1 %v3279_v52 }
 0x1ad   : > { %3022 = vmatprep.subr.mxu0 %v3279_v52  ;;  %3057 = vmatprep.subr.mxu1 %v3279_v52 }
 0x1ae   : > { %3023 = vmatpush3.msra.mxu0 %v3279_v52  ;;  %3058 = vmatpush3.msra.mxu1 %v3279_v52 }
 0x1af   : > { %3024 = vmatprep.subr.mxu0 %v3279_v52  ;;  %3059 = vmatprep.subr.mxu1 %v3279_v52 }
 0x1b0   : > { %3025 = vmatpush3.msra.mxu0 %v3279_v52  ;;  %3060 = vmatpush3.msra.mxu1 %v3279_v52 }
 0x1b1   : > { %3026 = vmatprep.subr.mxu0 %v3279_v52  ;;  %3061 = vmatprep.subr.mxu1 %v3279_v52 }
 0x1b2   : > { %3027 = vmatpush3.msra.mxu0 %v3279_v52  ;;  %3062 = vmatpush3.msra.mxu1 %v3279_v52 }
 0x1b3   : > { %3028 = vmatprep.subr.mxu0 %v3279_v52  ;;  %3063 = vmatprep.subr.mxu1 %v3279_v52 }
 0x1b4   : > { %3029 = vmatpush3.msra.mxu0 %v3279_v52  ;;  %3064 = vmatpush3.msra.mxu1 %v3279_v52 }
 0x1b5   : > { %3030 = vmatprep.subr.mxu0 %v3279_v52  ;;  %3065 = vmatprep.subr.mxu1 %v3279_v52 }
 0x1b6   : > { %3031 = vmatpush3.msra.mxu0 %v3279_v52  ;;  %3066 = vmatpush3.msra.mxu1 %v3279_v52 }
 0x1b7   : > { %3032 = vmatprep.subr.mxu0 %v3279_v52  ;;  %3067 = vmatprep.subr.mxu1 %v3279_v52 }
 0x1b8   : > { %3033 = vmatpush3.msra.mxu0 %v3279_v52  ;;  %3068 = vmatpush3.msra.mxu1 %v3279_v52 }
 0x1b9   : > { %3034 = vmatprep.subr.mxu0 %v3279_v52  ;;  %3069 = vmatprep.subr.mxu1 %v3279_v52 }
 0x1ba   : > { %3035 = vmatpush3.msra.mxu0 %v3279_v52  ;;  %3070 = vmatpush3.msra.mxu1 %v3279_v52 }
 0x1bb   : > { %3036 = vmatprep.subr.mxu0 %v3279_v52  ;;  %3071 = vmatprep.subr.mxu1 %v3279_v52 }
 0x1bc   : > { %3037 = vmatpush3.msra.mxu0 %v3279_v52  ;;  %3072 = vmatpush3.msra.mxu1 %v3279_v52 }
 0x1bd   : > { %3038 = vmatprep.subr.mxu0 %v3279_v52  ;;  %3073 = vmatprep.subr.mxu1 %v3279_v52 }
 0x1be   : > { %3039 = vmatpush3.msra.mxu0 %v3279_v52  ;;  %3074 = vmatpush3.msra.mxu1 %v3279_v52 }
 0x1bf   : > { %3040 = vmatprep.subr.mxu0 %v3279_v52  ;;  %3075 = vmatprep.subr.mxu1 %v3279_v52 }
 0x1c0   : > { %3041 = vmatpush3.msra.mxu0 %v3279_v52  ;;  %3076 = vmatpush3.msra.mxu1 %v3279_v52 }
 0x1c1   : > { %3042 = vmatprep.subr.mxu0 %v3279_v52  ;;  %3077 = vmatprep.subr.mxu1 %v3279_v52 }
 0x1c2   : > { %3043 = vmatpush3.msra.mxu0 %v3279_v52  ;;  %3078 = vmatpush3.msra.mxu1 %v3279_v52 }
 0x1c3   : > { %3044 = vmatprep.subr.mxu0 %v3279_v52  ;;  %3079 = vmatprep.subr.mxu1 %v3279_v52 }
 0x1c4   : > { %3045 = vmatpush3.msra.mxu0 %v3279_v52  ;;  %3080 = vmatpush3.msra.mxu1 %v3279_v52 }
 0x1c5   : > { %3046 = vmatprep.subr.mxu0 %v3279_v52  ;;  %3081 = vmatprep.subr.mxu1 %v3279_v52 }
 0x1c6   : > { %3047 = vmatpush3.msra.mxu0 %v3279_v52  ;;  %3082 = vmatpush3.msra.mxu1 %v3279_v52 }
 0x1c7   : > { %2068 = vmatmul.mubr.f32.vlgmr.msra.gmra.mxu0 %v1851_v36  ;;  %2138 = vmatmul.mubr.f32.vlgmr.msra.gmra.mxu1 %v1853_v37 }
 0x1c8   : > { %3086 = vmatprep.subr.mxu0 %v3279_v52  ;;  %3121 = vmatprep.subr.mxu1 %v3279_v52 }
 0x1c9   : > { %3087 = vmatpush3.msra.mxu0 %v3279_v52  ;;  %2207 = vmatprep.mubr.f32.mxu0 %v1856_v38 }
 0x1ca   : > { %3122 = vmatpush3.msra.mxu1 %v3279_v52  ;;  %2277 = vmatprep.mubr.f32.mxu1 %v1858_v39 }
 0x1cb   : > { %3088 = vmatprep.subr.mxu0 %v3279_v52  ;;  %3123 = vmatprep.subr.mxu1 %v3279_v52 }
 0x1cc   : > { %3089 = vmatpush3.msra.mxu0 %v3279_v52  ;;  %3124 = vmatpush3.msra.mxu1 %v3279_v52 }
 0x1cd   : > { %3090 = vmatprep.subr.mxu0 %v3279_v52  ;;  %3125 = vmatprep.subr.mxu1 %v3279_v52 }
 0x1ce   : > { %3091 = vmatpush3.msra.mxu0 %v3279_v52  ;;  %3126 = vmatpush3.msra.mxu1 %v3279_v52 }
 0x1cf   : > { %3092 = vmatprep.subr.mxu0 %v3279_v52  ;;  %3127 = vmatprep.subr.mxu1 %v3279_v52 }
 0x1d0   : > { %3093 = vmatpush3.msra.mxu0 %v3279_v52  ;;  %3128 = vmatpush3.msra.mxu1 %v3279_v52 }
 0x1d1   : > { %3094 = vmatprep.subr.mxu0 %v3279_v52  ;;  %3129 = vmatprep.subr.mxu1 %v3279_v52 }
 0x1d2   : > { %3095 = vmatpush3.msra.mxu0 %v3279_v52  ;;  %3130 = vmatpush3.msra.mxu1 %v3279_v52 }
 0x1d3   : > { %3096 = vmatprep.subr.mxu0 %v3279_v52  ;;  %3131 = vmatprep.subr.mxu1 %v3279_v52 }
 0x1d4   : > { %3097 = vmatpush3.msra.mxu0 %v3279_v52  ;;  %3132 = vmatpush3.msra.mxu1 %v3279_v52 }
 0x1d5   : > { %3098 = vmatprep.subr.mxu0 %v3279_v52  ;;  %3133 = vmatprep.subr.mxu1 %v3279_v52 }
 0x1d6   : > { %3099 = vmatpush3.msra.mxu0 %v3279_v52  ;;  %3134 = vmatpush3.msra.mxu1 %v3279_v52 }
 0x1d7   : > { %3100 = vmatprep.subr.mxu0 %v3279_v52  ;;  %3135 = vmatprep.subr.mxu1 %v3279_v52 }
 0x1d8   : > { %3101 = vmatpush3.msra.mxu0 %v3279_v52  ;;  %3136 = vmatpush3.msra.mxu1 %v3279_v52 }
 0x1d9   : > { %3102 = vmatprep.subr.mxu0 %v3279_v52  ;;  %3137 = vmatprep.subr.mxu1 %v3279_v52 }
 0x1da   : > { %3103 = vmatpush3.msra.mxu0 %v3279_v52  ;;  %3138 = vmatpush3.msra.mxu1 %v3279_v52 }
 0x1db   : > { %3104 = vmatprep.subr.mxu0 %v3279_v52  ;;  %3139 = vmatprep.subr.mxu1 %v3279_v52 }
 0x1dc   : > { %3105 = vmatpush3.msra.mxu0 %v3279_v52  ;;  %3140 = vmatpush3.msra.mxu1 %v3279_v52 }
 0x1dd   : > { %3106 = vmatprep.subr.mxu0 %v3279_v52  ;;  %3141 = vmatprep.subr.mxu1 %v3279_v52 }
 0x1de   : > { %3107 = vmatpush3.msra.mxu0 %v3279_v52  ;;  %3142 = vmatpush3.msra.mxu1 %v3279_v52  ;;  %v2698_v46 = vpop.f32.mrf.mxu0  ;;  %v2733_v47 = vpop.f32.mrf.mxu1 }
 0x1df   : > { %3108 = vmatprep.subr.mxu0 %v3279_v52  ;;  %3143 = vmatprep.subr.mxu1 %v3279_v52 }
 0x1e0   : > { %3109 = vmatpush3.msra.mxu0 %v3279_v52  ;;  %3144 = vmatpush3.msra.mxu1 %v3279_v52  ;;  %v2699_v48 = vpop.f32.mrf.mxu0  ;;  %v2734_v16 = vpop.f32.mrf.mxu1 }
 0x1e1   : > { %3110 = vmatprep.subr.mxu0 %v3279_v52  ;;  %3145 = vmatprep.subr.mxu1 %v3279_v52  ;;  %v2700_v51 = vadd.f32 %v2699_v48, %v2698_v46  ;;  %v2735_v3 = vadd.f32 %v2734_v16, %v2733_v47 }
 0x1e2   : > { %3111 = vmatpush3.msra.mxu0 %v3279_v52  ;;  %3146 = vmatpush3.msra.mxu1 %v3279_v52 }
 0x1e3   : > { %3112 = vmatprep.subr.mxu0 %v3279_v52  ;;  %3147 = vmatprep.subr.mxu1 %v3279_v52  ;;  %v1422_v56 = vadd.f32 %v2735_v3, %v2700_v51 }
 0x1e4   : > { %3113 = vmatpush3.msra.mxu0 %v3279_v52  ;;  %3148 = vmatpush3.msra.mxu1 %v3279_v52 }
 0x1e5   : > { %3114 = vmatprep.subr.mxu0 %v3279_v52  ;;  %3149 = vmatprep.subr.mxu1 %v3279_v52 }
 0x1e6   : > { %3115 = vmatpush3.msra.mxu0 %v3279_v52  ;;  %3150 = vmatpush3.msra.mxu1 %v3279_v52 }
 0x1e7   : > { %3116 = vmatprep.subr.mxu0 %v3279_v52  ;;  %3151 = vmatprep.subr.mxu1 %v3279_v52 }
 0x1e8   : > { %3117 = vmatpush3.msra.mxu0 %v3279_v52  ;;  %3152 = vmatpush3.msra.mxu1 %v3279_v52 }
 0x1e9   : > { %2208 = vmatmul.mubr.f32.vlgmr.msra.gmra.mxu0 %v1855_v40  ;;  %2278 = vmatmul.mubr.f32.vlgmr.msra.gmra.mxu1 %v1857_v41 }
 0x1ea   : > { %3156 = vmatprep.subr.mxu0 %v3279_v52  ;;  %3191 = vmatprep.subr.mxu1 %v3279_v52 }
 0x1eb   : > { %3157 = vmatpush3.msra.mxu0 %v3279_v52  ;;  %2347 = vmatprep.mubr.f32.mxu0 %v1860_v42 }
 0x1ec   : > { %3192 = vmatpush3.msra.mxu1 %v3279_v52  ;;  %2417 = vmatprep.mubr.f32.mxu1 %v1862_v43 }
 0x1ed   : > { %3158 = vmatprep.subr.mxu0 %v3279_v52  ;;  %3193 = vmatprep.subr.mxu1 %v3279_v52 }
 0x1ee   : > { %3159 = vmatpush3.msra.mxu0 %v3279_v52  ;;  %3194 = vmatpush3.msra.mxu1 %v3279_v52 }
 0x1ef   : > { %3160 = vmatprep.subr.mxu0 %v3279_v52  ;;  %3195 = vmatprep.subr.mxu1 %v3279_v52 }
 0x1f0   : > { %3161 = vmatpush3.msra.mxu0 %v3279_v52  ;;  %3196 = vmatpush3.msra.mxu1 %v3279_v52 }
 0x1f1   : > { %3162 = vmatprep.subr.mxu0 %v3279_v52  ;;  %3197 = vmatprep.subr.mxu1 %v3279_v52 }
 0x1f2   : > { %3163 = vmatpush3.msra.mxu0 %v3279_v52  ;;  %3198 = vmatpush3.msra.mxu1 %v3279_v52 }
 0x1f3   : > { %3164 = vmatprep.subr.mxu0 %v3279_v52  ;;  %3199 = vmatprep.subr.mxu1 %v3279_v52 }
 0x1f4   : > { %3165 = vmatpush3.msra.mxu0 %v3279_v52  ;;  %3200 = vmatpush3.msra.mxu1 %v3279_v52 }
 0x1f5   : > { %3166 = vmatprep.subr.mxu0 %v3279_v52  ;;  %3201 = vmatprep.subr.mxu1 %v3279_v52 }
 0x1f6   : > { %3167 = vmatpush3.msra.mxu0 %v3279_v52  ;;  %3202 = vmatpush3.msra.mxu1 %v3279_v52 }
 0x1f7   : > { %3168 = vmatprep.subr.mxu0 %v3279_v52  ;;  %3203 = vmatprep.subr.mxu1 %v3279_v52 }
 0x1f8   : > { %3169 = vmatpush3.msra.mxu0 %v3279_v52  ;;  %3204 = vmatpush3.msra.mxu1 %v3279_v52 }
 0x1f9   : > { %3170 = vmatprep.subr.mxu0 %v3279_v52  ;;  %3205 = vmatprep.subr.mxu1 %v3279_v52 }
 0x1fa   : > { %3171 = vmatpush3.msra.mxu0 %v3279_v52  ;;  %3206 = vmatpush3.msra.mxu1 %v3279_v52 }
 0x1fb   : > { %3172 = vmatprep.subr.mxu0 %v3279_v52  ;;  %3207 = vmatprep.subr.mxu1 %v3279_v52 }
 0x1fc   : > { %3173 = vmatpush3.msra.mxu0 %v3279_v52  ;;  %3208 = vmatpush3.msra.mxu1 %v3279_v52 }
 0x1fd   : > { %3174 = vmatprep.subr.mxu0 %v3279_v52  ;;  %3209 = vmatprep.subr.mxu1 %v3279_v52 }
 0x1fe   : > { %3175 = vmatpush3.msra.mxu0 %v3279_v52  ;;  %3210 = vmatpush3.msra.mxu1 %v3279_v52 }
 0x1ff   : > { %3176 = vmatprep.subr.mxu0 %v3279_v52  ;;  %3211 = vmatprep.subr.mxu1 %v3279_v52  ;;  %v2768_v49 = vpop.f32.mrf.mxu0  ;;  %v2803_v53 = vpop.f32.mrf.mxu1 }
 0x200   : > { %3177 = vmatpush3.msra.mxu0 %v3279_v52  ;;  %3212 = vmatpush3.msra.mxu1 %v3279_v52 }
 0x201   : > { %3178 = vmatprep.subr.mxu0 %v3279_v52  ;;  %3213 = vmatprep.subr.mxu1 %v3279_v52  ;;  %v2769_v50 = vpop.f32.mrf.mxu0  ;;  %v2804_v57 = vpop.f32.mrf.mxu1 }
 0x202   : > { %3179 = vmatpush3.msra.mxu0 %v3279_v52  ;;  %3214 = vmatpush3.msra.mxu1 %v3279_v52  ;;  %v2770_v55 = vadd.f32 %v2769_v50, %v2768_v49  ;;  %v2805_v60 = vadd.f32 %v2804_v57, %v2803_v53 }
 0x203   : > { %3180 = vmatprep.subr.mxu0 %v3279_v52  ;;  %3215 = vmatprep.subr.mxu1 %v3279_v52 }
 0x204   : > { %3181 = vmatpush3.msra.mxu0 %v3279_v52  ;;  %3216 = vmatpush3.msra.mxu1 %v3279_v52  ;;  %v1492_v59 = vadd.f32 %v2770_v55, %v1422_v56 }
 0x205   : > { %3182 = vmatprep.subr.mxu0 %v3279_v52  ;;  %3217 = vmatprep.subr.mxu1 %v3279_v52 }
 0x206   : > { %3183 = vmatpush3.msra.mxu0 %v3279_v52  ;;  %3218 = vmatpush3.msra.mxu1 %v3279_v52  ;;  %v1562_v62 = vadd.f32 %v2805_v60, %v1492_v59 }
 0x207   : > { %3184 = vmatprep.subr.mxu0 %v3279_v52  ;;  %3219 = vmatprep.subr.mxu1 %v3279_v52 }
 0x208   : > { %3185 = vmatpush3.msra.mxu0 %v3279_v52  ;;  %3220 = vmatpush3.msra.mxu1 %v3279_v52 }
 0x209   : > { %3186 = vmatprep.subr.mxu0 %v3279_v52  ;;  %3221 = vmatprep.subr.mxu1 %v3279_v52 }
 0x20a   : > { %3187 = vmatpush3.msra.mxu0 %v3279_v52  ;;  %3222 = vmatpush3.msra.mxu1 %v3279_v52 }
 0x20b   : > { %2348 = vmatmul.mubr.f32.vlgmr.msra.gmra.mxu0 %v1859_v44  ;;  %2418 = vmatmul.mubr.f32.vlgmr.msra.gmra.mxu1 %v1861_v45 }
 0x221   : > { %v2838_v54 = vpop.f32.mrf.mxu0  ;;  %v2873_v52 = vpop.f32.mrf.mxu1 }
 0x223   : > { %v2839_v58 = vpop.f32.mrf.mxu0  ;;  %v2874_v63 = vpop.f32.mrf.mxu1 }
 0x224   : > { %v2840_v61 = vadd.f32 %v2839_v58, %v2838_v54  ;;  %v2875_v2 = vadd.f32 %v2874_v63, %v2873_v52 }
 0x226   : > { %v1632_v0 = vadd.f32 %v2840_v61, %v1562_v62 }
 0x228   : > { %v1702_v6 = vadd.f32 %v2875_v2, %v1632_v0 }
 0x243   : > { %v2908_v1 = vpop.f32.mrf.mxu0  ;;  %v2943_v4 = vpop.f32.mrf.mxu1 }
 0x245   : > { %v2909_v5 = vpop.f32.mrf.mxu0  ;;  %v2944_v8 = vpop.f32.mrf.mxu1 }
 0x246   : > { %v2910_v7 = vadd.f32 %v2909_v5, %v2908_v1  ;;  %v2945_v10 = vadd.f32 %v2944_v8, %v2943_v4 }
 0x248   : > { %v1772_v9 = vadd.f32 %v2910_v7, %v1702_v6 }
 0x24a   : > { %v1842_v11 = vadd.f32 %v2945_v10, %v1772_v9 }
 0x24c   : > { %1846 = vst.msk [vmem:[%s394_s20] sm:$0xff] %vm1845_vm1, %v1842_v11 }
 0x265   : > { %v2978_v12 = vpop.f32.mrf.mxu0  ;;  %v3013_v13 = vpop.f32.mrf.mxu1 }
 0x267   : > { %v2979_v14 = vpop.f32.mrf.mxu0  ;;  %v3014_v17 = vpop.f32.mrf.mxu1 }
 0x268   : > { %v2980_v19 = vadd.f32 %v2979_v14, %v2978_v12  ;;  %v3015_v20 = vadd.f32 %v3014_v17, %v3013_v13 }
 0x26a   : > { %v2000_v24 = vadd.f32 %v3015_v20, %v2980_v19 }
 0x287   : > { %v3048_v15 = vpop.f32.mrf.mxu0  ;;  %v3083_v21 = vpop.f32.mrf.mxu1 }
 0x289   : > { %v3049_v18 = vpop.f32.mrf.mxu0  ;;  %v3084_v25 = vpop.f32.mrf.mxu1 }
 0x28a   : > { %v3050_v23 = vadd.f32 %v3049_v18, %v3048_v15  ;;  %v3085_v29 = vadd.f32 %v3084_v25, %v3083_v21 }
 0x28c   : > { %v2070_v27 = vadd.f32 %v3050_v23, %v2000_v24 }
 0x28e   : > { %v2140_v31 = vadd.f32 %v3085_v29, %v2070_v27 }
 0x2a9   : > { %v3118_v22 = vpop.f32.mrf.mxu0  ;;  %v3153_v28 = vpop.f32.mrf.mxu1 }
 0x2ab   : > { %v3119_v26 = vpop.f32.mrf.mxu0  ;;  %v3154_v32 = vpop.f32.mrf.mxu1 }
 0x2ac   : > { %v3120_v30 = vadd.f32 %v3119_v26, %v3118_v22  ;;  %v3155_v35 = vadd.f32 %v3154_v32, %v3153_v28 }
 0x2ae   : > { %v2210_v33 = vadd.f32 %v3120_v30, %v2140_v31 }
 0x2b0   : > { %v2280_v38 = vadd.f32 %v3155_v35, %v2210_v33 }
 0x2cb   : > { %v3188_v34 = vpop.f32.mrf.mxu0  ;;  %v3223_v36 = vpop.f32.mrf.mxu1 }
 0x2cd   : > { %v3189_v37 = vpop.f32.mrf.mxu0  ;;  %v3224_v40 = vpop.f32.mrf.mxu1 }
 0x2ce   : > { %v3190_v39 = vadd.f32 %v3189_v37, %v3188_v34  ;;  %v3225_v42 = vadd.f32 %v3224_v40, %v3223_v36 }
 0x2d0   : > { %v2350_v41 = vadd.f32 %v3190_v39, %v2280_v38 }
 0x2d2   : > { %v2420_v43 = vadd.f32 %v3225_v42, %v2350_v41 }
 0x2d4   : > { %2423 = vst.msk [vmem:[%s398_s24] sm:$0xff] %vm1845_vm1, %v2420_v43 }
 0x2d5 PF: > { %p12_p10 = scmp.ge.s32.totalorder %s3324_s19, 4   ;;  %s4273_s15 = smov %s3272_s16 }
 0x2d6   : > { %s4274_s16 = smov %s3333_s22  ;;  %s4275_s17 = smov %s3324_s19 }
 0x2d7   :  { %14 = sbr.rel (!%p12_p10) target bundleno = 2 (0x2), region = 110 }

// kernel: discriminator_forward.8
= control target key start
LH: loop header
LB: loop body
LE: loop exit
PB: predicated region body
PF: predicated region fallthrough
CT: control target
= control target key end

     0   :  { %s484_s12 = smov 0   ;;  %s530_s0 = inlined_call_operand.vmem [shape: bf16[8,4096], index: 0, kind: input, shape index: {}]   ;;  %s531_s1 = inlined_call_operand.vmem [shape: f32[8,1], index: 1, kind: input, shape index: {}]   ;;  %s532_s2 = inlined_call_operand.vmem [shape: f32[8,1], index: 2, kind: input, shape index: {}]   ;;  %s533_s3 = inlined_call_operand.vmem [shape: bf16[8,4096], index: 3, kind: output, shape index: {}]  }
   0x1 LB: > { %s418_s13 = sadd.s32 4294967295, %s461_s12   ;;  %p422_p0 = scmp.ge.s32.totalorder %s461_s12, 1  ;;  %s461_s12 = sphi %s484_s12, %s13_s12  }
   0x2   : > { %p138_p1 = scmp.lt.s32.totalorder %s461_s12, 3 }
   0x4   : > { %p139_p2 = pnand %p422_p0, %p138_p1 }
   0x5   : > { %s423_s18 = sshll.u32 (!%p139_p2), %s418_s13, 4 }
   0x6   : > { %142 = sbr.rel (%p139_p2) target bundleno = 163 (0xa3), region = 32  ;;  %p163_p3 = scmp.lt.s32.totalorder (!%p139_p2), %s423_s18, 31 }
   0xb   : > { %v198_v0 = vld [vmem:[%s531_s1] sm:$0xff]  ;;  %v463_v1 = vmov 0   ;;  %s535_s18 = smov (!%p163_p3, %s423_s18), 31 }
   0xc   : > { %454 = vset.pattern.permute.xlu0 %v463_v1  ;;  %v220_v2 = vld [vmem:[%s532_s2] sm:$0xff]  ;;  %s424_s19 = sshll.u32 %s535_s18, 2 }
   0xd   : > { %201 = vperm.xlu0 %454, %v198_v0   ;;  %s166_s22 = scalar_lea.vmem %s530_s0, %s424_s19  ;;  %s172_s25 = scalar_lea.vmem %s533_s3, %s424_s19 }
   0xe   : > { %v174_v3 = vld [vmem:[%s166_s22] sm:$0xff]  ;;  %v175_v4 = vld [vmem:[%s166_s22 + $0x8] sm:$0xff]  ;;  %v176_v5 = vld [vmem:[%s166_s22 + $0x10] sm:$0xff] }
   0xf   : > { %v177_v6 = vld [vmem:[%s166_s22 + $0x18] sm:$0xff]  ;;  %v178_v7 = vld [vmem:[%s166_s22 + $0x20] sm:$0xff]  ;;  %v179_v8 = vld [vmem:[%s166_s22 + $0x28] sm:$0xff]  ;;  %v182_v11 = vunpack.c.l.bf16 %v174_v3  ;;  %v183_v12 = vunpack.c.h.bf16 %v174_v3  ;;  %v184_v13 = vunpack.c.l.bf16 %v175_v4  ;;  %v185_v14 = vunpack.c.h.bf16 %v175_v4 }
  0x10   : > { %v180_v9 = vld [vmem:[%s166_s22 + $0x30] sm:$0xff]  ;;  %v181_v10 = vld [vmem:[%s166_s22 + $0x38] sm:$0xff]  ;;  %v186_v15 = vunpack.c.l.bf16 %v176_v5  ;;  %v187_v16 = vunpack.c.h.bf16 %v176_v5  ;;  %v188_v17 = vunpack.c.l.bf16 %v177_v6  ;;  %v189_v18 = vunpack.c.h.bf16 %v177_v6 }
  0x11   : > { %223 = vperm.xlu0 %454, %v220_v2   ;;  %v190_v19 = vunpack.c.l.bf16 %v178_v7  ;;  %v191_v20 = vunpack.c.h.bf16 %v178_v7  ;;  %v192_v21 = vunpack.c.l.bf16 %v179_v8  ;;  %v193_v22 = vunpack.c.h.bf16 %v179_v8 }
  0x12   : > { %v194_v24 = vunpack.c.l.bf16 %v180_v9  ;;  %v195_v25 = vunpack.c.h.bf16 %v180_v9  ;;  %v196_v26 = vunpack.c.l.bf16 %v181_v10  ;;  %v197_v27 = vunpack.c.h.bf16 %v181_v10 }
  0x88   : > { %v202_v23 = vpop.permute.xlu0 %201 }
  0x89   : > { %v204_v28 = vmul.f32 %v202_v23, %v182_v11  ;;  %v205_v29 = vmul.f32 %v202_v23, %v183_v12  ;;  %v206_v30 = vmul.f32 %v202_v23, %v184_v13  ;;  %v207_v31 = vmul.f32 %v202_v23, %v185_v14 }
  0x8a   : > { %v208_v32 = vmul.f32 %v202_v23, %v186_v15  ;;  %v209_v33 = vmul.f32 %v202_v23, %v187_v16  ;;  %v210_v34 = vmul.f32 %v202_v23, %v188_v17  ;;  %v211_v35 = vmul.f32 %v202_v23, %v189_v18 }
  0x8b   : > { %v212_v36 = vmul.f32 %v202_v23, %v190_v19  ;;  %v213_v37 = vmul.f32 %v202_v23, %v191_v20  ;;  %v214_v38 = vmul.f32 %v202_v23, %v192_v21  ;;  %v215_v39 = vmul.f32 %v202_v23, %v193_v22 }
  0x8c   : > { %v224_v40 = vpop.permute.xlu0 %223  ;;  %v216_v41 = vmul.f32 %v202_v23, %v194_v24  ;;  %v217_v42 = vmul.f32 %v202_v23, %v195_v25  ;;  %v218_v43 = vmul.f32 %v202_v23, %v196_v26  ;;  %v219_v44 = vmul.f32 %v202_v23, %v197_v27 }
  0x8d   : > { %v226_v45 = vadd.f32 %v224_v40, %v204_v28  ;;  %v227_v46 = vadd.f32 %v224_v40, %v205_v29  ;;  %v228_v47 = vadd.f32 %v224_v40, %v206_v30  ;;  %v229_v48 = vadd.f32 %v224_v40, %v207_v31 }
  0x8e   : > { %v230_v49 = vadd.f32 %v224_v40, %v208_v32  ;;  %v231_v50 = vadd.f32 %v224_v40, %v209_v33  ;;  %v232_v51 = vadd.f32 %v224_v40, %v210_v34  ;;  %v233_v52 = vadd.f32 %v224_v40, %v211_v35 }
  0x8f   : > { %v234_v53 = vadd.f32 %v224_v40, %v212_v36  ;;  %v235_v54 = vadd.f32 %v224_v40, %v213_v37  ;;  %v236_v55 = vadd.f32 %v224_v40, %v214_v38  ;;  %v237_v56 = vadd.f32 %v224_v40, %v215_v39 }
  0x90   : > { %v238_v57 = vadd.f32 %v224_v40, %v216_v41  ;;  %v239_v58 = vadd.f32 %v224_v40, %v217_v42  ;;  %v240_v59 = vadd.f32 %v224_v40, %v218_v43  ;;  %v241_v60 = vadd.f32 %v224_v40, %v219_v44 }
  0x91   : > { %vm242_vm0 = vcmp.ge.f32.partialorder %v226_v45, 0.0  ;;  %vm243_vm1 = vcmp.ge.f32.partialorder %v227_v46, 0.0  ;;  %vm244_vm2 = vcmp.ge.f32.partialorder %v228_v47, 0.0  ;;  %vm245_vm3 = vcmp.ge.f32.partialorder %v229_v48, 0.0 }
  0x92   : > { %vm246_vm4 = vcmp.ge.f32.partialorder %v230_v49, 0.0  ;;  %vm247_vm5 = vcmp.ge.f32.partialorder %v231_v50, 0.0  ;;  %vm248_vm6 = vcmp.ge.f32.partialorder %v232_v51, 0.0  ;;  %vm249_vm7 = vcmp.ge.f32.partialorder %v233_v52, 0.0 }
  0x93   : > { %vm250_vm8 = vcmp.ge.f32.partialorder %v234_v53, 0.0  ;;  %vm251_vm9 = vcmp.ge.f32.partialorder %v235_v54, 0.0  ;;  %vm252_vm10 = vcmp.ge.f32.partialorder %v236_v55, 0.0  ;;  %vm253_vm11 = vcmp.ge.f32.partialorder %v237_v56, 0.0 }
  0x94   : > { %vm254_vm12 = vcmp.ge.f32.partialorder %v238_v57, 0.0  ;;  %vm255_vm13 = vcmp.ge.f32.partialorder %v239_v58, 0.0  ;;  %vm256_vm14 = vcmp.ge.f32.partialorder %v240_v59, 0.0  ;;  %vm257_vm15 = vcmp.ge.f32.partialorder %v241_v60, 0.0 }
  0x95   : > { %v258_v61 = vmul.f32 0.2, %v226_v45  ;;  %v259_v62 = vmul.f32 0.2, %v227_v46  ;;  %v260_v63 = vmul.f32 0.2, %v228_v47 }
  0x96   : > { %v261_v0 = vmul.f32 0.2, %v229_v48  ;;  %v262_v1 = vmul.f32 0.2, %v230_v49  ;;  %v263_v2 = vmul.f32 0.2, %v231_v50 }
  0x97   : > { %v264_v3 = vmul.f32 0.2, %v232_v51  ;;  %v265_v4 = vmul.f32 0.2, %v233_v52  ;;  %v266_v5 = vmul.f32 0.2, %v234_v53  ;;  %v274_v6 = vsel %vm242_vm0, %v226_v45, %v258_v61 }
  0x98   : > { %v267_v7 = vmul.f32 0.2, %v235_v54  ;;  %v268_v8 = vmul.f32 0.2, %v236_v55  ;;  %v269_v9 = vmul.f32 0.2, %v237_v56  ;;  %v275_v10 = vsel %vm243_vm1, %v227_v46, %v259_v62 }
  0x99   : > { %v270_v11 = vmul.f32 0.2, %v238_v57  ;;  %v271_v12 = vmul.f32 0.2, %v239_v58  ;;  %v272_v13 = vmul.f32 0.2, %v240_v59  ;;  %v276_v14 = vsel %vm244_vm2, %v228_v47, %v260_v63 }
  0x9a   : > { %v273_v15 = vmul.f32 0.2, %v241_v60  ;;  %v277_v16 = vsel %vm245_vm3, %v229_v48, %v261_v0  ;;  %v278_v17 = vsel %vm246_vm4, %v230_v49, %v262_v1  ;;  %v279_v18 = vsel %vm247_vm5, %v231_v50, %v263_v2 }
  0x9b   : > { %v280_v19 = vsel %vm248_vm6, %v232_v51, %v264_v3  ;;  %v281_v20 = vsel %vm249_vm7, %v233_v52, %v265_v4  ;;  %v282_v21 = vsel %vm250_vm8, %v234_v53, %v266_v5  ;;  %v283_v22 = vsel %vm251_vm9, %v235_v54, %v267_v7 }
  0x9c   : > { %v284_v23 = vsel %vm252_vm10, %v236_v55, %v268_v8  ;;  %v285_v24 = vsel %vm253_vm11, %v237_v56, %v269_v9  ;;  %v286_v25 = vsel %vm254_vm12, %v238_v57, %v270_v11  ;;  %v287_v26 = vsel %vm255_vm13, %v239_v58, %v271_v12 }
  0x9d   : > { %v288_v27 = vsel %vm256_vm14, %v240_v59, %v272_v13  ;;  %v289_v28 = vsel %vm257_vm15, %v241_v60, %v273_v15  ;;  %v437_v29 = vpack.c.bf16 %v275_v10, %v274_v6  ;;  %v438_v30 = vpack.c.bf16 %v277_v16, %v276_v14 }
  0x9e   : > { %v439_v31 = vpack.c.bf16 %v279_v18, %v278_v17  ;;  %v440_v32 = vpack.c.bf16 %v281_v20, %v280_v19  ;;  %v441_v33 = vpack.c.bf16 %v283_v22, %v282_v21  ;;  %v442_v34 = vpack.c.bf16 %v285_v24, %v284_v23 }
  0x9f   : > { %v443_v35 = vpack.c.bf16 %v287_v26, %v286_v25  ;;  %v444_v36 = vpack.c.bf16 %v289_v28, %v288_v27  ;;  %354 = vst [vmem:[%s172_s25] sm:$0xff] %v437_v29  ;;  %355 = vst [vmem:[%s172_s25 + $0x8] sm:$0xff] %v438_v30 }
  0xa0   : > { %356 = vst [vmem:[%s172_s25 + $0x10] sm:$0xff] %v439_v31  ;;  %357 = vst [vmem:[%s172_s25 + $0x18] sm:$0xff] %v440_v32 }
  0xa1   : > { %358 = vst [vmem:[%s172_s25 + $0x20] sm:$0xff] %v441_v33  ;;  %359 = vst [vmem:[%s172_s25 + $0x28] sm:$0xff] %v442_v34 }
  0xa2   : > { %360 = vst [vmem:[%s172_s25 + $0x30] sm:$0xff] %v443_v35  ;;  %361 = vst [vmem:[%s172_s25 + $0x38] sm:$0xff] %v444_v36 }
  0xa3 PF: > { %s13_s12 = sadd.s32 1, %s461_s12  }
  0xa4   : > { %p10_p4 = scmp.ge.s32.totalorder %s13_s12, 4  }
  0xa6   :  { %12 = sbr.rel (!%p10_p4) target bundleno = 1 (0x1), region = 62 }

// kernel: discriminator_forward.9
= control target key start
LH: loop header
LB: loop body
LE: loop exit
PB: predicated region body
PF: predicated region fallthrough
CT: control target
= control target key end

     0   :  { %vm653_vm0 = vcmask 654336   ;;  %s1709_s1 = inlined_call_operand.vmem [shape: bf16[208,1024], index: 1, kind: input, shape index: {}]   ;;  %s1710_s0 = inlined_call_operand.vmem [shape: bf16[16,208], index: 0, kind: input, shape index: {}]   ;;  %s1711_s2 = inlined_call_operand.vmem [shape: f32[16,1], index: 2, kind: input, shape index: {}]   ;;  %s1712_s3 = inlined_call_operand.vmem [shape: f32[16,1], index: 3, kind: input, shape index: {}]   ;;  %s1713_s4 = inlined_call_operand.vmem [shape: bf16[16,1024], index: 4, kind: output, shape index: {}]  }
   0x1   :  { %v76_v0 = vld [vmem:[%s1709_s1 + $0x1c0] sm:$0xff]  ;;  %v77_v2 = vld [vmem:[%s1709_s1 + $0x1c8] sm:$0xff] }
   0x2   :  { %v80_v1 = vld [vmem:[%s1709_s1 + $0x1e0] sm:$0xff]  ;;  %v81_v4 = vld [vmem:[%s1709_s1 + $0x1e8] sm:$0xff] }
   0x3   :  { %v1124_v3 = vcombine.high %v76_v0, %v80_v1  ;;  %v1123_v5 = vcombine.low %v76_v0, %v80_v1  ;;  %v68_v6 = vld [vmem:[%s1709_s1 + $0x180] sm:$0xff]  ;;  %v1126_v8 = vcombine.high %v77_v2, %v81_v4  ;;  %v1125_v9 = vcombine.low %v77_v2, %v81_v4  ;;  %v69_v11 = vld [vmem:[%s1709_s1 + $0x188] sm:$0xff] }
   0x4   :  { %v72_v7 = vld [vmem:[%s1709_s1 + $0x1a0] sm:$0xff]  ;;  %v73_v12 = vld [vmem:[%s1709_s1 + $0x1a8] sm:$0xff] }
   0x5   :  { %v1116_v10 = vcombine.high %v68_v6, %v72_v7  ;;  %v60_v13 = vld [vmem:[%s1709_s1 + $0x140] sm:$0xff]  ;;  %657 = vmatprep.subr.bf16.mxu0 %v1124_v3  ;;  %v1118_v14 = vcombine.high %v69_v11, %v73_v12  ;;  %v61_v16 = vld [vmem:[%s1709_s1 + $0x148] sm:$0xff]  ;;  %700 = vmatprep.subr.bf16.mxu1 %v1126_v8  ;;  %v1115_v18 = vcombine.low %v68_v6, %v72_v7 }
   0x6   :  { %v64_v15 = vld [vmem:[%s1709_s1 + $0x160] sm:$0xff]  ;;  %v65_v17 = vld [vmem:[%s1709_s1 + $0x168] sm:$0xff]  ;;  %658 = vmatpush1.bf16.msra.mxu0 %v1123_v5  ;;  %701 = vmatpush1.bf16.msra.mxu1 %v1125_v9  ;;  %v1117_v19 = vcombine.low %v69_v11, %v73_v12 }
   0x7   :  { %659 = vmatprep.subr.bf16.mxu0 %v1116_v10  ;;  %v1108_v20 = vcombine.high %v60_v13, %v64_v15  ;;  %702 = vmatprep.subr.bf16.mxu1 %v1118_v14  ;;  %v1110_v21 = vcombine.high %v61_v16, %v65_v17  ;;  %v52_v22 = vld [vmem:[%s1709_s1 + $0x100] sm:$0xff]  ;;  %v53_v24 = vld [vmem:[%s1709_s1 + $0x108] sm:$0xff]  ;;  %v1107_v26 = vcombine.low %v60_v13, %v64_v15 }
   0x8   :  { %v56_v23 = vld [vmem:[%s1709_s1 + $0x120] sm:$0xff]  ;;  %v57_v25 = vld [vmem:[%s1709_s1 + $0x128] sm:$0xff]  ;;  %v1109_v27 = vcombine.low %v61_v16, %v65_v17 }
   0x9   :  { %v1100_v28 = vcombine.high %v52_v22, %v56_v23  ;;  %v1102_v29 = vcombine.high %v53_v24, %v57_v25  ;;  %v44_v30 = vld [vmem:[%s1709_s1 + $0xc0] sm:$0xff]  ;;  %v45_v32 = vld [vmem:[%s1709_s1 + $0xc8] sm:$0xff]  ;;  %v1099_v34 = vcombine.low %v52_v22, %v56_v23  ;;  %v1101_v35 = vcombine.low %v53_v24, %v57_v25 }
   0xa   :  { %660 = vmatpush1.bf16.msra.mxu0 %v1115_v18  ;;  %703 = vmatpush1.bf16.msra.mxu1 %v1117_v19  ;;  %v48_v31 = vld [vmem:[%s1709_s1 + $0xe0] sm:$0xff]  ;;  %v49_v33 = vld [vmem:[%s1709_s1 + $0xe8] sm:$0xff] }
   0xb   :  { %661 = vmatprep.subr.bf16.mxu0 %v1108_v20  ;;  %704 = vmatprep.subr.bf16.mxu1 %v1110_v21  ;;  %v1092_v36 = vcombine.high %v44_v30, %v48_v31  ;;  %v1094_v37 = vcombine.high %v45_v32, %v49_v33  ;;  %v36_v38 = vld [vmem:[%s1709_s1 + $0x80] sm:$0xff]  ;;  %v37_v40 = vld [vmem:[%s1709_s1 + $0x88] sm:$0xff]  ;;  %v1091_v42 = vcombine.low %v44_v30, %v48_v31 }
   0xc   :  { %v40_v39 = vld [vmem:[%s1709_s1 + $0xa0] sm:$0xff]  ;;  %v41_v41 = vld [vmem:[%s1709_s1 + $0xa8] sm:$0xff]  ;;  %v1093_v43 = vcombine.low %v45_v32, %v49_v33 }
   0xd   :  { %v1084_v44 = vcombine.high %v36_v38, %v40_v39  ;;  %v1086_v45 = vcombine.high %v37_v40, %v41_v41  ;;  %v28_v46 = vld [vmem:[%s1709_s1 + $0x40] sm:$0xff]  ;;  %v29_v49 = vld [vmem:[%s1709_s1 + $0x48] sm:$0xff]  ;;  %v1083_v51 = vcombine.low %v36_v38, %v40_v39  ;;  %v1085_v52 = vcombine.low %v37_v40, %v41_v41  ;;  %v78_v39 = vld [vmem:[%s1709_s1 + $0x1d0] sm:$0xff] }
   0xe   :  { %662 = vmatpush1.bf16.msra.mxu0 %v1107_v26  ;;  %705 = vmatpush1.bf16.msra.mxu1 %v1109_v27  ;;  %v32_v47 = vld [vmem:[%s1709_s1 + $0x60] sm:$0xff]  ;;  %v33_v50 = vld [vmem:[%s1709_s1 + $0x68] sm:$0xff]  ;;  %v82_v40 = vld [vmem:[%s1709_s1 + $0x1f0] sm:$0xff] }
   0xf   :  { %663 = vmatprep.subr.bf16.mxu0 %v1100_v28  ;;  %706 = vmatprep.subr.bf16.mxu1 %v1102_v29  ;;  %v1308_v48 = vld [vmem:[%s1710_s0 + $0x4] ss:$8 sps:$4 sm:$0xff]   ;;  %v1076_v53 = vcombine.high %v28_v46, %v32_v47  ;;  %v1078_v54 = vcombine.high %v29_v49, %v33_v50  ;;  %v1075_v59 = vcombine.low %v28_v46, %v32_v47  ;;  %v79_v41 = vld [vmem:[%s1709_s1 + $0x1d8] sm:$0xff]  ;;  %v70_v47 = vld [vmem:[%s1709_s1 + $0x190] sm:$0xff] }
  0x10   :  { %1171 = vmatprep.mubr.msk.bf16.mxu0 %vm653_vm0, %v1308_v48  ;;  %v20_v55 = vld [vmem:[%s1709_s1] sm:$0xff]  ;;  %1172 = vmatprep.mubr.msk.bf16.mxu1 %vm653_vm0, %v1308_v48  ;;  %v21_v57 = vld [vmem:[%s1709_s1 + $0x8] sm:$0xff]  ;;  %v1077_v60 = vcombine.low %v29_v49, %v33_v50  ;;  %v74_v49 = vld [vmem:[%s1709_s1 + $0x1b0] sm:$0xff] }
  0x11   :  { %v24_v56 = vld [vmem:[%s1709_s1 + $0x20] sm:$0xff]  ;;  %v25_v58 = vld [vmem:[%s1709_s1 + $0x28] sm:$0xff] }
  0x12   :  { %664 = vmatpush1.bf16.msra.mxu0 %v1099_v34  ;;  %707 = vmatpush1.bf16.msra.mxu1 %v1101_v35  ;;  %v1068_v61 = vcombine.high %v20_v55, %v24_v56  ;;  %v1070_v62 = vcombine.high %v21_v57, %v25_v58  ;;  %v116_v63 = vld [vmem:[%s1709_s1 + $0x300] sm:$0xff]  ;;  %v117_v1 = vld [vmem:[%s1709_s1 + $0x308] sm:$0xff]  ;;  %v1067_v3 = vcombine.low %v20_v55, %v24_v56 }
  0x13   :  { %665 = vmatprep.subr.bf16.mxu0 %v1092_v36  ;;  %708 = vmatprep.subr.bf16.mxu1 %v1094_v37  ;;  %v120_v0 = vld [vmem:[%s1709_s1 + $0x320] sm:$0xff]  ;;  %v121_v2 = vld [vmem:[%s1709_s1 + $0x328] sm:$0xff]  ;;  %v1069_v4 = vcombine.low %v21_v57, %v25_v58  ;;  %v1120_v55 = vcombine.high %v70_v47, %v74_v49  ;;  %v62_v57 = vld [vmem:[%s1709_s1 + $0x150] sm:$0xff] }
  0x14   :  { %v1164_v5 = vcombine.high %v116_v63, %v120_v0  ;;  %v1166_v6 = vcombine.high %v117_v1, %v121_v2  ;;  %v108_v7 = vld [vmem:[%s1709_s1 + $0x2c0] sm:$0xff]  ;;  %v109_v9 = vld [vmem:[%s1709_s1 + $0x2c8] sm:$0xff]  ;;  %v1163_v11 = vcombine.low %v116_v63, %v120_v0  ;;  %v1165_v12 = vcombine.low %v117_v1, %v121_v2  ;;  %v66_v58 = vld [vmem:[%s1709_s1 + $0x170] sm:$0xff] }
  0x15   :  { %v112_v8 = vld [vmem:[%s1709_s1 + $0x2e0] sm:$0xff]  ;;  %v113_v10 = vld [vmem:[%s1709_s1 + $0x2e8] sm:$0xff]  ;;  %v1112_v63 = vcombine.high %v62_v57, %v66_v58  ;;  %v54_v1 = vld [vmem:[%s1709_s1 + $0x110] sm:$0xff] }
  0x16   :  { %666 = vmatpush1.bf16.msra.mxu0 %v1091_v42  ;;  %709 = vmatpush1.bf16.msra.mxu1 %v1093_v43  ;;  %v1156_v13 = vcombine.high %v108_v7, %v112_v8  ;;  %v1158_v14 = vcombine.high %v109_v9, %v113_v10  ;;  %v100_v15 = vld [vmem:[%s1709_s1 + $0x280] sm:$0xff]  ;;  %v101_v17 = vld [vmem:[%s1709_s1 + $0x288] sm:$0xff]  ;;  %v1155_v19 = vcombine.low %v108_v7, %v112_v8  ;;  %v83_v42 = vld [vmem:[%s1709_s1 + $0x1f8] sm:$0xff] }
  0x17   :  { %667 = vmatprep.subr.bf16.mxu0 %v1084_v44  ;;  %710 = vmatprep.subr.bf16.mxu1 %v1086_v45  ;;  %v104_v16 = vld [vmem:[%s1709_s1 + $0x2a0] sm:$0xff]  ;;  %v105_v18 = vld [vmem:[%s1709_s1 + $0x2a8] sm:$0xff]  ;;  %v1157_v20 = vcombine.low %v109_v9, %v113_v10  ;;  %v1128_v45 = vcombine.high %v78_v39, %v82_v40  ;;  %v1130_v46 = vcombine.high %v79_v41, %v83_v42  ;;  %v58_v2 = vld [vmem:[%s1709_s1 + $0x130] sm:$0xff] }
  0x18   :  { %v1148_v21 = vcombine.high %v100_v15, %v104_v16  ;;  %v1150_v22 = vcombine.high %v101_v17, %v105_v18  ;;  %v92_v23 = vld [vmem:[%s1709_s1 + $0x240] sm:$0xff]  ;;  %v93_v25 = vld [vmem:[%s1709_s1 + $0x248] sm:$0xff]  ;;  %v1147_v27 = vcombine.low %v100_v15, %v104_v16  ;;  %v1149_v28 = vcombine.low %v101_v17, %v105_v18  ;;  %v46_v9 = vld [vmem:[%s1709_s1 + $0xd0] sm:$0xff] }
  0x19   :  { %v96_v24 = vld [vmem:[%s1709_s1 + $0x260] sm:$0xff]  ;;  %v97_v26 = vld [vmem:[%s1709_s1 + $0x268] sm:$0xff]  ;;  %v1104_v7 = vcombine.high %v54_v1, %v58_v2  ;;  %v50_v10 = vld [vmem:[%s1709_s1 + $0xf0] sm:$0xff] }
  0x1a   :  { %668 = vmatpush1.bf16.msra.mxu0 %v1083_v51  ;;  %711 = vmatpush1.bf16.msra.mxu1 %v1085_v52  ;;  %v1140_v29 = vcombine.high %v92_v23, %v96_v24  ;;  %v1142_v30 = vcombine.high %v93_v25, %v97_v26  ;;  %v84_v31 = vld [vmem:[%s1709_s1 + $0x200] sm:$0xff]  ;;  %v85_v33 = vld [vmem:[%s1709_s1 + $0x208] sm:$0xff]  ;;  %v1139_v35 = vcombine.low %v92_v23, %v96_v24  ;;  %v71_v51 = vld [vmem:[%s1709_s1 + $0x198] sm:$0xff] }
  0x1b   :  { %669 = vmatprep.subr.bf16.mxu0 %v1076_v53  ;;  %712 = vmatprep.subr.bf16.mxu1 %v1078_v54  ;;  %v88_v32 = vld [vmem:[%s1709_s1 + $0x220] sm:$0xff]  ;;  %v89_v34 = vld [vmem:[%s1709_s1 + $0x228] sm:$0xff]  ;;  %v1141_v36 = vcombine.low %v93_v25, %v97_v26  ;;  %v75_v52 = vld [vmem:[%s1709_s1 + $0x1b8] sm:$0xff]  ;;  %v1127_v53 = vcombine.low %v78_v39, %v82_v40  ;;  %v1129_v54 = vcombine.low %v79_v41, %v83_v42 }
  0x1c   :  { %v1132_v37 = vcombine.high %v84_v31, %v88_v32  ;;  %v1134_v38 = vcombine.high %v85_v33, %v89_v34  ;;  %v1131_v43 = vcombine.low %v84_v31, %v88_v32  ;;  %v1133_v44 = vcombine.low %v85_v33, %v89_v34  ;;  %v1413_v50 = vld [vmem:[%s1710_s0] ss:$8 sps:$4 sm:$0xff]   ;;  %v38_v16 = vld [vmem:[%s1709_s1 + $0x90] sm:$0xff]  ;;  %v39_v18 = vld [vmem:[%s1709_s1 + $0x98] sm:$0xff] }
  0x1d   :  { %v1122_v56 = vcombine.high %v71_v51, %v75_v52  ;;  %v42_v17 = vld [vmem:[%s1709_s1 + $0xb0] sm:$0xff]  ;;  %v31_v26 = vld [vmem:[%s1709_s1 + $0x58] sm:$0xff] }
  0x1e   :  { %670 = vmatpush1.bf16.msra.mxu0 %v1075_v59  ;;  %713 = vmatpush1.bf16.msra.mxu1 %v1077_v60  ;;  %v63_v59 = vld [vmem:[%s1709_s1 + $0x158] sm:$0xff]  ;;  %v30_v24 = vld [vmem:[%s1709_s1 + $0x50] sm:$0xff] }
  0x1f   :  { %671 = vmatprep.subr.bf16.mxu0 %v1068_v61  ;;  %714 = vmatprep.subr.bf16.mxu1 %v1070_v62  ;;  %v67_v60 = vld [vmem:[%s1709_s1 + $0x178] sm:$0xff]  ;;  %v1119_v61 = vcombine.low %v70_v47, %v74_v49  ;;  %v1121_v62 = vcombine.low %v71_v51, %v75_v52  ;;  %v34_v25 = vld [vmem:[%s1709_s1 + $0x70] sm:$0xff] }
  0x20   :  { %v1114_v0 = vcombine.high %v63_v59, %v67_v60  ;;  %v22_v32 = vld [vmem:[%s1709_s1 + $0x10] sm:$0xff]  ;;  %v23_v34 = vld [vmem:[%s1709_s1 + $0x18] sm:$0xff] }
  0x21   :  { %v26_v33 = vld [vmem:[%s1709_s1 + $0x30] sm:$0xff]  ;;  %v119_v42 = vld [vmem:[%s1709_s1 + $0x318] sm:$0xff] }
  0x22   :  { %672 = vmatpush1.bf16.msra.mxu0 %v1067_v3  ;;  %715 = vmatpush1.bf16.msra.mxu1 %v1069_v4  ;;  %v55_v3 = vld [vmem:[%s1709_s1 + $0x118] sm:$0xff]  ;;  %v118_v40 = vld [vmem:[%s1709_s1 + $0x310] sm:$0xff] }
  0x23   :  { %679 = vmatprep.subr.bf16.mxu0 %v1164_v5  ;;  %722 = vmatprep.subr.bf16.mxu1 %v1166_v6  ;;  %v59_v4 = vld [vmem:[%s1709_s1 + $0x138] sm:$0xff]  ;;  %v1111_v5 = vcombine.low %v62_v57, %v66_v58  ;;  %v1113_v6 = vcombine.low %v63_v59, %v67_v60  ;;  %v122_v41 = vld [vmem:[%s1709_s1 + $0x330] sm:$0xff] }
  0x24   :  { %v1106_v8 = vcombine.high %v55_v3, %v59_v4  ;;  %v110_v49 = vld [vmem:[%s1709_s1 + $0x2d0] sm:$0xff]  ;;  %v111_v52 = vld [vmem:[%s1709_s1 + $0x2d8] sm:$0xff] }
  0x25   :  { %v114_v51 = vld [vmem:[%s1709_s1 + $0x2f0] sm:$0xff]  ;;  %v103_v60 = vld [vmem:[%s1709_s1 + $0x298] sm:$0xff] }
  0x26   :  { %680 = vmatpush2.bf16.msra.mxu0 %v1163_v11  ;;  %723 = vmatpush2.bf16.msra.mxu1 %v1165_v12  ;;  %v51_v11 = vld [vmem:[%s1709_s1 + $0xf8] sm:$0xff]  ;;  %v1103_v12 = vcombine.low %v54_v1, %v58_v2  ;;  %v102_v58 = vld [vmem:[%s1709_s1 + $0x290] sm:$0xff] }
  0x27   :  { %681 = vmatprep.subr.bf16.mxu0 %v1156_v13  ;;  %724 = vmatprep.subr.bf16.mxu1 %v1158_v14  ;;  %v1105_v13 = vcombine.low %v55_v3, %v59_v4  ;;  %v1096_v14 = vcombine.high %v46_v9, %v50_v10  ;;  %v106_v59 = vld [vmem:[%s1709_s1 + $0x2b0] sm:$0xff]  ;;  %v95_v4 = vld [vmem:[%s1709_s1 + $0x258] sm:$0xff] }
  0x28   :  { %v94_v2 = vld [vmem:[%s1709_s1 + $0x250] sm:$0xff] }
  0x29   :  { %v98_v3 = vld [vmem:[%s1709_s1 + $0x270] sm:$0xff] }
  0x2a   :  { %682 = vmatpush2.bf16.msra.mxu0 %v1155_v19  ;;  %725 = vmatpush2.bf16.msra.mxu1 %v1157_v20  ;;  %v43_v19 = vld [vmem:[%s1709_s1 + $0xb8] sm:$0xff]  ;;  %v1095_v20 = vcombine.low %v46_v9, %v50_v10  ;;  %v86_v10 = vld [vmem:[%s1709_s1 + $0x210] sm:$0xff] }
  0x2b   :  { %683 = vmatprep.subr.bf16.mxu0 %v1148_v21  ;;  %726 = vmatprep.subr.bf16.mxu1 %v1150_v22  ;;  %v1088_v22 = vcombine.high %v38_v16, %v42_v17  ;;  %v1090_v23 = vcombine.high %v39_v18, %v43_v19 }
  0x2e   :  { %684 = vmatpush2.bf16.msra.mxu0 %v1147_v27  ;;  %727 = vmatpush2.bf16.msra.mxu1 %v1149_v28  ;;  %v35_v27 = vld [vmem:[%s1709_s1 + $0x78] sm:$0xff]  ;;  %v1087_v28 = vcombine.low %v38_v16, %v42_v17 }
  0x2f   :  { %685 = vmatprep.subr.bf16.mxu0 %v1140_v29  ;;  %728 = vmatprep.subr.bf16.mxu1 %v1142_v30  ;;  %v1089_v29 = vcombine.low %v39_v18, %v43_v19  ;;  %v1080_v30 = vcombine.high %v30_v24, %v34_v25  ;;  %v1082_v31 = vcombine.high %v31_v26, %v35_v27 }
  0x32   :  { %686 = vmatpush2.bf16.msra.mxu0 %v1139_v35  ;;  %729 = vmatpush2.bf16.msra.mxu1 %v1141_v36  ;;  %v27_v35 = vld [vmem:[%s1709_s1 + $0x38] sm:$0xff]  ;;  %v1079_v36 = vcombine.low %v30_v24, %v34_v25 }
  0x33   :  { %687 = vmatprep.subr.bf16.mxu0 %v1132_v37  ;;  %730 = vmatprep.subr.bf16.mxu1 %v1134_v38  ;;  %v1081_v37 = vcombine.low %v31_v26, %v35_v27  ;;  %v1072_v38 = vcombine.high %v22_v32, %v26_v33  ;;  %v1074_v39 = vcombine.high %v23_v34, %v27_v35 }
  0x36   :  { %688 = vmatpush2.bf16.msra.mxu0 %v1131_v43  ;;  %731 = vmatpush2.bf16.msra.mxu1 %v1133_v44  ;;  %v123_v43 = vld [vmem:[%s1709_s1 + $0x338] sm:$0xff]  ;;  %v1071_v44 = vcombine.low %v22_v32, %v26_v33 }
  0x37   :  { %743 = vmatprep.subr.bf16.mxu0 %v1128_v45  ;;  %786 = vmatprep.subr.bf16.mxu1 %v1130_v46  ;;  %v1073_v45 = vcombine.low %v23_v34, %v27_v35  ;;  %v1168_v46 = vcombine.high %v118_v40, %v122_v41  ;;  %v1170_v47 = vcombine.high %v119_v42, %v123_v43 }
  0x39   :  { %690 = vmatmul.mubr.bf16.vlgmr.msra.gmra.mxu0 %v1413_v50  ;;  %733 = vmatmul.mubr.bf16.vlgmr.msra.gmra.mxu1 %v1413_v50 }
  0x3a   :  { %744 = vmatpush1.bf16.msra.mxu0 %v1127_v53  ;;  %787 = vmatpush1.bf16.msra.mxu1 %v1129_v54  ;;  %v115_v53 = vld [vmem:[%s1709_s1 + $0x2f8] sm:$0xff]  ;;  %v1167_v54 = vcombine.low %v118_v40, %v122_v41 }
  0x3b   :  { %745 = vmatprep.subr.bf16.mxu0 %v1120_v55  ;;  %788 = vmatprep.subr.bf16.mxu1 %v1122_v56  ;;  %v1169_v55 = vcombine.low %v119_v42, %v123_v43  ;;  %v1160_v56 = vcombine.high %v110_v49, %v114_v51  ;;  %v1162_v57 = vcombine.high %v111_v52, %v115_v53 }
  0x3c   :  { %1173 = vmatprep.mubr.msk.bf16.mxu0 %vm653_vm0, %v1308_v48  ;;  %1174 = vmatprep.mubr.msk.bf16.mxu1 %vm653_vm0, %v1308_v48  ;;  %v47_v48 = vld [vmem:[%s1709_s1 + $0xd8] sm:$0xff] }
  0x3d   :  { %v1098_v15 = vcombine.high %v47_v48, %v51_v11  ;;  %v1097_v21 = vcombine.low %v47_v48, %v51_v11  ;;  %v90_v48 = vld [vmem:[%s1709_s1 + $0x230] sm:$0xff]  ;;  %v87_v11 = vld [vmem:[%s1709_s1 + $0x218] sm:$0xff] }
  0x3e   :  { %746 = vmatpush1.bf16.msra.mxu0 %v1119_v61  ;;  %789 = vmatpush1.bf16.msra.mxu1 %v1121_v62  ;;  %v107_v61 = vld [vmem:[%s1709_s1 + $0x2b8] sm:$0xff]  ;;  %v1159_v62 = vcombine.low %v110_v49, %v114_v51  ;;  %v1135_v17 = vcombine.low %v86_v10, %v90_v48 }
  0x3f   :  { %747 = vmatprep.subr.bf16.mxu0 %v1112_v63  ;;  %790 = vmatprep.subr.bf16.mxu1 %v1114_v0  ;;  %v1161_v63 = vcombine.low %v111_v52, %v115_v53  ;;  %v1152_v0 = vcombine.high %v102_v58, %v106_v59  ;;  %v1154_v1 = vcombine.high %v103_v60, %v107_v61 }
  0x42   :  { %748 = vmatpush1.bf16.msra.mxu0 %v1111_v5  ;;  %791 = vmatpush1.bf16.msra.mxu1 %v1113_v6  ;;  %v99_v5 = vld [vmem:[%s1709_s1 + $0x278] sm:$0xff]  ;;  %v1151_v6 = vcombine.low %v102_v58, %v106_v59 }
  0x43   :  { %749 = vmatprep.subr.bf16.mxu0 %v1104_v7  ;;  %792 = vmatprep.subr.bf16.mxu1 %v1106_v8  ;;  %v1153_v7 = vcombine.low %v103_v60, %v107_v61  ;;  %v1144_v8 = vcombine.high %v94_v2, %v98_v3  ;;  %v1146_v9 = vcombine.high %v95_v4, %v99_v5 }
  0x46   :  { %750 = vmatpush1.bf16.msra.mxu0 %v1103_v12  ;;  %793 = vmatpush1.bf16.msra.mxu1 %v1105_v13  ;;  %v91_v12 = vld [vmem:[%s1709_s1 + $0x238] sm:$0xff]  ;;  %v1143_v13 = vcombine.low %v94_v2, %v98_v3 }
  0x47   :  { %751 = vmatprep.subr.bf16.mxu0 %v1096_v14  ;;  %794 = vmatprep.subr.bf16.mxu1 %v1098_v15  ;;  %v1145_v14 = vcombine.low %v95_v4, %v99_v5  ;;  %v1136_v15 = vcombine.high %v86_v10, %v90_v48  ;;  %v1138_v16 = vcombine.high %v87_v11, %v91_v12 }
  0x48   :  { %v1137_v18 = vcombine.low %v87_v11, %v91_v12 }
  0x4a   :  { %752 = vmatpush1.bf16.msra.mxu0 %v1095_v20  ;;  %795 = vmatpush1.bf16.msra.mxu1 %v1097_v21 }
  0x4b   :  { %753 = vmatprep.subr.bf16.mxu0 %v1088_v22  ;;  %796 = vmatprep.subr.bf16.mxu1 %v1090_v23 }
  0x4e   :  { %754 = vmatpush1.bf16.msra.mxu0 %v1087_v28  ;;  %797 = vmatpush1.bf16.msra.mxu1 %v1089_v29 }
  0x4f   :  { %755 = vmatprep.subr.bf16.mxu0 %v1080_v30  ;;  %798 = vmatprep.subr.bf16.mxu1 %v1082_v31 }
  0x52   :  { %756 = vmatpush1.bf16.msra.mxu0 %v1079_v36  ;;  %799 = vmatpush1.bf16.msra.mxu1 %v1081_v37 }
  0x53   :  { %757 = vmatprep.subr.bf16.mxu0 %v1072_v38  ;;  %800 = vmatprep.subr.bf16.mxu1 %v1074_v39 }
  0x56   :  { %758 = vmatpush1.bf16.msra.mxu0 %v1071_v44  ;;  %801 = vmatpush1.bf16.msra.mxu1 %v1073_v45 }
  0x57   :  { %765 = vmatprep.subr.bf16.mxu0 %v1168_v46  ;;  %808 = vmatprep.subr.bf16.mxu1 %v1170_v47 }
  0x5a   :  { %766 = vmatpush2.bf16.msra.mxu0 %v1167_v54  ;;  %809 = vmatpush2.bf16.msra.mxu1 %v1169_v55 }
  0x5b   :  { %767 = vmatprep.subr.bf16.mxu0 %v1160_v56  ;;  %810 = vmatprep.subr.bf16.mxu1 %v1162_v57 }
  0x5e   :  { %768 = vmatpush2.bf16.msra.mxu0 %v1159_v62  ;;  %811 = vmatpush2.bf16.msra.mxu1 %v1161_v63 }
  0x5f   :  { %769 = vmatprep.subr.bf16.mxu0 %v1152_v0  ;;  %812 = vmatprep.subr.bf16.mxu1 %v1154_v1 }
  0x62   :  { %770 = vmatpush2.bf16.msra.mxu0 %v1151_v6  ;;  %813 = vmatpush2.bf16.msra.mxu1 %v1153_v7 }
  0x63   :  { %771 = vmatprep.subr.bf16.mxu0 %v1144_v8  ;;  %814 = vmatprep.subr.bf16.mxu1 %v1146_v9 }
  0x66   :  { %772 = vmatpush2.bf16.msra.mxu0 %v1143_v13  ;;  %815 = vmatpush2.bf16.msra.mxu1 %v1145_v14 }
  0x67   :  { %773 = vmatprep.subr.bf16.mxu0 %v1136_v15  ;;  %816 = vmatprep.subr.bf16.mxu1 %v1138_v16  ;;  %v1201_v15 = vmov 0  }
  0x68   :  { %1192 = vset.pattern.permute.xlu0 %v1201_v15  ;;  %1193 = vset.pattern.permute.xlu1 %v1201_v15 }
  0x6a   :  { %774 = vmatpush2.bf16.msra.mxu0 %v1135_v17  ;;  %817 = vmatpush2.bf16.msra.mxu1 %v1137_v18 }
  0x6d   :  { %776 = vmatmul.mubr.bf16.vlgmr.msra.gmra.mxu0 %v1413_v50  ;;  %819 = vmatmul.mubr.bf16.vlgmr.msra.gmra.mxu1 %v1413_v50 }
  0xf9   :  { %v1561_v19 = vpop.f32.mrf.mxu0  ;;  %v1567_v22 = vpop.f32.mrf.mxu1 }
  0xfa   :  { %v849_v23 = vmul.f32 %v1561_v19, %v1561_v19  ;;  %v851_v28 = vmul.f32 %v1567_v22, %v1567_v22 }
  0xfb   :  { %v1563_v20 = vpop.f32.mrf.mxu0  ;;  %v1577_v50 = vpop.f32.mrf.mxu1 }
  0xfc   :  { %v850_v24 = vmul.f32 %v1563_v20, %v1563_v20  ;;  %v829_v26 = vadd.f32 %v1563_v20, %v1561_v19  ;;  %v852_v35 = vmul.f32 %v1577_v50, %v1577_v50 }
  0xfd   :  { %v1565_v21 = vpop.f32.mrf.mxu0  ;;  %v1586_v32 = vpop.f32.mrf.mxu1 }
  0xfe   :  { %v865_v29 = vadd.f32 %v850_v24, %v849_v23  ;;  %v857_v30 = vmul.f32 %v1565_v21, %v1565_v21  ;;  %v830_v31 = vadd.f32 %v829_v26, %v1567_v22  ;;  %v859_v37 = vmul.f32 %v1586_v32, %v1586_v32 }
  0xff   :  { %v1573_v25 = vpop.f32.mrf.mxu0  ;;  %v1595_v39 = vpop.f32.mrf.mxu1 }
 0x100   :  { %v858_v27 = vmul.f32 %v1573_v25, %v1573_v25  ;;  %v838_v33 = vadd.f32 %v1573_v25, %v1565_v21  ;;  %v866_v36 = vadd.f32 %v865_v29, %v851_v28  ;;  %v831_v38 = vadd.f32 %v830_v31, %v1577_v50 }
 0x101   :  { %v860_v47 = vmul.f32 %v1595_v39, %v1595_v39 }
 0x102   :  { %v874_v34 = vadd.f32 %v858_v27, %v857_v30  ;;  %v839_v40 = vadd.f32 %v838_v33, %v1586_v32  ;;  %v867_v43 = vadd.f32 %v866_v36, %v852_v35 }
 0x104   :  { %v875_v41 = vadd.f32 %v874_v34, %v859_v37  ;;  %v840_v51 = vadd.f32 %v839_v40, %v1595_v39 }
 0x106   :  { %v876_v56 = vadd.f32 %v875_v41, %v860_v47 }
 0x12d   :  { %v1598_v42 = vpop.f32.mrf.mxu0  ;;  %v1603_v46 = vpop.f32.mrf.mxu1 }
 0x12e   :  { %v832_v44 = vadd.f32 %v831_v38, %v1598_v42  ;;  %v853_v45 = vmul.f32 %v1598_v42, %v1598_v42  ;;  %v855_v57 = vmul.f32 %v1603_v46, %v1603_v46  ;;  %v891_v38 = vld [vmem:[%s1711_s2] sm:$0xff] }
 0x12f   :  { %v1607_v49 = vpop.f32.mrf.mxu0  ;;  %v1613_v55 = vpop.f32.mrf.mxu1 }
 0x130   :  { %v868_v52 = vadd.f32 %v867_v43, %v853_v45  ;;  %v833_v53 = vadd.f32 %v832_v44, %v1607_v49  ;;  %v854_v54 = vmul.f32 %v1607_v49, %v1607_v49  ;;  %v856_v6 = vmul.f32 %v1613_v55, %v1613_v55  ;;  %v892_v43 = vld [vmem:[%s1711_s2 + $0x8] sm:$0xff] }
 0x131   :  { %v1617_v58 = vpop.f32.mrf.mxu0  ;;  %v1622_v61 = vpop.f32.mrf.mxu1 }
 0x132   :  { %v841_v59 = vadd.f32 %v840_v51, %v1617_v58  ;;  %v861_v60 = vmul.f32 %v1617_v58, %v1617_v58  ;;  %v834_v62 = vadd.f32 %v833_v53, %v1603_v46  ;;  %v869_v63 = vadd.f32 %v868_v52, %v854_v54  ;;  %v899_v51 = vld [vmem:[%s1712_s3] sm:$0xff]  ;;  %v900_v54 = vld [vmem:[%s1712_s3 + $0x8] sm:$0xff] }
 0x133   :  { %v1625_v0 = vpop.f32.mrf.mxu0  ;;  %v1631_v5 = vpop.f32.mrf.mxu1  ;;  %v863_v8 = vmul.f32 %v1622_v61, %v1622_v61 }
 0x134   :  { %v877_v1 = vadd.f32 %v876_v56, %v861_v60  ;;  %v842_v2 = vadd.f32 %v841_v59, %v1625_v0  ;;  %v862_v3 = vmul.f32 %v1625_v0, %v1625_v0  ;;  %v835_v4 = vadd.f32 %v834_v62, %v1613_v55 }
 0x135   :  { %v870_v7 = vadd.f32 %v869_v63, %v855_v57  ;;  %v864_v11 = vmul.f32 %v1631_v5, %v1631_v5 }
 0x136   :  { %v878_v9 = vadd.f32 %v877_v1, %v862_v3  ;;  %836 = vadd.xlane.f32.xlu0 %v835_v4  ;;  %v843_v10 = vadd.f32 %v842_v2, %v1622_v61 }
 0x137   :  { %v871_v48 = vadd.f32 %v870_v7, %v856_v6 }
 0x138   :  { %v844_v12 = vadd.f32 %v843_v10, %v1631_v5  ;;  %v879_v13 = vadd.f32 %v878_v9, %v863_v8 }
 0x139   :  { %872 = vadd.xlane.f32.xlu1 %v871_v48 }
 0x13a   :  { %845 = vadd.xlane.f32.xlu0 %v844_v12  ;;  %v880_v14 = vadd.f32 %v879_v13, %v864_v11 }
 0x13d   :  { %881 = vadd.xlane.f32.xlu1 %v880_v14 }
 0x1bf   :  { %v837_v16 = vpop.xlane.xlu0 %836 }
 0x1c0   :  { %v847_v17 = vmul.f32 0.0009765625, %v837_v16 }
 0x1c2   :  { %v885_v18 = vmul.f32 %v847_v17, %v847_v17  ;;  %v873_v23 = vpop.xlane.xlu1 %872 }
 0x1c3   :  { %v883_v24 = vmul.f32 0.0009765625, %v873_v23  ;;  %v846_v26 = vpop.xlane.xlu0 %845 }
 0x1c4   :  { %v848_v27 = vmul.f32 0.0009765625, %v846_v26 }
 0x1c5   :  { %v887_v28 = vsub.f32 %v883_v24, %v885_v18 }
 0x1c6   :  { %v886_v29 = vmul.f32 %v848_v27, %v848_v27  ;;  %v882_v30 = vpop.xlane.xlu1 %881 }
 0x1c7   :  { %v889_v31 = vmax.f32 %v887_v28, 0.0  ;;  %v884_v33 = vmul.f32 0.0009765625, %v882_v30 }
 0x1c9   :  { %v893_v34 = vadd.f32 1e-05, %v889_v31  ;;  %v888_v35 = vsub.f32 %v884_v33, %v886_v29 }
 0x1cb   :  { %1197 = vrsqrt.f32 %v893_v34  ;;  %v890_v36 = vmax.f32 %v888_v35, 0.0 }
 0x1cd   :  { %v894_v37 = vadd.f32 1e-05, %v890_v36 }
 0x1cf   :  { %1199 = vrsqrt.f32 %v894_v37 }
 0x1d8   :  { %v1198_v40 = vpop.eup %1197 }
 0x1d9   :  { %v897_v41 = vmul.f32 %v1198_v40, %v891_v38 }
 0x1db   :  { %907 = vperm.xlu0 %1192, %v897_v41   ;;  %v901_v47 = vmul.f32 %v897_v41, %v847_v17 }
 0x1dc   :  { %v1200_v44 = vpop.eup %1199 }
 0x1dd   :  { %v898_v45 = vmul.f32 %v1200_v44, %v892_v43  ;;  %v903_v52 = vsub.f32 %v899_v51, %v901_v47 }
 0x1df   :  { %912 = vperm.xlu1 %1193, %v898_v45   ;;  %v902_v53 = vmul.f32 %v898_v45, %v848_v27 }
 0x1e1   :  { %v904_v56 = vsub.f32 %v900_v54, %v902_v53 }
 0x1e3   :  { %933 = vperm.xlu1 %1193, %v903_v52  }
 0x1e7   :  { %938 = vperm.xlu1 %1193, %v904_v56  }
 0x256   :  { %v908_v57 = vpop.permute.xlu0 %907 }
 0x257   :  { %v915_v60 = vmul.f32 %v908_v57, %v1561_v19  ;;  %v916_v62 = vmul.f32 %v908_v57, %v1563_v20  ;;  %v917_v63 = vmul.f32 %v908_v57, %v1567_v22  ;;  %v918_v1 = vmul.f32 %v908_v57, %v1577_v50 }
 0x258   :  { %v919_v2 = vmul.f32 %v908_v57, %v1598_v42  ;;  %v920_v3 = vmul.f32 %v908_v57, %v1607_v49  ;;  %v921_v4 = vmul.f32 %v908_v57, %v1603_v46  ;;  %v922_v6 = vmul.f32 %v908_v57, %v1613_v55 }
 0x25a   :  { %v913_v59 = vpop.permute.xlu1 %912 }
 0x25b   :  { %v923_v7 = vmul.f32 %v913_v59, %v1565_v21  ;;  %v924_v8 = vmul.f32 %v913_v59, %v1573_v25  ;;  %v925_v19 = vmul.f32 %v913_v59, %v1586_v32  ;;  %v926_v20 = vmul.f32 %v913_v59, %v1595_v39 }
 0x25c   :  { %v927_v22 = vmul.f32 %v913_v59, %v1617_v58  ;;  %v928_v50 = vmul.f32 %v913_v59, %v1625_v0  ;;  %v929_v42 = vmul.f32 %v913_v59, %v1622_v61  ;;  %v930_v49 = vmul.f32 %v913_v59, %v1631_v5 }
 0x25e   :  { %v934_v9 = vpop.permute.xlu1 %933 }
 0x25f   :  { %v941_v46 = vadd.f32 %v934_v9, %v915_v60  ;;  %v942_v10 = vadd.f32 %v934_v9, %v916_v62  ;;  %v943_v55 = vadd.f32 %v934_v9, %v917_v63  ;;  %v944_v48 = vadd.f32 %v934_v9, %v918_v1 }
 0x260   :  { %v945_v21 = vadd.f32 %v934_v9, %v919_v2  ;;  %v946_v11 = vadd.f32 %v934_v9, %v920_v3  ;;  %v947_v25 = vadd.f32 %v934_v9, %v921_v4  ;;  %v948_v12 = vadd.f32 %v934_v9, %v922_v6 }
 0x261   :  { %vm957_vm1 = vcmp.ge.f32.partialorder %v941_v46, 0.0  ;;  %vm958_vm2 = vcmp.ge.f32.partialorder %v942_v10, 0.0  ;;  %vm959_vm3 = vcmp.ge.f32.partialorder %v943_v55, 0.0  ;;  %vm960_vm4 = vcmp.ge.f32.partialorder %v944_v48, 0.0 }
 0x262   :  { %vm961_vm5 = vcmp.ge.f32.partialorder %v945_v21, 0.0  ;;  %vm962_vm6 = vcmp.ge.f32.partialorder %v946_v11, 0.0  ;;  %vm963_vm7 = vcmp.ge.f32.partialorder %v947_v25, 0.0  ;;  %vm964_vm8 = vcmp.ge.f32.partialorder %v948_v12, 0.0  ;;  %v939_v32 = vpop.permute.xlu1 %938 }
 0x263   :  { %v973_v39 = vmul.f32 0.2, %v941_v46  ;;  %v974_v58 = vmul.f32 0.2, %v942_v10  ;;  %v975_v61 = vmul.f32 0.2, %v943_v55  ;;  %v949_v0 = vadd.f32 %v939_v32, %v923_v7 }
 0x264   :  { %v976_v5 = vmul.f32 0.2, %v944_v48  ;;  %v977_v13 = vmul.f32 0.2, %v945_v21  ;;  %v978_v14 = vmul.f32 0.2, %v946_v11  ;;  %v950_v15 = vadd.f32 %v939_v32, %v924_v8 }
 0x265   :  { %v979_v16 = vmul.f32 0.2, %v947_v25  ;;  %v980_v17 = vmul.f32 0.2, %v948_v12  ;;  %v989_v18 = vsel %vm957_vm1, %v941_v46, %v973_v39  ;;  %v990_v23 = vsel %vm958_vm2, %v942_v10, %v974_v58 }
 0x266   :  { %v991_v24 = vsel %vm959_vm3, %v943_v55, %v975_v61  ;;  %v992_v26 = vsel %vm960_vm4, %v944_v48, %v976_v5  ;;  %v993_v27 = vsel %vm961_vm5, %v945_v21, %v977_v13  ;;  %v994_v28 = vsel %vm962_vm6, %v946_v11, %v978_v14 }
 0x267   :  { %v995_v29 = vsel %vm963_vm7, %v947_v25, %v979_v16  ;;  %v996_v30 = vsel %vm964_vm8, %v948_v12, %v980_v17  ;;  %v1183_v31 = vpack.c.bf16 %v990_v23, %v989_v18  ;;  %v1184_v33 = vpack.c.bf16 %v992_v26, %v991_v24 }
 0x268   :  { %v1185_v34 = vpack.c.bf16 %v994_v28, %v993_v27  ;;  %v1186_v35 = vpack.c.bf16 %v996_v30, %v995_v29  ;;  %v951_v36 = vadd.f32 %v939_v32, %v925_v19  ;;  %v952_v37 = vadd.f32 %v939_v32, %v926_v20 }
 0x269   :  { %1053 = vst [vmem:[%s1713_s4] sm:$0xff] %v1183_v31  ;;  %1054 = vst [vmem:[%s1713_s4 + $0x8] sm:$0xff] %v1184_v33  ;;  %v953_v38 = vadd.f32 %v939_v32, %v927_v22  ;;  %v954_v40 = vadd.f32 %v939_v32, %v928_v50  ;;  %v955_v41 = vadd.f32 %v939_v32, %v929_v42  ;;  %vm965_vm9 = vcmp.ge.f32.partialorder %v949_v0, 0.0 }
 0x26a   :  { %v956_v43 = vadd.f32 %v939_v32, %v930_v49  ;;  %1055 = vst [vmem:[%s1713_s4 + $0x10] sm:$0xff] %v1185_v34  ;;  %1056 = vst [vmem:[%s1713_s4 + $0x18] sm:$0xff] %v1186_v35  ;;  %vm966_vm10 = vcmp.ge.f32.partialorder %v950_v15, 0.0  ;;  %vm967_vm11 = vcmp.ge.f32.partialorder %v951_v36, 0.0  ;;  %vm968_vm12 = vcmp.ge.f32.partialorder %v952_v37, 0.0 }
 0x26b   :  { %vm969_vm13 = vcmp.ge.f32.partialorder %v953_v38, 0.0  ;;  %vm970_vm14 = vcmp.ge.f32.partialorder %v954_v40, 0.0  ;;  %vm971_vm15 = vcmp.ge.f32.partialorder %v955_v41, 0.0  ;;  %v981_v44 = vmul.f32 0.2, %v949_v0 }
 0x26c   :  { %vm972_vm0 = vcmp.ge.f32.partialorder %v956_v43, 0.0  ;;  %v982_v45 = vmul.f32 0.2, %v950_v15  ;;  %v983_v47 = vmul.f32 0.2, %v951_v36 }
 0x26d   :  { %v984_v51 = vmul.f32 0.2, %v952_v37  ;;  %v985_v52 = vmul.f32 0.2, %v953_v38  ;;  %v986_v53 = vmul.f32 0.2, %v954_v40  ;;  %v997_v57 = vsel %vm965_vm9, %v949_v0, %v981_v44 }
 0x26e   :  { %v987_v54 = vmul.f32 0.2, %v955_v41  ;;  %v988_v56 = vmul.f32 0.2, %v956_v43  ;;  %v998_v59 = vsel %vm966_vm10, %v950_v15, %v982_v45  ;;  %v999_v60 = vsel %vm967_vm11, %v951_v36, %v983_v47 }
 0x26f   :  { %v1000_v62 = vsel %vm968_vm12, %v952_v37, %v984_v51  ;;  %v1001_v63 = vsel %vm969_vm13, %v953_v38, %v985_v52  ;;  %v1002_v1 = vsel %vm970_vm14, %v954_v40, %v986_v53  ;;  %v1187_v4 = vpack.c.bf16 %v998_v59, %v997_v57 }
 0x270   :  { %v1003_v2 = vsel %vm971_vm15, %v955_v41, %v987_v54  ;;  %v1004_v3 = vsel %vm972_vm0, %v956_v43, %v988_v56  ;;  %v1188_v6 = vpack.c.bf16 %v1000_v62, %v999_v60  ;;  %v1189_v7 = vpack.c.bf16 %v1002_v1, %v1001_v63 }
 0x271   :  { %v1190_v8 = vpack.c.bf16 %v1004_v3, %v1003_v2  ;;  %1057 = vst [vmem:[%s1713_s4 + $0x20] sm:$0xff] %v1187_v4 }
 0x272   :  { %1058 = vst [vmem:[%s1713_s4 + $0x28] sm:$0xff] %v1188_v6  ;;  %1059 = vst [vmem:[%s1713_s4 + $0x30] sm:$0xff] %v1189_v7 }
 0x273   :  { %1060 = vst [vmem:[%s1713_s4 + $0x38] sm:$0xff] %v1190_v8 }

// kernel: discriminator_forward.10
= control target key start
LH: loop header
LB: loop body
LE: loop exit
PB: predicated region body
PF: predicated region fallthrough
CT: control target
= control target key end

     0   :  { %vm341_vm0 = vcmask 130048   ;;  %s882_s1 = inlined_call_operand.vmem [shape: bf16[400,256], index: 1, kind: input, shape index: {}]   ;;  %s883_s0 = inlined_call_operand.vmem [shape: bf16[16,400], index: 0, kind: input, shape index: {}]   ;;  %s884_s2 = inlined_call_operand.vmem [shape: f32[16,1], index: 2, kind: input, shape index: {}]   ;;  %s885_s3 = inlined_call_operand.vmem [shape: f32[16,1], index: 3, kind: input, shape index: {}]   ;;  %s886_s4 = inlined_call_operand.vmem [shape: bf16[16,256], index: 4, kind: output, shape index: {}]  }
   0x1   :  { %v591_v0 = vld [vmem:[%s882_s1 + $0x74] ss:$8 sps:$4 sm:$0xff]   ;;  %v593_v1 = vld [vmem:[%s882_s1 + $0x70] ss:$8 sps:$4 sm:$0xff]   ;;  %v594_v2 = vld [vmem:[%s882_s1 + $0x64] ss:$8 sps:$4 sm:$0xff]  }
   0x2   :  { %345 = vmatprep.subr.bf16.mxu0 %v591_v0  ;;  %v596_v3 = vld [vmem:[%s882_s1 + $0x60] ss:$8 sps:$4 sm:$0xff]   ;;  %v597_v4 = vld [vmem:[%s882_s1 + $0x54] ss:$8 sps:$4 sm:$0xff]   ;;  %v599_v5 = vld [vmem:[%s882_s1 + $0x50] ss:$8 sps:$4 sm:$0xff]  }
   0x3   :  { %346 = vmatpush1.bf16.msra.mxu0 %v593_v1  ;;  %v600_v6 = vld [vmem:[%s882_s1 + $0x44] ss:$8 sps:$4 sm:$0xff]   ;;  %v609_v7 = vld [vmem:[%s882_s1 + $0x174] ss:$8 sps:$4 sm:$0xff]   ;;  %v611_v8 = vld [vmem:[%s882_s1 + $0x170] ss:$8 sps:$4 sm:$0xff]  }
   0x4   :  { %347 = vmatprep.subr.bf16.mxu0 %v594_v2  ;;  %v602_v9 = vld [vmem:[%s882_s1 + $0x40] ss:$8 sps:$4 sm:$0xff]   ;;  %388 = vmatprep.subr.bf16.mxu1 %v609_v7  ;;  %v615_v10 = vld [vmem:[%s882_s1 + $0x164] ss:$8 sps:$4 sm:$0xff]   ;;  %v603_v12 = vld [vmem:[%s882_s1 + $0x34] ss:$8 sps:$4 sm:$0xff]  }
   0x5   :  { %389 = vmatpush1.bf16.msra.mxu1 %v611_v8  ;;  %v617_v11 = vld [vmem:[%s882_s1 + $0x160] ss:$8 sps:$4 sm:$0xff]   ;;  %v605_v13 = vld [vmem:[%s882_s1 + $0x30] ss:$8 sps:$4 sm:$0xff]   ;;  %v621_v14 = vld [vmem:[%s882_s1 + $0x154] ss:$8 sps:$4 sm:$0xff]  }
   0x6   :  { %390 = vmatprep.subr.bf16.mxu1 %v615_v10  ;;  %v606_v15 = vld [vmem:[%s882_s1 + $0x24] ss:$8 sps:$4 sm:$0xff]   ;;  %v623_v16 = vld [vmem:[%s882_s1 + $0x150] ss:$8 sps:$4 sm:$0xff]   ;;  %v608_v18 = vld [vmem:[%s882_s1 + $0x20] ss:$8 sps:$4 sm:$0xff]  }
   0x7   :  { %348 = vmatpush1.bf16.msra.mxu0 %v596_v3  ;;  %v627_v17 = vld [vmem:[%s882_s1 + $0x144] ss:$8 sps:$4 sm:$0xff]   ;;  %v612_v19 = vld [vmem:[%s882_s1 + $0x14] ss:$8 sps:$4 sm:$0xff]   ;;  %v629_v20 = vld [vmem:[%s882_s1 + $0x140] ss:$8 sps:$4 sm:$0xff]  }
   0x8   :  { %349 = vmatprep.subr.bf16.mxu0 %v597_v4  ;;  %v633_v21 = vld [vmem:[%s882_s1 + $0x134] ss:$8 sps:$4 sm:$0xff]   ;;  %v614_v22 = vld [vmem:[%s882_s1 + $0x10] ss:$8 sps:$4 sm:$0xff]   ;;  %v618_v23 = vld [vmem:[%s882_s1 + $0x4] ss:$8 sps:$4 sm:$0xff]  }
   0x9   :  { %391 = vmatpush1.bf16.msra.mxu1 %v617_v11  ;;  %v635_v24 = vld [vmem:[%s882_s1 + $0x130] ss:$8 sps:$4 sm:$0xff]   ;;  %v639_v25 = vld [vmem:[%s882_s1 + $0x124] ss:$8 sps:$4 sm:$0xff]   ;;  %v620_v26 = vld [vmem:[%s882_s1] ss:$8 sps:$4 sm:$0xff]  }
   0xa   :  { %392 = vmatprep.subr.bf16.mxu1 %v621_v14  ;;  %v624_v27 = vld [vmem:[%s882_s1 + $0xf4] ss:$8 sps:$4 sm:$0xff]   ;;  %v641_v28 = vld [vmem:[%s882_s1 + $0x120] ss:$8 sps:$4 sm:$0xff]   ;;  %v626_v30 = vld [vmem:[%s882_s1 + $0xf0] ss:$8 sps:$4 sm:$0xff]  }
   0xb   :  { %350 = vmatpush1.bf16.msra.mxu0 %v599_v5  ;;  %v645_v29 = vld [vmem:[%s882_s1 + $0x114] ss:$8 sps:$4 sm:$0xff]   ;;  %v630_v31 = vld [vmem:[%s882_s1 + $0xe4] ss:$8 sps:$4 sm:$0xff]   ;;  %v647_v32 = vld [vmem:[%s882_s1 + $0x110] ss:$8 sps:$4 sm:$0xff]  }
   0xc   :  { %351 = vmatprep.subr.bf16.mxu0 %v600_v6  ;;  %v651_v33 = vld [vmem:[%s882_s1 + $0x104] ss:$8 sps:$4 sm:$0xff]   ;;  %v632_v35 = vld [vmem:[%s882_s1 + $0xe0] ss:$8 sps:$4 sm:$0xff]   ;;  %v636_v38 = vld [vmem:[%s882_s1 + $0xd4] ss:$8 sps:$4 sm:$0xff]  }
   0xd   :  { %393 = vmatpush1.bf16.msra.mxu1 %v623_v16  ;;  %v665_v34 = vld [vmem:[%s883_s0 + $0xc] ss:$16 sps:$4 sm:$0xff]   ;;  %v653_v36 = vld [vmem:[%s882_s1 + $0x100] ss:$8 sps:$4 sm:$0xff]   ;;  %v671_v37 = vld [vmem:[%s883_s0 + $0x4] ss:$16 sps:$4 sm:$0xff]  }
   0xe   :  { %394 = vmatprep.subr.bf16.mxu1 %v627_v17  ;;  %v657_v39 = vld [vmem:[%s882_s1 + $0x184] ss:$8 sps:$4 sm:$0xff]   ;;  %583 = vmatprep.mubr.msk.bf16.mxu1 %vm341_vm0, %v665_v34  ;;  %v638_v40 = vld [vmem:[%s882_s1 + $0xd0] ss:$8 sps:$4 sm:$0xff]   ;;  %v659_v41 = vld [vmem:[%s882_s1 + $0x180] ss:$8 sps:$4 sm:$0xff]  }
   0xf   :  { %352 = vmatpush1.bf16.msra.mxu0 %v602_v9  ;;  %377 = vmatprep.mubr.bf16.mxu0 %v671_v37  ;;  %v642_v42 = vld [vmem:[%s882_s1 + $0xc4] ss:$8 sps:$4 sm:$0xff]   ;;  %v663_v43 = vld [vmem:[%s883_s0 + $0x8] ss:$16 sps:$4 sm:$0xff]   ;;  %v648_v45 = vld [vmem:[%s882_s1 + $0xb4] ss:$8 sps:$4 sm:$0xff]  }
  0x10   :  { %353 = vmatprep.subr.bf16.mxu0 %v603_v12  ;;  %v644_v44 = vld [vmem:[%s882_s1 + $0xc0] ss:$8 sps:$4 sm:$0xff]   ;;  %v650_v46 = vld [vmem:[%s882_s1 + $0xb0] ss:$8 sps:$4 sm:$0xff]   ;;  %v654_v47 = vld [vmem:[%s882_s1 + $0xa4] ss:$8 sps:$4 sm:$0xff]  }
  0x11   :  { %395 = vmatpush1.bf16.msra.mxu1 %v629_v20  ;;  %v656_v48 = vld [vmem:[%s882_s1 + $0xa0] ss:$8 sps:$4 sm:$0xff]   ;;  %v660_v49 = vld [vmem:[%s882_s1 + $0x94] ss:$8 sps:$4 sm:$0xff]   ;;  %v662_v50 = vld [vmem:[%s882_s1 + $0x90] ss:$8 sps:$4 sm:$0xff]  }
  0x12   :  { %396 = vmatprep.subr.bf16.mxu1 %v633_v21  ;;  %v666_v51 = vld [vmem:[%s882_s1 + $0x84] ss:$8 sps:$4 sm:$0xff]   ;;  %v668_v52 = vld [vmem:[%s882_s1 + $0x80] ss:$8 sps:$4 sm:$0xff]   ;;  %v676_v10 = vmov 0  }
  0x13   :  { %354 = vmatpush1.bf16.msra.mxu0 %v605_v13  ;;  %v669_v53 = vld [vmem:[%s883_s0] ss:$16 sps:$4 sm:$0xff]   ;;  %589 = vset.pattern.permute.xlu0 %v676_v10  ;;  %v466_v37 = vld [vmem:[%s885_s3 + $0x8] sm:$0xff] }
  0x14   :  { %355 = vmatprep.subr.bf16.mxu0 %v606_v15  ;;  %590 = vset.pattern.permute.xlu1 %v676_v10  ;;  %v465_v34 = vld [vmem:[%s885_s3] sm:$0xff] }
  0x15   :  { %397 = vmatpush1.bf16.msra.mxu1 %v635_v24 }
  0x16   :  { %398 = vmatprep.subr.bf16.mxu1 %v639_v25 }
  0x17   :  { %356 = vmatpush1.bf16.msra.mxu0 %v608_v18 }
  0x18   :  { %357 = vmatprep.subr.bf16.mxu0 %v612_v19 }
  0x19   :  { %399 = vmatpush1.bf16.msra.mxu1 %v641_v28 }
  0x1a   :  { %400 = vmatprep.subr.bf16.mxu1 %v645_v29 }
  0x1b   :  { %358 = vmatpush1.bf16.msra.mxu0 %v614_v22 }
  0x1c   :  { %359 = vmatprep.subr.bf16.mxu0 %v618_v23 }
  0x1d   :  { %401 = vmatpush1.bf16.msra.mxu1 %v647_v32 }
  0x1e   :  { %402 = vmatprep.subr.bf16.mxu1 %v651_v33 }
  0x1f   :  { %360 = vmatpush1.bf16.msra.mxu0 %v620_v26 }
  0x20   :  { %361 = vmatprep.subr.bf16.mxu0 %v624_v27  ;;  %v457_v27 = vld [vmem:[%s884_s2] sm:$0xff] }
  0x21   :  { %403 = vmatpush1.bf16.msra.mxu1 %v653_v36 }
  0x22   :  { %418 = vmatprep.subr.bf16.mxu1 %v657_v39 }
  0x23   :  { %362 = vmatpush2.bf16.msra.mxu0 %v626_v30  ;;  %v458_v30 = vld [vmem:[%s884_s2 + $0x8] sm:$0xff] }
  0x24   :  { %363 = vmatprep.subr.bf16.mxu0 %v630_v31 }
  0x25   :  { %419 = vmatpush2.bf16.msra.mxu1 %v659_v41 }
  0x27   :  { %364 = vmatpush2.bf16.msra.mxu0 %v632_v35 }
  0x28   :  { %365 = vmatprep.subr.bf16.mxu0 %v636_v38  ;;  %421 = vmatmul.mubr.bf16.vlgmr.msra.gmra.mxu1 %v663_v43 }
  0x2b   :  { %366 = vmatpush2.bf16.msra.mxu0 %v638_v40 }
  0x2c   :  { %367 = vmatprep.subr.bf16.mxu0 %v642_v42 }
  0x2f   :  { %368 = vmatpush2.bf16.msra.mxu0 %v644_v44 }
  0x30   :  { %369 = vmatprep.subr.bf16.mxu0 %v648_v45 }
  0x33   :  { %370 = vmatpush2.bf16.msra.mxu0 %v650_v46 }
  0x34   :  { %371 = vmatprep.subr.bf16.mxu0 %v654_v47 }
  0x37   :  { %372 = vmatpush2.bf16.msra.mxu0 %v656_v48 }
  0x38   :  { %373 = vmatprep.subr.bf16.mxu0 %v660_v49 }
  0x3b   :  { %374 = vmatpush2.bf16.msra.mxu0 %v662_v50 }
  0x3c   :  { %375 = vmatprep.subr.bf16.mxu0 %v666_v51 }
  0x3f   :  { %376 = vmatpush2.bf16.msra.mxu0 %v668_v52 }
  0x42   :  { %378 = vmatmul.mubr.bf16.vlgmr.msra.gmra.mxu0 %v669_v53 }
  0xe8   :  { %v422_v54 = vpop.f32.mrf.mxu1 }
  0xea   :  { %v424_v55 = vpop.f32.mrf.mxu1 }
  0xec   :  { %v426_v58 = vpop.f32.mrf.mxu1 }
  0xee   :  { %v428_v2 = vpop.f32.mrf.mxu1 }
 0x102   :  { %v379_v56 = vpop.f32.mrf.mxu0 }
 0x103   :  { %v423_v57 = vadd.f32 %v422_v54, %v379_v56 }
 0x104   :  { %v381_v59 = vpop.f32.mrf.mxu0 }
 0x105   :  { %v425_v60 = vadd.f32 %v424_v55, %v381_v59  ;;  %v439_v0 = vmul.f32 %v423_v57, %v423_v57 }
 0x106   :  { %v383_v61 = vpop.f32.mrf.mxu0 }
 0x107   :  { %v427_v62 = vadd.f32 %v426_v58, %v383_v61  ;;  %v431_v63 = vadd.f32 %v425_v60, %v423_v57  ;;  %v440_v1 = vmul.f32 %v425_v60, %v425_v60 }
 0x108   :  { %v385_v3 = vpop.f32.mrf.mxu0 }
 0x109   :  { %v429_v4 = vadd.f32 %v428_v2, %v385_v3  ;;  %432 = vadd.xlane.f32.xlu0 %v431_v63  ;;  %v443_v5 = vadd.f32 %v440_v1, %v439_v0  ;;  %v441_v7 = vmul.f32 %v427_v62, %v427_v62 }
 0x10b   :  { %444 = vadd.xlane.f32.xlu1 %v443_v5  ;;  %v434_v6 = vadd.f32 %v429_v4, %v427_v62  ;;  %v442_v8 = vmul.f32 %v429_v4, %v429_v4 }
 0x10d   :  { %435 = vadd.xlane.f32.xlu0 %v434_v6  ;;  %v446_v9 = vadd.f32 %v442_v8, %v441_v7 }
 0x10f   :  { %447 = vadd.xlane.f32.xlu1 %v446_v9 }
 0x192   :  { %v433_v11 = vpop.xlane.xlu0 %432 }
 0x193   :  { %v437_v12 = vmul.f32 0.00390625, %v433_v11 }
 0x194   :  { %v445_v13 = vpop.xlane.xlu1 %444 }
 0x195   :  { %v451_v14 = vmul.f32 %v437_v12, %v437_v12  ;;  %v449_v15 = vmul.f32 0.00390625, %v445_v13 }
 0x196   :  { %v436_v16 = vpop.xlane.xlu0 %435 }
 0x197   :  { %v453_v17 = vsub.f32 %v449_v15, %v451_v14  ;;  %v438_v18 = vmul.f32 0.00390625, %v436_v16 }
 0x198   :  { %v448_v19 = vpop.xlane.xlu1 %447 }
 0x199   :  { %v455_v20 = vmax.f32 %v453_v17, 0.0  ;;  %v452_v21 = vmul.f32 %v438_v18, %v438_v18  ;;  %v450_v22 = vmul.f32 0.00390625, %v448_v19 }
 0x19b   :  { %v459_v23 = vadd.f32 1e-05, %v455_v20  ;;  %v454_v24 = vsub.f32 %v450_v22, %v452_v21 }
 0x19d   :  { %672 = vrsqrt.f32 %v459_v23  ;;  %v456_v25 = vmax.f32 %v454_v24, 0.0 }
 0x19f   :  { %v460_v26 = vadd.f32 1e-05, %v456_v25 }
 0x1a1   :  { %674 = vrsqrt.f32 %v460_v26 }
 0x1aa   :  { %v673_v28 = vpop.eup %672 }
 0x1ab   :  { %v463_v29 = vmul.f32 %v673_v28, %v457_v27 }
 0x1ad   :  { %473 = vperm.xlu0 %589, %v463_v29   ;;  %v467_v33 = vmul.f32 %v463_v29, %v437_v12 }
 0x1ae   :  { %v675_v31 = vpop.eup %674 }
 0x1af   :  { %v464_v32 = vmul.f32 %v675_v31, %v458_v30  ;;  %v469_v35 = vsub.f32 %v465_v34, %v467_v33 }
 0x1b1   :  { %478 = vperm.xlu1 %590, %v464_v32   ;;  %v468_v36 = vmul.f32 %v464_v32, %v438_v18 }
 0x1b3   :  { %v470_v38 = vsub.f32 %v466_v37, %v468_v36 }
 0x1b5   :  { %487 = vperm.xlu1 %590, %v469_v35  }
 0x1b9   :  { %492 = vperm.xlu1 %590, %v470_v38  }
 0x228   :  { %v474_v39 = vpop.permute.xlu0 %473 }
 0x229   :  { %v481_v41 = vmul.f32 %v474_v39, %v423_v57  ;;  %v482_v42 = vmul.f32 %v474_v39, %v425_v60 }
 0x22c   :  { %v479_v40 = vpop.permute.xlu1 %478 }
 0x22d   :  { %v483_v46 = vmul.f32 %v479_v40, %v427_v62  ;;  %v484_v47 = vmul.f32 %v479_v40, %v429_v4 }
 0x230   :  { %v488_v43 = vpop.permute.xlu1 %487 }
 0x231   :  { %v495_v44 = vadd.f32 %v488_v43, %v481_v41  ;;  %v496_v45 = vadd.f32 %v488_v43, %v482_v42 }
 0x233   :  { %vm499_vm1 = vcmp.ge.f32.partialorder %v495_v44, 0.0  ;;  %vm500_vm2 = vcmp.ge.f32.partialorder %v496_v45, 0.0  ;;  %v503_v48 = vmul.f32 0.2, %v495_v44  ;;  %v504_v49 = vmul.f32 0.2, %v496_v45 }
 0x234   :  { %v493_v50 = vpop.permute.xlu1 %492 }
 0x235   :  { %v507_v51 = vsel %vm499_vm1, %v495_v44, %v503_v48  ;;  %v508_v52 = vsel %vm500_vm2, %v496_v45, %v504_v49  ;;  %v497_v53 = vadd.f32 %v493_v50, %v483_v46  ;;  %v498_v54 = vadd.f32 %v493_v50, %v484_v47 }
 0x236   :  { %v586_v55 = vpack.c.bf16 %v508_v52, %v507_v51 }
 0x237   :  { %vm501_vm3 = vcmp.ge.f32.partialorder %v497_v53, 0.0  ;;  %vm502_vm4 = vcmp.ge.f32.partialorder %v498_v54, 0.0  ;;  %v505_v56 = vmul.f32 0.2, %v497_v53  ;;  %v506_v57 = vmul.f32 0.2, %v498_v54 }
 0x238   :  { %523 = vst [vmem:[%s886_s4] sm:$0xff] %v586_v55 }
 0x239   :  { %v509_v58 = vsel %vm501_vm3, %v497_v53, %v505_v56  ;;  %v510_v59 = vsel %vm502_vm4, %v498_v54, %v506_v57 }
 0x23a   :  { %v587_v60 = vpack.c.bf16 %v510_v59, %v509_v58 }
 0x23c   :  { %524 = vst [vmem:[%s886_s4 + $0x8] sm:$0xff] %v587_v60 }

// kernel: discriminator_forward.11
= control target key start
LH: loop header
LB: loop body
LE: loop exit
PB: predicated region body
PF: predicated region fallthrough
CT: control target
= control target key end

     0   :  { %v651_v0 = vmov 0   ;;  %vm264_vm0 = vcmask 130048   ;;  %s843_s1 = inlined_call_operand.vmem [shape: bf16[400,128], index: 1, kind: input, shape index: {}]   ;;  %s844_s0 = inlined_call_operand.vmem [shape: bf16[32,400], index: 0, kind: input, shape index: {}]   ;;  %s845_s2 = inlined_call_operand.vmem [shape: f32[32,1], index: 2, kind: input, shape index: {}]   ;;  %s846_s3 = inlined_call_operand.vmem [shape: f32[32,1], index: 3, kind: input, shape index: {}]   ;;  %s847_s4 = inlined_call_operand.vmem [shape: bf16[32,128], index: 4, kind: output, shape index: {}]  }
   0x1   :  { %320 = vmatprep.subr.bf16.mxu1 %v651_v0  ;;  %v606_v1 = vld [vmem:[%s843_s1 + $0x78] sm:$0xff]   ;;  %604 = vset.pattern.permute.xlu0 %v651_v0  ;;  %v609_v4 = vld [vmem:[%s843_s1 + $0x70] sm:$0xff]   ;;  %v612_v7 = vld [vmem:[%s843_s1 + $0x68] sm:$0xff]  }
   0x2   :  { %v607_v2 = vld [vmem:[%s843_s1 + $0xb8] sm:$0xff]   ;;  %605 = vset.pattern.permute.xlu1 %v651_v0  ;;  %575 = vmatprep.subr.bf16.mxu0 %v606_v1  ;;  %v610_v5 = vld [vmem:[%s843_s1 + $0xb0] sm:$0xff]   ;;  %v613_v8 = vld [vmem:[%s843_s1 + $0xa8] sm:$0xff]  }
   0x3   :  { %v608_v3 = vld [vmem:[%s843_s1 + $0x38] sm:$0xff]   ;;  %321 = vmatpush1.bf16.msra.mxu1 %v607_v2  ;;  %v611_v6 = vld [vmem:[%s843_s1 + $0x30] sm:$0xff]   ;;  %v614_v9 = vld [vmem:[%s843_s1 + $0x28] sm:$0xff]  }
   0x4   :  { %576 = vmatpush3.bf16.msra.mxu0 %v608_v3  ;;  %322 = vmatprep.subr.bf16.mxu1 %v651_v0  ;;  %v615_v10 = vld [vmem:[%s843_s1 + $0x60] sm:$0xff]   ;;  %v618_v13 = vld [vmem:[%s843_s1 + $0x58] sm:$0xff]   ;;  %v621_v16 = vld [vmem:[%s843_s1 + $0x50] sm:$0xff]  }
   0x5   :  { %577 = vmatprep.subr.bf16.mxu0 %v609_v4  ;;  %v616_v11 = vld [vmem:[%s843_s1 + $0xa0] sm:$0xff]   ;;  %v619_v14 = vld [vmem:[%s843_s1 + $0x98] sm:$0xff]   ;;  %v622_v17 = vld [vmem:[%s843_s1 + $0x90] sm:$0xff]  }
   0x6   :  { %v617_v12 = vld [vmem:[%s843_s1 + $0x20] sm:$0xff]   ;;  %v620_v15 = vld [vmem:[%s843_s1 + $0x18] sm:$0xff]   ;;  %v623_v18 = vld [vmem:[%s843_s1 + $0x10] sm:$0xff]  }
   0x7   :  { %323 = vmatpush1.bf16.msra.mxu1 %v610_v5  ;;  %v624_v19 = vld [vmem:[%s843_s1 + $0x48] sm:$0xff]   ;;  %v627_v22 = vld [vmem:[%s843_s1 + $0x40] sm:$0xff]  }
   0x8   :  { %578 = vmatpush3.bf16.msra.mxu0 %v611_v6  ;;  %324 = vmatprep.subr.bf16.mxu1 %v651_v0  ;;  %v625_v20 = vld [vmem:[%s843_s1 + $0x88] sm:$0xff]   ;;  %v632_v23 = vld [vmem:[%s844_s0 + $0x4] ss:$16 sps:$4 sm:$0xff]   ;;  %v630_v27 = vld [vmem:[%s844_s0] ss:$16 sps:$4 sm:$0xff]  }
   0x9   :  { %579 = vmatprep.subr.bf16.mxu0 %v612_v7  ;;  %v626_v21 = vld [vmem:[%s843_s1 + $0x8] sm:$0xff]   ;;  %v628_v24 = vld [vmem:[%s843_s1 + $0x80] sm:$0xff]   ;;  %303 = vmatprep.mubr.bf16.mxu0 %v632_v23 }
   0xa   :  { %v636_v25 = vld [vmem:[%s844_s0 + $0xc] ss:$16 sps:$4 sm:$0xff]   ;;  %v629_v26 = vld [vmem:[%s843_s1] sm:$0xff]   ;;  %v634_v30 = vld [vmem:[%s844_s0 + $0x8] ss:$16 sps:$4 sm:$0xff]  }
   0xb   :  { %325 = vmatpush1.bf16.msra.mxu1 %v613_v8  ;;  %554 = vmatprep.mubr.msk.bf16.mxu1 %vm264_vm0, %v636_v25  ;;  %v633_v28 = vld [vmem:[%s843_s1 + $0xc0] sm:$0xff]   ;;  %v640_v31 = vld [vmem:[%s844_s0 + $0x2c] ss:$16 sps:$4 sm:$0xff]   ;;  %v642_v33 = vld [vmem:[%s844_s0 + $0x28] ss:$16 sps:$4 sm:$0xff]  }
   0xc   :  { %580 = vmatpush3.bf16.msra.mxu0 %v614_v9  ;;  %326 = vmatprep.subr.bf16.mxu1 %v651_v0  ;;  %v637_v29 = vld [vmem:[%s844_s0 + $0x24] ss:$16 sps:$4 sm:$0xff]   ;;  %v639_v32 = vld [vmem:[%s844_s0 + $0x20] ss:$16 sps:$4 sm:$0xff]  }
   0xd   :  { %581 = vmatprep.subr.bf16.mxu0 %v615_v10 }
   0xf   :  { %327 = vmatpush1.bf16.msra.mxu1 %v616_v11 }
  0x10   :  { %582 = vmatpush3.bf16.msra.mxu0 %v617_v12  ;;  %328 = vmatprep.subr.bf16.mxu1 %v651_v0 }
  0x11   :  { %583 = vmatprep.subr.bf16.mxu0 %v618_v13 }
  0x13   :  { %329 = vmatpush1.bf16.msra.mxu1 %v619_v14 }
  0x14   :  { %584 = vmatpush3.bf16.msra.mxu0 %v620_v15  ;;  %330 = vmatprep.subr.bf16.mxu1 %v651_v0 }
  0x15   :  { %585 = vmatprep.subr.bf16.mxu0 %v621_v16 }
  0x17   :  { %331 = vmatpush1.bf16.msra.mxu1 %v622_v17 }
  0x18   :  { %586 = vmatpush3.bf16.msra.mxu0 %v623_v18  ;;  %332 = vmatprep.subr.bf16.mxu1 %v651_v0 }
  0x19   :  { %587 = vmatprep.subr.bf16.mxu0 %v624_v19 }
  0x1b   :  { %333 = vmatpush1.bf16.msra.mxu1 %v625_v20 }
  0x1c   :  { %588 = vmatpush3.bf16.msra.mxu0 %v626_v21  ;;  %334 = vmatprep.subr.bf16.mxu1 %v651_v0 }
  0x1d   :  { %589 = vmatprep.subr.bf16.mxu0 %v627_v22 }
  0x1f   :  { %335 = vmatpush1.bf16.msra.mxu1 %v628_v24 }
  0x20   :  { %590 = vmatpush3.bf16.msra.mxu0 %v629_v26  ;;  %350 = vmatprep.subr.bf16.mxu1 %v651_v0 }
  0x23   :  { %304 = vmatmul.mubr.bf16.vlgmr.msra.gmra.mxu0 %v630_v27  ;;  %351 = vmatpush2.bf16.msra.mxu1 %v633_v28  ;;  %v409_v28 = vld [vmem:[%s845_s2] sm:$0xff] }
  0x24   :  { %311 = vmatprep.mubr.bf16.mxu0 %v637_v29 }
  0x26   :  { %353 = vmatmul.mubr.bf16.vlgmr.msra.gmra.mxu1 %v634_v30 }
  0x27   :  { %555 = vmatprep.mubr.msk.bf16.mxu1 %vm264_vm0, %v640_v31 }
  0x2b   :  { %312 = vmatmul.mubr.bf16.gmra.mxu0 %v639_v32 }
  0x2e   :  { %361 = vmatmul.mubr.bf16.gmra.mxu1 %v642_v33  ;;  %v410_v33 = vld [vmem:[%s845_s2 + $0x8] sm:$0xff] }
  0xe3   :  { %v591_v34 = vpop.f32.mrf.mxu0 }
  0xe5   :  { %v592_v35 = vpop.f32.mrf.mxu0 }
  0xe6   :  { %v593_v36 = vadd.f32 %v592_v35, %v591_v34  ;;  %v354_v37 = vpop.f32.mrf.mxu1 }
  0xe7   :  { %v594_v38 = vpop.f32.mrf.mxu0 }
  0xe8   :  { %v789_v39 = vadd.f32 %v593_v36, %v354_v37  ;;  %v356_v40 = vpop.f32.mrf.mxu1  ;;  %v425_v37 = vld [vmem:[%s846_s3] sm:$0xff] }
  0xe9   :  { %v595_v41 = vpop.f32.mrf.mxu0 }
  0xea   :  { %v596_v42 = vadd.f32 %v595_v41, %v594_v38  ;;  %v357_v43 = vpop.f32.mrf.mxu1  ;;  %369 = vadd.xlane.f32.xlu0 %v789_v39  ;;  %v381_v47 = vmul.f32 %v789_v39, %v789_v39  ;;  %v411_v41 = vld [vmem:[%s845_s2 + $0x10] sm:$0xff] }
  0xeb   :  { %v597_v44 = vpop.f32.mrf.mxu0 }
  0xec   :  { %v792_v45 = vadd.f32 %v596_v42, %v357_v43  ;;  %v359_v46 = vpop.f32.mrf.mxu1 }
  0xed   :  { %v598_v48 = vpop.f32.mrf.mxu0 }
  0xee   :  { %385 = vadd.xlane.f32.xlu0 %v381_v47  ;;  %v599_v49 = vadd.f32 %v598_v48, %v597_v44  ;;  %v382_v50 = vmul.f32 %v792_v45, %v792_v45  ;;  %v362_v51 = vpop.f32.mrf.mxu1  ;;  %v426_v44 = vld [vmem:[%s846_s3 + $0x8] sm:$0xff]  ;;  %v412_v48 = vld [vmem:[%s845_s2 + $0x18] sm:$0xff] }
  0xef   :  { %v600_v52 = vpop.f32.mrf.mxu0 }
  0xf0   :  { %387 = vadd.xlane.f32.xlu1 %v382_v50  ;;  %v798_v53 = vadd.f32 %v599_v49, %v362_v51  ;;  %v364_v54 = vpop.f32.mrf.mxu1  ;;  %v427_v51 = vld [vmem:[%s846_s3 + $0x10] sm:$0xff] }
  0xf1   :  { %v601_v55 = vpop.f32.mrf.mxu0 }
  0xf2   :  { %371 = vadd.xlane.f32.xlu0 %v792_v45  ;;  %v602_v56 = vadd.f32 %v601_v55, %v600_v52  ;;  %v365_v57 = vpop.f32.mrf.mxu1  ;;  %v383_v58 = vmul.f32 %v798_v53, %v798_v53  ;;  %v428_v55 = vld [vmem:[%s846_s3 + $0x18] sm:$0xff] }
  0xf4   :  { %373 = vadd.xlane.f32.xlu1 %v798_v53  ;;  %v804_v59 = vadd.f32 %v602_v56, %v365_v57  ;;  %v367_v60 = vpop.f32.mrf.mxu1 }
  0xf6   :  { %389 = vadd.xlane.f32.xlu0 %v383_v58  ;;  %v384_v61 = vmul.f32 %v804_v59, %v804_v59 }
  0xf8   :  { %375 = vadd.xlane.f32.xlu1 %v804_v59 }
  0xfc   :  { %391 = vadd.xlane.f32.xlu1 %v384_v61 }
 0x173   :  { %v370_v62 = vpop.xlane.xlu0 %369 }
 0x174   :  { %v377_v63 = vmul.f32 0.015625, %v370_v62 }
 0x176   :  { %v397_v1 = vmul.f32 %v377_v63, %v377_v63 }
 0x177   :  { %v386_v0 = vpop.xlane.xlu0 %385 }
 0x178   :  { %v393_v2 = vmul.f32 0.015625, %v386_v0 }
 0x179   :  { %v388_v3 = vpop.xlane.xlu1 %387 }
 0x17a   :  { %v401_v4 = vsub.f32 %v393_v2, %v397_v1  ;;  %v394_v10 = vmul.f32 0.015625, %v388_v3 }
 0x17b   :  { %v372_v5 = vpop.xlane.xlu0 %371 }
 0x17c   :  { %v405_v6 = vmax.f32 %v401_v4, 0.0  ;;  %v378_v7 = vmul.f32 0.015625, %v372_v5 }
 0x17d   :  { %v374_v8 = vpop.xlane.xlu1 %373 }
 0x17e   :  { %v413_v9 = vadd.f32 1e-05, %v405_v6  ;;  %v398_v11 = vmul.f32 %v378_v7, %v378_v7  ;;  %v379_v12 = vmul.f32 0.015625, %v374_v8 }
 0x17f   :  { %v390_v13 = vpop.xlane.xlu0 %389 }
 0x180   :  { %643 = vrsqrt.f32 %v413_v9  ;;  %v402_v14 = vsub.f32 %v394_v10, %v398_v11  ;;  %v399_v15 = vmul.f32 %v379_v12, %v379_v12  ;;  %v395_v16 = vmul.f32 0.015625, %v390_v13 }
 0x181   :  { %v376_v17 = vpop.xlane.xlu1 %375 }
 0x182   :  { %v406_v18 = vmax.f32 %v402_v14, 0.0  ;;  %v403_v19 = vsub.f32 %v395_v16, %v399_v15  ;;  %v380_v20 = vmul.f32 0.015625, %v376_v17 }
 0x184   :  { %v414_v21 = vadd.f32 1e-05, %v406_v18  ;;  %v407_v22 = vmax.f32 %v403_v19, 0.0  ;;  %v400_v24 = vmul.f32 %v380_v20, %v380_v20 }
 0x185   :  { %v392_v23 = vpop.xlane.xlu1 %391 }
 0x186   :  { %645 = vrsqrt.f32 %v414_v21  ;;  %v396_v25 = vmul.f32 0.015625, %v392_v23  ;;  %v415_v26 = vadd.f32 1e-05, %v407_v22 }
 0x188   :  { %v404_v27 = vsub.f32 %v396_v25, %v400_v24  ;;  %647 = vrsqrt.f32 %v415_v26 }
 0x18a   :  { %v408_v29 = vmax.f32 %v404_v27, 0.0 }
 0x18c   :  { %v416_v32 = vadd.f32 1e-05, %v408_v29 }
 0x18d   :  { %v644_v30 = vpop.eup %643 }
 0x18e   :  { %v421_v31 = vmul.f32 %v644_v30, %v409_v28  ;;  %649 = vrsqrt.f32 %v416_v32 }
 0x190   :  { %439 = vperm.xlu0 %604, %v421_v31   ;;  %v429_v36 = vmul.f32 %v421_v31, %v377_v63 }
 0x192   :  { %v433_v38 = vsub.f32 %v425_v37, %v429_v36 }
 0x193   :  { %v646_v34 = vpop.eup %645 }
 0x194   :  { %v422_v35 = vmul.f32 %v646_v34, %v410_v33 }
 0x195   :  { %v648_v40 = vpop.eup %647 }
 0x196   :  { %444 = vperm.xlu1 %605, %v422_v35   ;;  %v430_v42 = vmul.f32 %v422_v35, %v378_v7  ;;  %v423_v43 = vmul.f32 %v648_v40, %v411_v41 }
 0x198   :  { %v434_v46 = vsub.f32 %v426_v44, %v430_v42  ;;  %v431_v50 = vmul.f32 %v423_v43, %v379_v12 }
 0x19a   :  { %463 = vperm.xlu1 %605, %v433_v38   ;;  %v435_v52 = vsub.f32 %v427_v51, %v431_v50 }
 0x19b   :  { %v650_v47 = vpop.eup %649 }
 0x19c   :  { %v424_v49 = vmul.f32 %v650_v47, %v412_v48 }
 0x19e   :  { %449 = vperm.xlu1 %605, %v423_v43   ;;  %v432_v54 = vmul.f32 %v424_v49, %v380_v20 }
 0x1a0   :  { %v436_v56 = vsub.f32 %v428_v55, %v432_v54 }
 0x1a2   :  { %468 = vperm.xlu1 %605, %v434_v46  }
 0x1a6   :  { %454 = vperm.xlu1 %605, %v424_v49  }
 0x1aa   :  { %473 = vperm.xlu1 %605, %v435_v52  }
 0x1ae   :  { %478 = vperm.xlu1 %605, %v436_v56  }
 0x20b   :  { %v440_v58 = vpop.permute.xlu0 %439 }
 0x20c   :  { %v457_v61 = vmul.f32 %v440_v58, %v789_v39 }
 0x211   :  { %v445_v57 = vpop.permute.xlu1 %444 }
 0x212   :  { %v458_v0 = vmul.f32 %v445_v57, %v792_v45 }
 0x215   :  { %v464_v60 = vpop.permute.xlu1 %463 }
 0x216   :  { %v481_v63 = vadd.f32 %v464_v60, %v457_v61 }
 0x218   :  { %v489_v2 = vmul.f32 0.2, %v481_v63  ;;  %vm485_vm1 = vcmp.ge.f32.partialorder %v481_v63, 0.0 }
 0x219   :  { %v450_v62 = vpop.permute.xlu1 %449 }
 0x21a   :  { %v493_v6 = vsel %vm485_vm1, %v481_v63, %v489_v2  ;;  %v459_v9 = vmul.f32 %v450_v62, %v798_v53 }
 0x21d   :  { %v469_v1 = vpop.permute.xlu1 %468 }
 0x21e   :  { %v482_v3 = vadd.f32 %v469_v1, %v458_v0 }
 0x220   :  { %vm486_vm2 = vcmp.ge.f32.partialorder %v482_v3, 0.0  ;;  %v490_v4 = vmul.f32 0.2, %v482_v3 }
 0x221   :  { %v455_v5 = vpop.permute.xlu1 %454 }
 0x222   :  { %v494_v7 = vsel %vm486_vm2, %v482_v3, %v490_v4  ;;  %v460_v45 = vmul.f32 %v455_v5, %v804_v59 }
 0x223   :  { %v567_v8 = vpack.c.bf16 %v494_v7, %v493_v6 }
 0x225   :  { %568 = vst [vmem:[%s847_s4] sm:$0xff] %v567_v8   ;;  %v474_v39 = vpop.permute.xlu1 %473 }
 0x226   :  { %v483_v10 = vadd.f32 %v474_v39, %v459_v9 }
 0x228   :  { %v491_v12 = vmul.f32 0.2, %v483_v10  ;;  %vm487_vm3 = vcmp.ge.f32.partialorder %v483_v10, 0.0 }
 0x229   :  { %v479_v11 = vpop.permute.xlu1 %478 }
 0x22a   :  { %v484_v13 = vadd.f32 %v479_v11, %v460_v45  ;;  %v495_v15 = vsel %vm487_vm3, %v483_v10, %v491_v12 }
 0x22c   :  { %vm488_vm4 = vcmp.ge.f32.partialorder %v484_v13, 0.0  ;;  %v492_v14 = vmul.f32 0.2, %v484_v13 }
 0x22e   :  { %v496_v16 = vsel %vm488_vm4, %v484_v13, %v492_v14 }
 0x22f   :  { %v572_v17 = vpack.c.bf16 %v496_v16, %v495_v15 }
 0x231   :  { %574 = vst [vmem:[%s847_s4 + $0x8] sm:$0xff] %v572_v17  }

// kernel: discriminator_forward.12
= control target key start
LH: loop header
LB: loop body
LE: loop exit
PB: predicated region body
PF: predicated region fallthrough
CT: control target
= control target key end

     0   :  { %vm504_vm0 = vcmask 261120   ;;  %s1393_s1 = inlined_call_operand.vmem [shape: bf16[800,128], index: 1, kind: input, shape index: {}]   ;;  %s1394_s0 = inlined_call_operand.vmem [shape: bf16[32,800], index: 0, kind: input, shape index: {}]   ;;  %s1395_s2 = inlined_call_operand.vmem [shape: f32[32,1], index: 2, kind: input, shape index: {}]   ;;  %s1396_s3 = inlined_call_operand.vmem [shape: f32[32,1], index: 3, kind: input, shape index: {}]   ;;  %s1397_s4 = inlined_call_operand.vmem [shape: bf16[32,128], index: 4, kind: output, shape index: {}]  }
   0x1   :  { %v1043_v0 = vld [vmem:[%s1393_s1 + $0x78] sm:$0xff]   ;;  %v1047_v4 = vld [vmem:[%s1393_s1 + $0x70] sm:$0xff]   ;;  %v1051_v8 = vld [vmem:[%s1393_s1 + $0x68] sm:$0xff]  }
   0x2   :  { %v1044_v1 = vld [vmem:[%s1393_s1 + $0xf8] sm:$0xff]   ;;  %944 = vmatprep.subr.bf16.mxu0 %v1043_v0  ;;  %v1048_v5 = vld [vmem:[%s1393_s1 + $0xf0] sm:$0xff]   ;;  %v1052_v9 = vld [vmem:[%s1393_s1 + $0xe8] sm:$0xff]  }
   0x3   :  { %v1045_v2 = vld [vmem:[%s1393_s1 + $0x38] sm:$0xff]   ;;  %972 = vmatprep.subr.bf16.mxu1 %v1044_v1  ;;  %v1049_v6 = vld [vmem:[%s1393_s1 + $0x30] sm:$0xff]   ;;  %v1053_v10 = vld [vmem:[%s1393_s1 + $0x28] sm:$0xff]  }
   0x4   :  { %v1046_v3 = vld [vmem:[%s1393_s1 + $0xb8] sm:$0xff]   ;;  %945 = vmatpush3.bf16.msra.mxu0 %v1045_v2  ;;  %v1050_v7 = vld [vmem:[%s1393_s1 + $0xb0] sm:$0xff]   ;;  %v1054_v11 = vld [vmem:[%s1393_s1 + $0xa8] sm:$0xff]  }
   0x5   :  { %973 = vmatpush3.bf16.msra.mxu1 %v1046_v3  ;;  %946 = vmatprep.subr.bf16.mxu0 %v1047_v4  ;;  %v1055_v12 = vld [vmem:[%s1393_s1 + $0x60] sm:$0xff]   ;;  %v1059_v16 = vld [vmem:[%s1393_s1 + $0x58] sm:$0xff]   ;;  %v1063_v20 = vld [vmem:[%s1393_s1 + $0x50] sm:$0xff]  }
   0x6   :  { %974 = vmatprep.subr.bf16.mxu1 %v1048_v5  ;;  %v1056_v13 = vld [vmem:[%s1393_s1 + $0xe0] sm:$0xff]   ;;  %v1060_v17 = vld [vmem:[%s1393_s1 + $0xd8] sm:$0xff]   ;;  %v1064_v21 = vld [vmem:[%s1393_s1 + $0xd0] sm:$0xff]  }
   0x7   :  { %v1057_v14 = vld [vmem:[%s1393_s1 + $0x20] sm:$0xff]   ;;  %v1061_v18 = vld [vmem:[%s1393_s1 + $0x18] sm:$0xff]   ;;  %v1065_v22 = vld [vmem:[%s1393_s1 + $0x10] sm:$0xff]  }
   0x8   :  { %947 = vmatpush3.bf16.msra.mxu0 %v1049_v6  ;;  %v1058_v15 = vld [vmem:[%s1393_s1 + $0xa0] sm:$0xff]   ;;  %v1062_v19 = vld [vmem:[%s1393_s1 + $0x98] sm:$0xff]   ;;  %v1066_v23 = vld [vmem:[%s1393_s1 + $0x90] sm:$0xff]  }
   0x9   :  { %975 = vmatpush3.bf16.msra.mxu1 %v1050_v7  ;;  %948 = vmatprep.subr.bf16.mxu0 %v1051_v8  ;;  %v1067_v24 = vld [vmem:[%s1393_s1 + $0x48] sm:$0xff]   ;;  %v1071_v28 = vld [vmem:[%s1393_s1 + $0x40] sm:$0xff]   ;;  %v1081_v36 = vld [vmem:[%s1393_s1 + $0x178] sm:$0xff]  }
   0xa   :  { %976 = vmatprep.subr.bf16.mxu1 %v1052_v9  ;;  %v1068_v25 = vld [vmem:[%s1393_s1 + $0xc8] sm:$0xff]   ;;  %v1072_v29 = vld [vmem:[%s1393_s1 + $0xc0] sm:$0xff]   ;;  %v1082_v37 = vld [vmem:[%s1393_s1 + $0x138] sm:$0xff]  }
   0xb   :  { %v1069_v26 = vld [vmem:[%s1393_s1 + $0x8] sm:$0xff]   ;;  %v1073_v30 = vld [vmem:[%s1393_s1] sm:$0xff]   ;;  %v1083_v38 = vld [vmem:[%s1393_s1 + $0x170] sm:$0xff]  }
   0xc   :  { %949 = vmatpush3.bf16.msra.mxu0 %v1053_v10  ;;  %v1070_v27 = vld [vmem:[%s1393_s1 + $0x88] sm:$0xff]   ;;  %v1074_v31 = vld [vmem:[%s1393_s1 + $0x80] sm:$0xff]   ;;  %v1084_v39 = vld [vmem:[%s1393_s1 + $0x130] sm:$0xff]  }
   0xd   :  { %977 = vmatpush3.bf16.msra.mxu1 %v1054_v11  ;;  %950 = vmatprep.subr.bf16.mxu0 %v1055_v12  ;;  %v1075_v32 = vld [vmem:[%s1394_s0] ss:$28 sps:$4 sm:$0xff]   ;;  %v1078_v34 = vld [vmem:[%s1394_s0 + $0x8] ss:$28 sps:$4 sm:$0xff]   ;;  %v1095_v47 = vld [vmem:[%s1394_s0 + $0x38] ss:$28 sps:$4 sm:$0xff]  }
   0xe   :  { %978 = vmatprep.subr.bf16.mxu1 %v1056_v13  ;;  %v1077_v33 = vld [vmem:[%s1394_s0 + $0x4] ss:$28 sps:$4 sm:$0xff]   ;;  %v1080_v35 = vld [vmem:[%s1394_s0 + $0xc] ss:$28 sps:$4 sm:$0xff]   ;;  %v1090_v44 = vld [vmem:[%s1394_s0 + $0x3c] ss:$28 sps:$4 sm:$0xff]  }
   0xf   :  { %543 = vmatprep.mubr.bf16.mxu0 %v1077_v33  ;;  %592 = vmatprep.mubr.bf16.mxu1 %v1080_v35  ;;  %v1085_v40 = vld [vmem:[%s1393_s1 + $0x168] sm:$0xff]   ;;  %v1087_v42 = vld [vmem:[%s1393_s1 + $0x160] sm:$0xff]   ;;  %v1089_v46 = vld [vmem:[%s1393_s1 + $0x158] sm:$0xff]  }
  0x10   :  { %951 = vmatpush3.bf16.msra.mxu0 %v1057_v14  ;;  %v1086_v41 = vld [vmem:[%s1393_s1 + $0x128] sm:$0xff]   ;;  %v1088_v43 = vld [vmem:[%s1393_s1 + $0x120] sm:$0xff]   ;;  %v1094_v50 = vld [vmem:[%s1393_s1 + $0x118] sm:$0xff]  }
  0x11   :  { %979 = vmatpush3.bf16.msra.mxu1 %v1058_v15  ;;  %952 = vmatprep.subr.bf16.mxu0 %v1059_v16  ;;  %v1092_v45 = vld [vmem:[%s1394_s0 + $0x44] ss:$28 sps:$4 sm:$0xff]   ;;  %v1097_v49 = vld [vmem:[%s1393_s1 + $0x188] sm:$0xff]   ;;  %v1098_v51 = vld [vmem:[%s1393_s1 + $0x150] sm:$0xff]  }
  0x12   :  { %980 = vmatprep.subr.bf16.mxu1 %v1060_v17  ;;  %v1096_v48 = vld [vmem:[%s1394_s0 + $0x40] ss:$28 sps:$4 sm:$0xff]   ;;  %v1099_v53 = vld [vmem:[%s1393_s1 + $0x110] sm:$0xff]   ;;  %v1100_v54 = vld [vmem:[%s1393_s1 + $0x148] sm:$0xff]  }
  0x13   :  { %v1102_v52 = vld [vmem:[%s1393_s1 + $0x180] sm:$0xff]   ;;  %v1105_v55 = vld [vmem:[%s1394_s0 + $0x18] ss:$28 sps:$4 sm:$0xff]   ;;  %v1106_v56 = vld [vmem:[%s1394_s0 + $0x50] ss:$28 sps:$4 sm:$0xff]  }
  0x14   :  { %953 = vmatpush3.bf16.msra.mxu0 %v1061_v18  ;;  %v1101_v57 = vld [vmem:[%s1393_s1 + $0x108] sm:$0xff]   ;;  %v1109_v58 = vld [vmem:[%s1394_s0 + $0x14] ss:$28 sps:$4 sm:$0xff]   ;;  %v1103_v59 = vld [vmem:[%s1393_s1 + $0x140] sm:$0xff]  }
  0x15   :  { %981 = vmatpush3.bf16.msra.mxu1 %v1062_v19  ;;  %954 = vmatprep.subr.bf16.mxu0 %v1063_v20  ;;  %v1104_v60 = vld [vmem:[%s1393_s1 + $0x100] sm:$0xff]   ;;  %v1107_v61 = vld [vmem:[%s1394_s0 + $0x10] ss:$28 sps:$4 sm:$0xff]  }
  0x16   :  { %982 = vmatprep.subr.bf16.mxu1 %v1064_v21  ;;  %v1110_v62 = vld [vmem:[%s1394_s0 + $0x4c] ss:$28 sps:$4 sm:$0xff]  }
  0x17   :  { %v1112_v63 = vld [vmem:[%s1394_s0 + $0x48] ss:$28 sps:$4 sm:$0xff]  }
  0x18   :  { %955 = vmatpush3.bf16.msra.mxu0 %v1065_v22 }
  0x19   :  { %983 = vmatpush3.bf16.msra.mxu1 %v1066_v23  ;;  %956 = vmatprep.subr.bf16.mxu0 %v1067_v24 }
  0x1a   :  { %984 = vmatprep.subr.bf16.mxu1 %v1068_v25 }
  0x1c   :  { %957 = vmatpush3.bf16.msra.mxu0 %v1069_v26 }
  0x1d   :  { %985 = vmatpush3.bf16.msra.mxu1 %v1070_v27  ;;  %958 = vmatprep.subr.bf16.mxu0 %v1071_v28 }
  0x1e   :  { %986 = vmatprep.subr.bf16.mxu1 %v1072_v29 }
  0x20   :  { %959 = vmatpush3.bf16.msra.mxu0 %v1073_v30 }
  0x21   :  { %987 = vmatpush3.bf16.msra.mxu1 %v1074_v31  ;;  %1000 = vmatprep.subr.bf16.mxu0 %v1081_v36 }
  0x22   :  { %1032 = vmatprep.subr.bf16.mxu1 %v1097_v49 }
  0x23   :  { %544 = vmatmul.mubr.bf16.vlgmr.msra.gmra.mxu0 %v1075_v32 }
  0x24   :  { %593 = vmatmul.mubr.bf16.vlgmr.msra.gmra.mxu1 %v1078_v34  ;;  %1001 = vmatpush3.bf16.msra.mxu0 %v1082_v37 }
  0x25   :  { %1002 = vmatprep.subr.bf16.mxu0 %v1083_v38  ;;  %551 = vmatprep.mubr.bf16.mxu0 %v1090_v44 }
  0x26   :  { %600 = vmatprep.mubr.bf16.mxu1 %v1092_v45  ;;  %1033 = vmatpush3.bf16.msra.mxu1 %v1097_v49 }
  0x27   :  { %1034 = vmatprep.subr.bf16.mxu1 %v1102_v52 }
  0x28   :  { %1003 = vmatpush3.bf16.msra.mxu0 %v1084_v39 }
  0x29   :  { %1004 = vmatprep.subr.bf16.mxu0 %v1085_v40 }
  0x2a   :  { %1035 = vmatpush3.bf16.msra.mxu1 %v1102_v52 }
  0x2b   :  { %552 = vmatmul.mubr.bf16.gmra.mxu0 %v1095_v47 }
  0x2c   :  { %1005 = vmatpush3.bf16.msra.mxu0 %v1086_v41  ;;  %601 = vmatmul.mubr.bf16.gmra.mxu1 %v1096_v48 }
  0x2d   :  { %1006 = vmatprep.subr.bf16.mxu0 %v1087_v42  ;;  %1036 = vmatprep.mubr.msk.bf16.mxu1 %vm504_vm0, %v1105_v55 }
  0x2e   :  { %641 = vmatprep.mubr.bf16.mxu0 %v1109_v58 }
  0x30   :  { %1007 = vmatpush3.bf16.msra.mxu0 %v1088_v43 }
  0x31   :  { %1008 = vmatprep.subr.bf16.mxu0 %v1089_v46 }
  0x34   :  { %1009 = vmatpush3.bf16.msra.mxu0 %v1094_v50  ;;  %1037 = vmatmul.mubr.msk.bf16.vlgmr.msra.gmra.mxu1 %vm504_vm0, %v1106_v56  ;;  %v1121_v56 = vmov 0  }
  0x35   :  { %1010 = vmatprep.subr.bf16.mxu0 %v1098_v51  ;;  %1041 = vset.pattern.permute.xlu0 %v1121_v56 }
  0x36   :  { %1042 = vset.pattern.permute.xlu1 %v1121_v56 }
  0x38   :  { %1011 = vmatpush3.bf16.msra.mxu0 %v1099_v53 }
  0x39   :  { %1012 = vmatprep.subr.bf16.mxu0 %v1100_v54 }
  0x3c   :  { %1013 = vmatpush3.bf16.msra.mxu0 %v1101_v57 }
  0x3d   :  { %1014 = vmatprep.subr.bf16.mxu0 %v1103_v59 }
  0x40   :  { %1015 = vmatpush3.bf16.msra.mxu0 %v1104_v60 }
  0x43   :  { %642 = vmatmul.mubr.bf16.vlgmr.msra.gmra.mxu0 %v1107_v61 }
  0x44   :  { %649 = vmatprep.mubr.bf16.mxu0 %v1110_v62 }
  0x4b   :  { %650 = vmatmul.mubr.bf16.gmra.mxu0 %v1112_v63 }
  0xe3   :  { %v960_v1 = vpop.f32.mrf.mxu0 }
  0xe4   :  { %v988_v0 = vpop.f32.mrf.mxu1 }
  0xe5   :  { %v961_v3 = vpop.f32.mrf.mxu0 }
  0xe6   :  { %v989_v2 = vpop.f32.mrf.mxu1  ;;  %v962_v17 = vadd.f32 %v961_v3, %v960_v1 }
  0xe7   :  { %v963_v5 = vpop.f32.mrf.mxu0  ;;  %v990_v18 = vadd.f32 %v989_v2, %v988_v0 }
  0xe8   :  { %v991_v4 = vpop.f32.mrf.mxu1 }
  0xe9   :  { %v964_v7 = vpop.f32.mrf.mxu0  ;;  %v595_v22 = vadd.f32 %v990_v18, %v962_v17 }
  0xea   :  { %v992_v6 = vpop.f32.mrf.mxu1  ;;  %v965_v23 = vadd.f32 %v964_v7, %v963_v5 }
  0xeb   :  { %v966_v9 = vpop.f32.mrf.mxu0  ;;  %v993_v24 = vadd.f32 %v992_v6, %v991_v4 }
  0xec   :  { %v994_v8 = vpop.f32.mrf.mxu1 }
  0xed   :  { %v967_v11 = vpop.f32.mrf.mxu0  ;;  %v598_v32 = vadd.f32 %v993_v24, %v965_v23  ;;  %v747_v23 = vld [vmem:[%s1395_s2] sm:$0xff] }
  0xee   :  { %v995_v10 = vpop.f32.mrf.mxu1  ;;  %v968_v28 = vadd.f32 %v967_v11, %v966_v9 }
  0xef   :  { %v969_v13 = vpop.f32.mrf.mxu0  ;;  %v996_v29 = vadd.f32 %v995_v10, %v994_v8 }
  0xf0   :  { %v997_v12 = vpop.f32.mrf.mxu1 }
  0xf1   :  { %v970_v15 = vpop.f32.mrf.mxu0  ;;  %v603_v37 = vadd.f32 %v996_v29, %v968_v28  ;;  %v748_v28 = vld [vmem:[%s1395_s2 + $0x8] sm:$0xff] }
  0xf2   :  { %v998_v14 = vpop.f32.mrf.mxu1  ;;  %v971_v38 = vadd.f32 %v970_v15, %v969_v13 }
  0xf3   :  { %v999_v41 = vadd.f32 %v998_v14, %v997_v12 }
  0xf4   :  { %v1038_v16 = vpop.f32.mrf.mxu1 }
  0xf5   :  { %v606_v49 = vadd.f32 %v999_v41, %v971_v38 }
  0xf6   :  { %v692_v20 = vpop.f32.mrf.mxu1 }
  0xf8   :  { %v1039_v30 = vpop.f32.mrf.mxu1 }
  0xfa   :  { %v695_v39 = vpop.f32.mrf.mxu1 }
 0x103   :  { %v1016_v19 = vpop.f32.mrf.mxu0 }
 0x105   :  { %v1017_v21 = vpop.f32.mrf.mxu0 }
 0x106   :  { %v1018_v25 = vadd.f32 %v1017_v21, %v1016_v19 }
 0x107   :  { %v1019_v26 = vpop.f32.mrf.mxu0 }
 0x108   :  { %v644_v27 = vadd.f32 %v1018_v25, %v595_v22 }
 0x109   :  { %v1020_v31 = vpop.f32.mrf.mxu0 }
 0x10a   :  { %v1021_v33 = vadd.f32 %v1020_v31, %v1019_v26  ;;  %v1339_v34 = vadd.f32 %v692_v20, %v644_v27 }
 0x10b   :  { %v1022_v35 = vpop.f32.mrf.mxu0 }
 0x10c   :  { %v647_v36 = vadd.f32 %v1021_v33, %v598_v32  ;;  %707 = vadd.xlane.f32.xlu0 %v1339_v34  ;;  %v719_v43 = vmul.f32 %v1339_v34, %v1339_v34  ;;  %v763_v32 = vld [vmem:[%s1396_s3] sm:$0xff] }
 0x10d   :  { %v1023_v40 = vpop.f32.mrf.mxu0 }
 0x10e   :  { %v1024_v42 = vadd.f32 %v1023_v40, %v1022_v35  ;;  %v1344_v44 = vadd.f32 %v695_v39, %v647_v36  ;;  %v749_v36 = vld [vmem:[%s1395_s2 + $0x10] sm:$0xff]  ;;  %v764_v39 = vld [vmem:[%s1396_s3 + $0x8] sm:$0xff] }
 0x10f   :  { %v1025_v45 = vpop.f32.mrf.mxu0 }
 0x110   :  { %v652_v46 = vadd.f32 %v1024_v42, %v603_v37  ;;  %723 = vadd.xlane.f32.xlu0 %v719_v43  ;;  %v720_v47 = vmul.f32 %v1344_v44, %v1344_v44  ;;  %v750_v42 = vld [vmem:[%s1395_s2 + $0x18] sm:$0xff] }
 0x111   :  { %v1026_v48 = vpop.f32.mrf.mxu0 }
 0x112   :  { %v1027_v50 = vadd.f32 %v1026_v48, %v1025_v45  ;;  %725 = vadd.xlane.f32.xlu1 %v720_v47  ;;  %v1348_v51 = vadd.f32 %v1038_v16, %v652_v46  ;;  %v765_v46 = vld [vmem:[%s1396_s3 + $0x10] sm:$0xff] }
 0x114   :  { %v655_v52 = vadd.f32 %v1027_v50, %v606_v49  ;;  %709 = vadd.xlane.f32.xlu0 %v1344_v44  ;;  %v721_v53 = vmul.f32 %v1348_v51, %v1348_v51  ;;  %v766_v49 = vld [vmem:[%s1396_s3 + $0x18] sm:$0xff] }
 0x116   :  { %711 = vadd.xlane.f32.xlu1 %v1348_v51  ;;  %v1354_v54 = vadd.f32 %v1039_v30, %v655_v52 }
 0x118   :  { %727 = vadd.xlane.f32.xlu0 %v721_v53  ;;  %v722_v55 = vmul.f32 %v1354_v54, %v1354_v54 }
 0x11a   :  { %713 = vadd.xlane.f32.xlu1 %v1354_v54 }
 0x11e   :  { %729 = vadd.xlane.f32.xlu1 %v722_v55 }
 0x195   :  { %v708_v57 = vpop.xlane.xlu0 %707 }
 0x196   :  { %v715_v58 = vmul.f32 0.0625, %v708_v57 }
 0x198   :  { %v735_v60 = vmul.f32 %v715_v58, %v715_v58 }
 0x199   :  { %v724_v59 = vpop.xlane.xlu0 %723 }
 0x19a   :  { %v731_v61 = vmul.f32 0.0625, %v724_v59 }
 0x19b   :  { %v726_v62 = vpop.xlane.xlu1 %725 }
 0x19c   :  { %v739_v63 = vsub.f32 %v731_v61, %v735_v60  ;;  %v732_v5 = vmul.f32 0.0625, %v726_v62 }
 0x19d   :  { %v710_v0 = vpop.xlane.xlu0 %709 }
 0x19e   :  { %v743_v1 = vmax.f32 %v739_v63, 0.0  ;;  %v716_v2 = vmul.f32 0.0625, %v710_v0 }
 0x19f   :  { %v712_v3 = vpop.xlane.xlu1 %711 }
 0x1a0   :  { %v751_v4 = vadd.f32 1e-05, %v743_v1  ;;  %v736_v6 = vmul.f32 %v716_v2, %v716_v2  ;;  %v717_v7 = vmul.f32 0.0625, %v712_v3 }
 0x1a1   :  { %v728_v8 = vpop.xlane.xlu0 %727 }
 0x1a2   :  { %1113 = vrsqrt.f32 %v751_v4  ;;  %v740_v9 = vsub.f32 %v732_v5, %v736_v6  ;;  %v737_v10 = vmul.f32 %v717_v7, %v717_v7  ;;  %v733_v11 = vmul.f32 0.0625, %v728_v8 }
 0x1a3   :  { %v714_v12 = vpop.xlane.xlu1 %713 }
 0x1a4   :  { %v744_v13 = vmax.f32 %v740_v9, 0.0  ;;  %v741_v14 = vsub.f32 %v733_v11, %v737_v10  ;;  %v718_v15 = vmul.f32 0.0625, %v714_v12 }
 0x1a6   :  { %v752_v16 = vadd.f32 1e-05, %v744_v13  ;;  %v745_v17 = vmax.f32 %v741_v14, 0.0  ;;  %v738_v19 = vmul.f32 %v718_v15, %v718_v15 }
 0x1a7   :  { %v730_v18 = vpop.xlane.xlu1 %729 }
 0x1a8   :  { %1115 = vrsqrt.f32 %v752_v16  ;;  %v734_v20 = vmul.f32 0.0625, %v730_v18  ;;  %v753_v21 = vadd.f32 1e-05, %v745_v17 }
 0x1aa   :  { %v742_v22 = vsub.f32 %v734_v20, %v738_v19  ;;  %1117 = vrsqrt.f32 %v753_v21 }
 0x1ac   :  { %v746_v24 = vmax.f32 %v742_v22, 0.0 }
 0x1ae   :  { %v754_v27 = vadd.f32 1e-05, %v746_v24 }
 0x1af   :  { %v1114_v25 = vpop.eup %1113 }
 0x1b0   :  { %v759_v26 = vmul.f32 %v1114_v25, %v747_v23  ;;  %1119 = vrsqrt.f32 %v754_v27 }
 0x1b2   :  { %777 = vperm.xlu0 %1041, %v759_v26   ;;  %v767_v31 = vmul.f32 %v759_v26, %v715_v58 }
 0x1b4   :  { %v771_v33 = vsub.f32 %v763_v32, %v767_v31 }
 0x1b5   :  { %v1116_v29 = vpop.eup %1115 }
 0x1b6   :  { %v760_v30 = vmul.f32 %v1116_v29, %v748_v28 }
 0x1b7   :  { %v1118_v35 = vpop.eup %1117 }
 0x1b8   :  { %782 = vperm.xlu1 %1042, %v760_v30   ;;  %v768_v37 = vmul.f32 %v760_v30, %v716_v2  ;;  %v761_v38 = vmul.f32 %v1118_v35, %v749_v36 }
 0x1ba   :  { %v772_v40 = vsub.f32 %v764_v39, %v768_v37  ;;  %v769_v45 = vmul.f32 %v761_v38, %v717_v7 }
 0x1bc   :  { %801 = vperm.xlu1 %1042, %v771_v33   ;;  %v773_v47 = vsub.f32 %v765_v46, %v769_v45 }
 0x1bd   :  { %v1120_v41 = vpop.eup %1119 }
 0x1be   :  { %v762_v43 = vmul.f32 %v1120_v41, %v750_v42 }
 0x1c0   :  { %787 = vperm.xlu1 %1042, %v761_v38   ;;  %v770_v48 = vmul.f32 %v762_v43, %v718_v15 }
 0x1c2   :  { %v774_v50 = vsub.f32 %v766_v49, %v770_v48 }
 0x1c4   :  { %806 = vperm.xlu1 %1042, %v772_v40  }
 0x1c8   :  { %792 = vperm.xlu1 %1042, %v762_v43  }
 0x1cc   :  { %811 = vperm.xlu1 %1042, %v773_v47  }
 0x1d0   :  { %816 = vperm.xlu1 %1042, %v774_v50  }
 0x22d   :  { %v778_v53 = vpop.permute.xlu0 %777 }
 0x22e   :  { %v795_v56 = vmul.f32 %v778_v53, %v1339_v34 }
 0x233   :  { %v783_v52 = vpop.permute.xlu1 %782 }
 0x234   :  { %v796_v59 = vmul.f32 %v783_v52, %v1344_v44 }
 0x237   :  { %v802_v55 = vpop.permute.xlu1 %801 }
 0x238   :  { %v819_v58 = vadd.f32 %v802_v55, %v795_v56 }
 0x23a   :  { %v827_v61 = vmul.f32 0.2, %v819_v58  ;;  %vm823_vm1 = vcmp.ge.f32.partialorder %v819_v58, 0.0 }
 0x23b   :  { %v788_v57 = vpop.permute.xlu1 %787 }
 0x23c   :  { %v831_v1 = vsel %vm823_vm1, %v819_v58, %v827_v61  ;;  %v797_v4 = vmul.f32 %v788_v57, %v1348_v51 }
 0x23f   :  { %v807_v60 = vpop.permute.xlu1 %806 }
 0x240   :  { %v820_v62 = vadd.f32 %v807_v60, %v796_v59 }
 0x242   :  { %vm824_vm2 = vcmp.ge.f32.partialorder %v820_v62, 0.0  ;;  %v828_v63 = vmul.f32 0.2, %v820_v62 }
 0x243   :  { %v793_v0 = vpop.permute.xlu1 %792 }
 0x244   :  { %v832_v2 = vsel %vm824_vm2, %v820_v62, %v828_v63  ;;  %v798_v44 = vmul.f32 %v793_v0, %v1354_v54 }
 0x245   :  { %v936_v3 = vpack.c.bf16 %v832_v2, %v831_v1 }
 0x247   :  { %937 = vst [vmem:[%s1397_s4] sm:$0xff] %v936_v3   ;;  %v812_v34 = vpop.permute.xlu1 %811 }
 0x248   :  { %v821_v5 = vadd.f32 %v812_v34, %v797_v4 }
 0x24a   :  { %v829_v7 = vmul.f32 0.2, %v821_v5  ;;  %vm825_vm3 = vcmp.ge.f32.partialorder %v821_v5, 0.0 }
 0x24b   :  { %v817_v6 = vpop.permute.xlu1 %816 }
 0x24c   :  { %v822_v8 = vadd.f32 %v817_v6, %v798_v44  ;;  %v833_v10 = vsel %vm825_vm3, %v821_v5, %v829_v7 }
 0x24e   :  { %vm826_vm4 = vcmp.ge.f32.partialorder %v822_v8, 0.0  ;;  %v830_v9 = vmul.f32 0.2, %v822_v8 }
 0x250   :  { %v834_v11 = vsel %vm826_vm4, %v822_v8, %v830_v9 }
 0x251   :  { %v941_v12 = vpack.c.bf16 %v834_v11, %v833_v10 }
 0x253   :  { %943 = vst [vmem:[%s1397_s4 + $0x8] sm:$0xff] %v941_v12  }

// kernel: discriminator_forward.13
= control target key start
LH: loop header
LB: loop body
LE: loop exit
PB: predicated region body
PF: predicated region fallthrough
CT: control target
= control target key end

     0   :  { %v323_v1 = vmov 0   ;;  %v324_v16 = vmov 0.0   ;;  %vm325_vm0 = vmmov 0   ;;  %vm195_vm5 = vcmask 261120   ;;  %s407_s0 = inlined_call_operand.vmem [shape: bf16[128,4], index: 0, kind: input, shape index: {}]   ;;  %s408_s1 = inlined_call_operand.vmem [shape: bf16[32,128], index: 1, kind: input, shape index: {}]   ;;  %s409_s2 = inlined_call_operand.vmem [shape: f32[32,1], index: 2, kind: input, shape index: {}]   ;;  %s410_s4 = inlined_call_operand.vmem [shape: f32[3,1], index: 4, kind: input, shape index: {}]   ;;  %s411_s3 = inlined_call_operand.vmem [shape: bf16[3,32], index: 3, kind: input, shape index: {}]   ;;  %s412_s5 = inlined_call_operand.vmem [shape: f32[3,4], index: 5, kind: output, shape index: {}]  }
   0x1   :  { %v309_v0 = vld [vmem:[%s407_s0 + $0x38] sm:$0xff]   ;;  %307 = vset.pattern.permute.xlu0 %v323_v1  ;;  %308 = vset.pattern.permute.xlu1 %v323_v1  ;;  %v310_v2 = vld [vmem:[%s407_s0 + $0x30] sm:$0xff]   ;;  %v311_v3 = vld [vmem:[%s407_s0 + $0x28] sm:$0xff]   ;;  %vm245_vm6 = vcmask 26624  }
   0x2   :  { %276 = vmatprep.subr.bf16.mxu0 %v309_v0  ;;  %v312_v4 = vld [vmem:[%s407_s0 + $0x20] sm:$0xff]   ;;  %v43_v6 = vld [vmem:[%s409_s2 + $0x10] sm:$0xff]  ;;  %v313_v8 = vld [vmem:[%s407_s0 + $0x18] sm:$0xff]   ;;  %296 = vmatprep.subr.bf16.mxu1 %v324_v16 }
   0x3   :  { %277 = vmatpush3.bf16.msra.mxu0 %v309_v0  ;;  %v317_v5 = vld [vmem:[%s408_s1] sm:$0xff]   ;;  %57 = vperm.xlu0 %307, %v43_v6   ;;  %v44_v9 = vld [vmem:[%s409_s2 + $0x18] sm:$0xff]  ;;  %v42_v10 = vld [vmem:[%s409_s2 + $0x8] sm:$0xff] }
   0x4   :  { %278 = vmatprep.subr.bf16.mxu0 %v310_v2  ;;  %292 = vmatprep.mubr.bf16.mxu0 %v317_v5  ;;  %v41_v7 = vld [vmem:[%s409_s2] sm:$0xff]  ;;  %v314_v11 = vld [vmem:[%s407_s0 + $0x10] sm:$0xff]   ;;  %v315_v13 = vld [vmem:[%s407_s0 + $0x8] sm:$0xff]  }
   0x5   :  { %47 = vperm.xlu1 %308, %v41_v7   ;;  %v189_v12 = vld [vmem:[%s410_s4] sm:$0x7]  ;;  %v318_v15 = vld [vmem:[%s408_s1 + $0x8] sm:$0xff]   ;;  %300 = vmatprep.mubr.msk.bf16.mxu1 %vm325_vm0, %v324_v16 }
   0x6   :  { %v316_v14 = vld [vmem:[%s407_s0] sm:$0xff]  }
   0x7   :  { %279 = vmatpush3.bf16.msra.mxu0 %v310_v2  ;;  %62 = vperm.xlu0 %307, %v44_v9   ;;  %v186_v39 = vld [vmem:[%s411_s3] sm:$0x3] }
   0x8   :  { %280 = vmatprep.subr.bf16.mxu0 %v311_v3 }
   0x9   :  { %52 = vperm.xlu1 %308, %v42_v10  }
   0xb   :  { %281 = vmatpush3.bf16.msra.mxu0 %v311_v3  ;;  %192 = vperm.xlu0 %307, %v189_v12  }
   0xc   :  { %282 = vmatprep.subr.bf16.mxu0 %v312_v4 }
   0xf   :  { %283 = vmatpush3.bf16.msra.mxu0 %v312_v4 }
  0x10   :  { %284 = vmatprep.subr.bf16.mxu0 %v313_v8 }
  0x13   :  { %285 = vmatpush3.bf16.msra.mxu0 %v313_v8 }
  0x14   :  { %286 = vmatprep.subr.bf16.mxu0 %v314_v11 }
  0x17   :  { %287 = vmatpush3.bf16.msra.mxu0 %v314_v11 }
  0x18   :  { %288 = vmatprep.subr.bf16.mxu0 %v315_v13 }
  0x1b   :  { %289 = vmatpush3.bf16.msra.mxu0 %v315_v13 }
  0x1c   :  { %290 = vmatprep.subr.bf16.mxu0 %v316_v14 }
  0x1f   :  { %291 = vmatpush3.bf16.msra.mxu0 %v316_v14 }
  0x22   :  { %293 = vmatmul.mubr.bf16.vlgmr.msra.gmra.mxu0 %v318_v15 }
  0x7e   :  { %v58_v17 = vpop.permute.xlu0 %57 }
  0x80   :  { %v48_v18 = vpop.permute.xlu1 %47 }
  0x82   :  { %v63_v22 = vpop.permute.xlu0 %62 }
  0x84   :  { %v53_v27 = vpop.permute.xlu1 %52 }
  0x86   :  { %v193_v40 = vpop.permute.xlu0 %192 }
  0xe2   :  { %v294_v19 = vpop.f32.mrf.mxu0 }
  0xe3   :  { %v168_v20 = vadd.f32 %v294_v19, %v58_v17 }
  0xe4   :  { %v159_v21 = vpop.f32.mrf.mxu0 }
  0xe5   :  { %v160_v23 = vadd.f32 %v159_v21, %v48_v18  ;;  %v180_v25 = vmul.f32 0.2, %v168_v20  ;;  %vm176_vm1 = vcmp.ge.f32.partialorder %v168_v20, 0.0 }
  0xe6   :  { %v295_v24 = vpop.f32.mrf.mxu0 }
  0xe7   :  { %v171_v26 = vadd.f32 %v295_v24, %v63_v22  ;;  %v178_v31 = vmul.f32 0.2, %v160_v23  ;;  %v184_v33 = vsel %vm176_vm1, %v168_v20, %v180_v25  ;;  %vm174_vm4 = vcmp.ge.f32.partialorder %v160_v23, 0.0 }
  0xe8   :  { %v162_v28 = vpop.f32.mrf.mxu0 }
  0xe9   :  { %v181_v29 = vmul.f32 0.2, %v171_v26  ;;  %v163_v30 = vadd.f32 %v162_v28, %v53_v27  ;;  %vm177_vm2 = vcmp.ge.f32.partialorder %v171_v26, 0.0  ;;  %v182_v37 = vsel %vm174_vm4, %v160_v23, %v178_v31 }
  0xeb   :  { %vm175_vm3 = vcmp.ge.f32.partialorder %v163_v30, 0.0  ;;  %v179_v32 = vmul.f32 0.2, %v163_v30  ;;  %v185_v34 = vsel %vm177_vm2, %v171_v26, %v181_v29 }
  0xec   :  { %v188_v35 = vpack.c.bf16 %v185_v34, %v184_v33 }
  0xed   :  { %v183_v36 = vsel %vm175_vm3, %v163_v30, %v179_v32 }
  0xee   :  { %297 = vmatpush3.bf16.msra.mxu1 %v188_v35  ;;  %v187_v38 = vpack.c.bf16 %v183_v36, %v182_v37 }
  0xef   :  { %298 = vmatprep.subr.bf16.mxu1 %v324_v16 }
  0xf2   :  { %299 = vmatpush3.bf16.msra.mxu1 %v187_v38 }
  0xf5   :  { %301 = vmatmul.mubr.msk.bf16.vlgmr.msra.gmra.mxu1 %vm195_vm5, %v186_v39 }
 0x1b5   :  { %v233_v41 = vpop.f32.mrf.mxu1 }
 0x1b6   :  { %v234_v42 = vadd.f32 %v233_v41, %v193_v40 }
 0x1b7   :  { %v302_v43 = vpop.f32.mrf.mxu1 }
 0x1b8   :  { %v262_v44 = vmul.f32 -1.442695, %v234_v42 }
 0x1b9   :  { %v236_v45 = vpop.f32.mrf.mxu1 }
 0x1ba   :  { %319 = vpow2.f32 %v262_v44 }
 0x1bb   :  { %v303_v46 = vpop.f32.mrf.mxu1 }
 0x1c7   :  { %v320_v47 = vpop.eup %319 }
 0x1c8   :  { %v242_v48 = vadd.f32 1.0, %v320_v47 }
 0x1ca   :  { %321 = vrcp.f32 %v242_v48 }
 0x1d7   :  { %v322_v49 = vpop.eup %321 }
 0x1d8   :  { %246 = vst.msk [vmem:[%s412_s5] sm:$0x7] %vm245_vm6, %v322_v49 }

</bundles_post_ra>
